<compile_context>
chip_gen: v5e
topology: v5e:2x2
jax: 0.10.0
libtpu: 0.0.40
codegen_flags: <defaults>
</compile_context>

<pallas_src>
import jax
import jax.numpy as jnp
import numpy as np
from jax.experimental import pallas as pl
from jax.experimental.pallas import tpu as pltpu  # noqa: F401  (kept for TPU-specific tuning)

HIDDEN = 64
NUM_HEADS = 4
HEAD_DIM = HIDDEN // NUM_HEADS
FFN = HIDDEN * 4
VOCAB = 1000
VOCAB_PAD = 1024          # lane-dense (multiple of 128) output width
NUM_LAYERS = 2
LN_EPS = 1e-5


def _layernorm(x, w, b):
    mu = jnp.mean(x, axis=-1, keepdims=True)
    var = jnp.mean((x - mu) ** 2, axis=-1, keepdims=True)
    return (x - mu) * jax.lax.rsqrt(var + LN_EPS) * w + b


# ---------------------------------------------------------------------------
# One fused kernel for the whole model. No grid: everything fits in VMEM.
# ---------------------------------------------------------------------------
def fused_model_kernel(ids_ref, mask_ref, emb_ref,
                       wq_ref, wk_ref, wv_ref, bq_ref, bk_ref, bv_ref,
                       wo_ref, bo_ref, ln1w_ref, ln1b_ref,
                       w1_ref, b1_ref, w2_ref, b2_ref, ln2w_ref, ln2b_ref,
                       outw_ref, outb_ref,
                       hid_ref, logits_ref):
    n_tok = ids_ref.shape[0]

    # --- embedding gather as a one-hot matmul (no dynamic gather needed) ---
    ids = ids_ref[...]                                                   # (N, 1) int32
    vocab_iota = jax.lax.broadcasted_iota(jnp.int32, (n_tok, VOCAB_PAD), 1)
    onehot = (vocab_iota == ids).astype(jnp.float32)                     # (N, VOCAB_PAD)
    x = jnp.dot(onehot, emb_ref[...], preferred_element_type=jnp.float32)  # (N, D)

    add_mask = mask_ref[...]                                             # (N, N) additive mask
    scale = jnp.float32(1.0 / (HEAD_DIM ** 0.5))

    for l in range(NUM_LAYERS):                       # static unroll: 2 layers
        # ---------------- multi-head self attention ----------------
        attn = jnp.zeros((n_tok, HIDDEN), jnp.float32)
        for h in range(NUM_HEADS):                    # static unroll: 4 heads
            i = l * NUM_HEADS + h
            q = jnp.dot(x, wq_ref[i], preferred_element_type=jnp.float32) + bq_ref[i]
            k = jnp.dot(x, wk_ref[i], preferred_element_type=jnp.float32) + bk_ref[i]
            v = jnp.dot(x, wv_ref[i], preferred_element_type=jnp.float32) + bv_ref[i]
            # scores over all tokens; block-diagonal mask keeps batches independent
            s = jax.lax.dot_general(q * scale, k, (((1,), (1,)), ((), ())),
                                    preferred_element_type=jnp.float32)  # (N, N)
            s = s + add_mask
            s = s - jnp.max(s, axis=-1, keepdims=True)
            p = jnp.exp(s)
            p = p * pl.reciprocal(jnp.sum(p, axis=-1, keepdims=True), approx=True)
            o = jnp.dot(p, v, preferred_element_type=jnp.float32)        # (N, HEAD_DIM)
            # accumulate through per-head slice of the output projection
            attn = attn + jnp.dot(o, wo_ref[i], preferred_element_type=jnp.float32)
        attn = attn + bo_ref[l]

        # ---------------- residual + LN 1 ----------------
        x1 = _layernorm(x + attn, ln1w_ref[l], ln1b_ref[l])

        # ---------------- feed-forward ----------------
        hdn = jnp.maximum(
            jnp.dot(x1, w1_ref[l], preferred_element_type=jnp.float32) + b1_ref[l], 0.0)
        ff = jnp.dot(hdn, w2_ref[l], preferred_element_type=jnp.float32) + b2_ref[l]

        # ---------------- residual + LN 2 ----------------
        x = _layernorm(x1 + ff, ln2w_ref[l], ln2b_ref[l])

    hid_ref[...] = x
    logits_ref[...] = (jnp.dot(x, outw_ref[...], preferred_element_type=jnp.float32)
                       + outb_ref[...])


def model_forward(params, input_ids):
    B, S = input_ids.shape
    N = B * S
    LH = NUM_LAYERS * NUM_HEADS

    ids2d = input_ids.reshape(N, 1).astype(jnp.int32)

    # block-diagonal additive attention mask (tokens only attend within their own batch row)
    batch_id = np.repeat(np.arange(B), S)
    add_mask = jnp.asarray(
        np.where(batch_id[:, None] == batch_id[None, :], 0.0, -1e30).astype(np.float32))

    args = (
        ids2d,
        add_mask,
        params["emb"],
        params["wq"].reshape(LH, HIDDEN, HEAD_DIM),
        params["wk"].reshape(LH, HIDDEN, HEAD_DIM),
        params["wv"].reshape(LH, HIDDEN, HEAD_DIM),
        params["bq"].reshape(LH, 1, HEAD_DIM),
        params["bk"].reshape(LH, 1, HEAD_DIM),
        params["bv"].reshape(LH, 1, HEAD_DIM),
        params["wo"].reshape(LH, HEAD_DIM, HIDDEN),
        params["bo"].reshape(NUM_LAYERS, 1, HIDDEN),
        params["ln1w"].reshape(NUM_LAYERS, 1, HIDDEN),
        params["ln1b"].reshape(NUM_LAYERS, 1, HIDDEN),
        params["w1"],
        params["b1"].reshape(NUM_LAYERS, 1, FFN),
        params["w2"],
        params["b2"].reshape(NUM_LAYERS, 1, HIDDEN),
        params["ln2w"].reshape(NUM_LAYERS, 1, HIDDEN),
        params["ln2b"].reshape(NUM_LAYERS, 1, HIDDEN),
        params["out_w"],
        params["out_b"].reshape(1, VOCAB_PAD),
    )

    hidden2d, logits_pad = pl.pallas_call(
        fused_model_kernel,
        out_shape=(jax.ShapeDtypeStruct((N, HIDDEN), jnp.float32),
                   jax.ShapeDtypeStruct((N, VOCAB_PAD), jnp.float32)),
        # no grid / no BlockSpecs: every operand is a single full VMEM-resident block
    )(*args)

    hidden = hidden2d.reshape(B, S, HIDDEN)
    logits = logits_pad[:, :VOCAB].reshape(B, S, VOCAB)
    return {"hidden_states": hidden, "logits": logits}


# ---------------------------------------------------------------------------
# Parameter init (weights pre-transposed / pre-split per head; padded cols are zero)
# ---------------------------------------------------------------------------
def init_params(key):
    ks = jax.random.split(key, 15)

    def rnd(k, shape, s=0.05):
        return jax.random.normal(k, shape, jnp.float32) * s

    L, H, D, Hd, F = NUM_LAYERS, NUM_HEADS, HIDDEN, HEAD_DIM, FFN

    emb = jnp.zeros((VOCAB_PAD, D), jnp.float32).at[:VOCAB].set(rnd(ks[0], (VOCAB, D), 0.02))
    out_w = jnp.zeros((D, VOCAB_PAD), jnp.float32).at[:, :VOCAB].set(rnd(ks[1], (D, VOCAB), 0.02))
    out_b = jnp.zeros((VOCAB_PAD,), jnp.float32).at[:VOCAB].set(rnd(ks[2], (VOCAB,), 0.02))

    return {
        "emb": emb, "out_w": out_w, "out_b": out_b,
        "wq": rnd(ks[3], (L, H, D, Hd)), "wk": rnd(ks[4], (L, H, D, Hd)),
        "wv": rnd(ks[5], (L, H, D, Hd)), "wo": rnd(ks[6], (L, H, Hd, D)),
        "bq": rnd(ks[7], (L, H, Hd), 0.02), "bk": rnd(ks[8], (L, H, Hd), 0.02),
        "bv": rnd(ks[9], (L, H, Hd), 0.02), "bo": rnd(ks[10], (L, D), 0.02),
        "w1": rnd(ks[11], (L, D, F)), "b1": rnd(ks[12], (L, F), 0.02),
        "w2": rnd(ks[13], (L, F, D)), "b2": rnd(ks[14], (L, D), 0.02),
        "ln1w": jnp.ones((L, D), jnp.float32), "ln1b": jnp.zeros((L, D), jnp.float32),
        "ln2w": jnp.ones((L, D), jnp.float32), "ln2b": jnp.zeros((L, D), jnp.float32),
    }


# ---------------------------------------------------------------------------
# Pure-JAX reference (same math) for a correctness sanity check.
# ---------------------------------------------------------------------------
def reference_forward(params, input_ids):
    x = jnp.take(params["emb"], input_ids, axis=0)          # (B, S, D)
    sc = 1.0 / (HEAD_DIM ** 0.5)
    for l in range(NUM_LAYERS):
        q = jnp.einsum("bsd,hdk->bhsk", x, params["wq"][l]) + params["bq"][l][None, :, None, :]
        k = jnp.einsum("bsd,hdk->bhsk", x, params["wk"][l]) + params["bk"][l][None, :, None, :]
        v = jnp.einsum("bsd,hdk->bhsk", x, params["wv"][l]) + params["bv"][l][None, :, None, :]
        s = jnp.einsum("bhqk,bhmk->bhqm", q, k) * sc
        p = jax.nn.softmax(s, axis=-1)
        o = jnp.einsum("bhqm,bhmk->bhqk", p, v)
        attn = jnp.einsum("bhsk,hkd->bsd", o, params["wo"][l]) + params["bo"][l]
        x1 = _layernorm(x + attn, params["ln1w"][l], params["ln1b"][l])
        ff = jnp.maximum(jnp.einsum("bsd,df->bsf", x1, params["w1"][l]) + params["b1"][l], 0.0)
        ff = jnp.einsum("bsf,fd->bsd", ff, params["w2"][l]) + params["b2"][l]
        x = _layernorm(x1 + ff, params["ln2w"][l], params["ln2b"][l])
    logits = jnp.einsum("bsd,dv->bsv", x, params["out_w"][:, :VOCAB]) + params["out_b"][:VOCAB]
    return {"hidden_states": x, "logits": logits}


if __name__ == "__main__":
    key = jax.random.PRNGKey(0)
    k_params, k_ids = jax.random.split(key)
    params = init_params(k_params)

    B, S = 2, 8
    input_ids = jax.random.randint(k_ids, (B, S), 0, VOCAB, dtype=jnp.int32)

    fwd = jax.jit(model_forward)
    out = fwd(params, input_ids)
    jax.block_until_ready(out)

    ref = reference_forward(params, input_ids)
    # tolerance accounts for the EUP approximate-reciprocal in the softmax denominator
    np.testing.assert_allclose(np.asarray(out["hidden_states"]),
                               np.asarray(ref["hidden_states"]), rtol=1e-2, atol=1e-2)
    np.testing.assert_allclose(np.asarray(out["logits"]),
                               np.asarray(ref["logits"]), rtol=1e-2, atol=1e-2)

    assert out["hidden_states"].shape == (B, S, HIDDEN)
    assert out["logits"].shape == (B, S, VOCAB)
    print("KERNEL_OK")
</pallas_src>

<mosaic_0001>
module attributes {stable_mosaic.version = 11 : i64} {
  func.func @fused_model_kernel(%arg0: memref<16x1xi32, #tpu.memory_space<vmem>>, %arg1: memref<16x16xf32, #tpu.memory_space<vmem>>, %arg2: memref<1024x64xf32, #tpu.memory_space<vmem>>, %arg3: memref<8x64x16xf32, #tpu.memory_space<vmem>>, %arg4: memref<8x64x16xf32, #tpu.memory_space<vmem>>, %arg5: memref<8x64x16xf32, #tpu.memory_space<vmem>>, %arg6: memref<8x1x16xf32, #tpu.memory_space<vmem>>, %arg7: memref<8x1x16xf32, #tpu.memory_space<vmem>>, %arg8: memref<8x1x16xf32, #tpu.memory_space<vmem>>, %arg9: memref<8x16x64xf32, #tpu.memory_space<vmem>>, %arg10: memref<2x1x64xf32, #tpu.memory_space<vmem>>, %arg11: memref<2x1x64xf32, #tpu.memory_space<vmem>>, %arg12: memref<2x1x64xf32, #tpu.memory_space<vmem>>, %arg13: memref<2x64x256xf32, #tpu.memory_space<vmem>>, %arg14: memref<2x1x256xf32, #tpu.memory_space<vmem>>, %arg15: memref<2x256x64xf32, #tpu.memory_space<vmem>>, %arg16: memref<2x1x64xf32, #tpu.memory_space<vmem>>, %arg17: memref<2x1x64xf32, #tpu.memory_space<vmem>>, %arg18: memref<2x1x64xf32, #tpu.memory_space<vmem>>, %arg19: memref<64x1024xf32, #tpu.memory_space<vmem>>, %arg20: memref<1x1024xf32, #tpu.memory_space<vmem>>, %arg21: memref<16x64xf32, #tpu.memory_space<vmem>>, %arg22: memref<16x1024xf32, #tpu.memory_space<vmem>>) attributes {dimension_semantics = [], scalar_prefetch = 0 : i64, scratch_operands = 0 : i64, tpu.core_type = #tpu.core_type<tc>} {
    %c0 = arith.constant 0 : index
    %c0_0 = arith.constant 0 : index
    %0 = vector.load %arg0[%c0, %c0_0] : memref<16x1xi32, #tpu.memory_space<vmem>>, vector<16x1xi32>
    %1 = tpu.iota {dimensions = array<i32: 1>} : vector<16x1024xi32>
    %2 = vector.broadcast %0 : vector<16x1xi32> to vector<16x1024xi32>
    %3 = arith.cmpi eq, %1, %2 : vector<16x1024xi32>
    %4 = arith.extui %3 : vector<16x1024xi1> to vector<16x1024xi32>
    %5 = arith.sitofp %4 : vector<16x1024xi32> to vector<16x1024xf32>
    %c0_1 = arith.constant 0 : index
    %c0_2 = arith.constant 0 : index
    %6 = vector.load %arg2[%c0_1, %c0_2] : memref<1024x64xf32, #tpu.memory_space<vmem>>, vector<1024x64xf32>
    %cst = arith.constant dense<0.000000e+00> : vector<16x64xf32>
    %7 = tpu.matmul %5, %6, %cst {dimension_numbers = #tpu.dot_dimension_numbers<[1], [0], [0], [1], [0, 0, 1, 1], [], []>} : vector<16x1024xf32>, vector<1024x64xf32>, vector<16x64xf32> -> vector<16x64xf32>
    %c0_3 = arith.constant 0 : index
    %c0_4 = arith.constant 0 : index
    %8 = vector.load %arg1[%c0_3, %c0_4] : memref<16x16xf32, #tpu.memory_space<vmem>>, vector<16x16xf32>
    %cst_5 = arith.constant 0.000000e+00 : f32
    %9 = vector.broadcast %cst_5 : f32 to vector<16x64xf32>
    %c0_6 = arith.constant 0 : index
    %c0_7 = arith.constant 0 : index
    %c0_8 = arith.constant 0 : index
    %10 = vector.load %arg3[%c0_6, %c0_7, %c0_8] : memref<8x64x16xf32, #tpu.memory_space<vmem>>, vector<1x64x16xf32>
    %11 = vector.shape_cast %10 : vector<1x64x16xf32> to vector<64x16xf32>
    %cst_9 = arith.constant dense<0.000000e+00> : vector<16x16xf32>
    %12 = tpu.matmul %7, %11, %cst_9 {dimension_numbers = #tpu.dot_dimension_numbers<[1], [0], [0], [1], [0, 0, 1, 1], [], []>} : vector<16x64xf32>, vector<64x16xf32>, vector<16x16xf32> -> vector<16x16xf32>
    %c0_10 = arith.constant 0 : index
    %c0_11 = arith.constant 0 : index
    %c0_12 = arith.constant 0 : index
    %13 = vector.load %arg6[%c0_10, %c0_11, %c0_12] : memref<8x1x16xf32, #tpu.memory_space<vmem>>, vector<1x1x16xf32>
    %14 = vector.shape_cast %13 : vector<1x1x16xf32> to vector<1x16xf32>
    %15 = vector.broadcast %14 : vector<1x16xf32> to vector<16x16xf32>
    %16 = arith.addf %12, %15 : vector<16x16xf32>
    %c0_13 = arith.constant 0 : index
    %c0_14 = arith.constant 0 : index
    %c0_15 = arith.constant 0 : index
    %17 = vector.load %arg4[%c0_13, %c0_14, %c0_15] : memref<8x64x16xf32, #tpu.memory_space<vmem>>, vector<1x64x16xf32>
    %18 = vector.shape_cast %17 : vector<1x64x16xf32> to vector<64x16xf32>
    %cst_16 = arith.constant dense<0.000000e+00> : vector<16x16xf32>
    %19 = tpu.matmul %7, %18, %cst_16 {dimension_numbers = #tpu.dot_dimension_numbers<[1], [0], [0], [1], [0, 0, 1, 1], [], []>} : vector<16x64xf32>, vector<64x16xf32>, vector<16x16xf32> -> vector<16x16xf32>
    %c0_17 = arith.constant 0 : index
    %c0_18 = arith.constant 0 : index
    %c0_19 = arith.constant 0 : index
    %20 = vector.load %arg7[%c0_17, %c0_18, %c0_19] : memref<8x1x16xf32, #tpu.memory_space<vmem>>, vector<1x1x16xf32>
    %21 = vector.shape_cast %20 : vector<1x1x16xf32> to vector<1x16xf32>
    %22 = vector.broadcast %21 : vector<1x16xf32> to vector<16x16xf32>
    %23 = arith.addf %19, %22 : vector<16x16xf32>
    %c0_20 = arith.constant 0 : index
    %c0_21 = arith.constant 0 : index
    %c0_22 = arith.constant 0 : index
    %24 = vector.load %arg5[%c0_20, %c0_21, %c0_22] : memref<8x64x16xf32, #tpu.memory_space<vmem>>, vector<1x64x16xf32>
    %25 = vector.shape_cast %24 : vector<1x64x16xf32> to vector<64x16xf32>
    %cst_23 = arith.constant dense<0.000000e+00> : vector<16x16xf32>
    %26 = tpu.matmul %7, %25, %cst_23 {dimension_numbers = #tpu.dot_dimension_numbers<[1], [0], [0], [1], [0, 0, 1, 1], [], []>} : vector<16x64xf32>, vector<64x16xf32>, vector<16x16xf32> -> vector<16x16xf32>
    %c0_24 = arith.constant 0 : index
    %c0_25 = arith.constant 0 : index
    %c0_26 = arith.constant 0 : index
    %27 = vector.load %arg8[%c0_24, %c0_25, %c0_26] : memref<8x1x16xf32, #tpu.memory_space<vmem>>, vector<1x1x16xf32>
    %28 = vector.shape_cast %27 : vector<1x1x16xf32> to vector<1x16xf32>
    %29 = vector.broadcast %28 : vector<1x16xf32> to vector<16x16xf32>
    %30 = arith.addf %26, %29 : vector<16x16xf32>
    %cst_27 = arith.constant 2.500000e-01 : f32
    %31 = vector.broadcast %cst_27 : f32 to vector<16x16xf32>
    %32 = arith.mulf %16, %31 : vector<16x16xf32>
    %cst_28 = arith.constant dense<0.000000e+00> : vector<16x16xf32>
    %33 = tpu.matmul %32, %23, %cst_28 {dimension_numbers = #tpu.dot_dimension_numbers<[1], [1], [0], [0], [0, 0, 1, 0], [], []>} : vector<16x16xf32>, vector<16x16xf32>, vector<16x16xf32> -> vector<16x16xf32>
    %34 = arith.addf %33, %8 : vector<16x16xf32>
    %cst_29 = arith.constant dense<0xFF800000> : vector<16xf32>
    %35 = vector.multi_reduction <maximumf>, %34, %cst_29 [1] : vector<16x16xf32> to vector<16xf32>
    %36 = vector.shape_cast %35 : vector<16xf32> to vector<16x1xf32>
    %37 = vector.broadcast %36 : vector<16x1xf32> to vector<16x16xf32>
    %38 = arith.subf %34, %37 : vector<16x16xf32>
    %39 = math.exp %38 : vector<16x16xf32>
    %cst_30 = arith.constant dense<0.000000e+00> : vector<16xf32>
    %40 = vector.multi_reduction <add>, %39, %cst_30 [1] : vector<16x16xf32> to vector<16xf32>
    %41 = vector.shape_cast %40 : vector<16xf32> to vector<16x1xf32>
    %42 = tpu.reciprocal %41 {approx = true} : vector<16x1xf32> -> vector<16x1xf32>
    %43 = vector.broadcast %42 : vector<16x1xf32> to vector<16x16xf32>
    %44 = arith.mulf %39, %43 : vector<16x16xf32>
    %cst_31 = arith.constant dense<0.000000e+00> : vector<16x16xf32>
    %45 = tpu.matmul %44, %30, %cst_31 {dimension_numbers = #tpu.dot_dimension_numbers<[1], [0], [0], [1], [0, 0, 1, 1], [], []>} : vector<16x16xf32>, vector<16x16xf32>, vector<16x16xf32> -> vector<16x16xf32>
    %c0_32 = arith.constant 0 : index
    %c0_33 = arith.constant 0 : index
    %c0_34 = arith.constant 0 : index
    %46 = vector.load %arg9[%c0_32, %c0_33, %c0_34] : memref<8x16x64xf32, #tpu.memory_space<vmem>>, vector<1x16x64xf32>
    %47 = vector.shape_cast %46 : vector<1x16x64xf32> to vector<16x64xf32>
    %cst_35 = arith.constant dense<0.000000e+00> : vector<16x64xf32>
    %48 = tpu.matmul %45, %47, %cst_35 {dimension_numbers = #tpu.dot_dimension_numbers<[1], [0], [0], [1], [0, 0, 1, 1], [], []>} : vector<16x16xf32>, vector<16x64xf32>, vector<16x64xf32> -> vector<16x64xf32>
    %49 = arith.addf %9, %48 : vector<16x64xf32>
    %c1 = arith.constant 1 : index
    %c0_36 = arith.constant 0 : index
    %c0_37 = arith.constant 0 : index
    %50 = vector.load %arg3[%c1, %c0_36, %c0_37] : memref<8x64x16xf32, #tpu.memory_space<vmem>>, vector<1x64x16xf32>
    %51 = vector.shape_cast %50 : vector<1x64x16xf32> to vector<64x16xf32>
    %cst_38 = arith.constant dense<0.000000e+00> : vector<16x16xf32>
    %52 = tpu.matmul %7, %51, %cst_38 {dimension_numbers = #tpu.dot_dimension_numbers<[1], [0], [0], [1], [0, 0, 1, 1], [], []>} : vector<16x64xf32>, vector<64x16xf32>, vector<16x16xf32> -> vector<16x16xf32>
    %c1_39 = arith.constant 1 : index
    %c0_40 = arith.constant 0 : index
    %c0_41 = arith.constant 0 : index
    %53 = vector.load %arg6[%c1_39, %c0_40, %c0_41] : memref<8x1x16xf32, #tpu.memory_space<vmem>>, vector<1x1x16xf32>
    %54 = vector.shape_cast %53 : vector<1x1x16xf32> to vector<1x16xf32>
    %55 = vector.broadcast %54 : vector<1x16xf32> to vector<16x16xf32>
    %56 = arith.addf %52, %55 : vector<16x16xf32>
    %c1_42 = arith.constant 1 : index
    %c0_43 = arith.constant 0 : index
    %c0_44 = arith.constant 0 : index
    %57 = vector.load %arg4[%c1_42, %c0_43, %c0_44] : memref<8x64x16xf32, #tpu.memory_space<vmem>>, vector<1x64x16xf32>
    %58 = vector.shape_cast %57 : vector<1x64x16xf32> to vector<64x16xf32>
    %cst_45 = arith.constant dense<0.000000e+00> : vector<16x16xf32>
    %59 = tpu.matmul %7, %58, %cst_45 {dimension_numbers = #tpu.dot_dimension_numbers<[1], [0], [0], [1], [0, 0, 1, 1], [], []>} : vector<16x64xf32>, vector<64x16xf32>, vector<16x16xf32> -> vector<16x16xf32>
    %c1_46 = arith.constant 1 : index
    %c0_47 = arith.constant 0 : index
    %c0_48 = arith.constant 0 : index
    %60 = vector.load %arg7[%c1_46, %c0_47, %c0_48] : memref<8x1x16xf32, #tpu.memory_space<vmem>>, vector<1x1x16xf32>
    %61 = vector.shape_cast %60 : vector<1x1x16xf32> to vector<1x16xf32>
    %62 = vector.broadcast %61 : vector<1x16xf32> to vector<16x16xf32>
    %63 = arith.addf %59, %62 : vector<16x16xf32>
    %c1_49 = arith.constant 1 : index
    %c0_50 = arith.constant 0 : index
    %c0_51 = arith.constant 0 : index
    %64 = vector.load %arg5[%c1_49, %c0_50, %c0_51] : memref<8x64x16xf32, #tpu.memory_space<vmem>>, vector<1x64x16xf32>
    %65 = vector.shape_cast %64 : vector<1x64x16xf32> to vector<64x16xf32>
    %cst_52 = arith.constant dense<0.000000e+00> : vector<16x16xf32>
    %66 = tpu.matmul %7, %65, %cst_52 {dimension_numbers = #tpu.dot_dimension_numbers<[1], [0], [0], [1], [0, 0, 1, 1], [], []>} : vector<16x64xf32>, vector<64x16xf32>, vector<16x16xf32> -> vector<16x16xf32>
    %c1_53 = arith.constant 1 : index
    %c0_54 = arith.constant 0 : index
    %c0_55 = arith.constant 0 : index
    %67 = vector.load %arg8[%c1_53, %c0_54, %c0_55] : memref<8x1x16xf32, #tpu.memory_space<vmem>>, vector<1x1x16xf32>
    %68 = vector.shape_cast %67 : vector<1x1x16xf32> to vector<1x16xf32>
    %69 = vector.broadcast %68 : vector<1x16xf32> to vector<16x16xf32>
    %70 = arith.addf %66, %69 : vector<16x16xf32>
    %cst_56 = arith.constant 2.500000e-01 : f32
    %71 = vector.broadcast %cst_56 : f32 to vector<16x16xf32>
    %72 = arith.mulf %56, %71 : vector<16x16xf32>
    %cst_57 = arith.constant dense<0.000000e+00> : vector<16x16xf32>
    %73 = tpu.matmul %72, %63, %cst_57 {dimension_numbers = #tpu.dot_dimension_numbers<[1], [1], [0], [0], [0, 0, 1, 0], [], []>} : vector<16x16xf32>, vector<16x16xf32>, vector<16x16xf32> -> vector<16x16xf32>
    %74 = arith.addf %73, %8 : vector<16x16xf32>
    %cst_58 = arith.constant dense<0xFF800000> : vector<16xf32>
    %75 = vector.multi_reduction <maximumf>, %74, %cst_58 [1] : vector<16x16xf32> to vector<16xf32>
    %76 = vector.shape_cast %75 : vector<16xf32> to vector<16x1xf32>
    %77 = vector.broadcast %76 : vector<16x1xf32> to vector<16x16xf32>
    %78 = arith.subf %74, %77 : vector<16x16xf32>
    %79 = math.exp %78 : vector<16x16xf32>
    %cst_59 = arith.constant dense<0.000000e+00> : vector<16xf32>
    %80 = vector.multi_reduction <add>, %79, %cst_59 [1] : vector<16x16xf32> to vector<16xf32>
    %81 = vector.shape_cast %80 : vector<16xf32> to vector<16x1xf32>
    %82 = tpu.reciprocal %81 {approx = true} : vector<16x1xf32> -> vector<16x1xf32>
    %83 = vector.broadcast %82 : vector<16x1xf32> to vector<16x16xf32>
    %84 = arith.mulf %79, %83 : vector<16x16xf32>
    %cst_60 = arith.constant dense<0.000000e+00> : vector<16x16xf32>
    %85 = tpu.matmul %84, %70, %cst_60 {dimension_numbers = #tpu.dot_dimension_numbers<[1], [0], [0], [1], [0, 0, 1, 1], [], []>} : vector<16x16xf32>, vector<16x16xf32>, vector<16x16xf32> -> vector<16x16xf32>
    %c1_61 = arith.constant 1 : index
    %c0_62 = arith.constant 0 : index
    %c0_63 = arith.constant 0 : index
    %86 = vector.load %arg9[%c1_61, %c0_62, %c0_63] : memref<8x16x64xf32, #tpu.memory_space<vmem>>, vector<1x16x64xf32>
    %87 = vector.shape_cast %86 : vector<1x16x64xf32> to vector<16x64xf32>
    %cst_64 = arith.constant dense<0.000000e+00> : vector<16x64xf32>
    %88 = tpu.matmul %85, %87, %cst_64 {dimension_numbers = #tpu.dot_dimension_numbers<[1], [0], [0], [1], [0, 0, 1, 1], [], []>} : vector<16x16xf32>, vector<16x64xf32>, vector<16x64xf32> -> vector<16x64xf32>
    %89 = arith.addf %49, %88 : vector<16x64xf32>
    %c2 = arith.constant 2 : index
    %c0_65 = arith.constant 0 : index
    %c0_66 = arith.constant 0 : index
    %90 = vector.load %arg3[%c2, %c0_65, %c0_66] : memref<8x64x16xf32, #tpu.memory_space<vmem>>, vector<1x64x16xf32>
    %91 = vector.shape_cast %90 : vector<1x64x16xf32> to vector<64x16xf32>
    %cst_67 = arith.constant dense<0.000000e+00> : vector<16x16xf32>
    %92 = tpu.matmul %7, %91, %cst_67 {dimension_numbers = #tpu.dot_dimension_numbers<[1], [0], [0], [1], [0, 0, 1, 1], [], []>} : vector<16x64xf32>, vector<64x16xf32>, vector<16x16xf32> -> vector<16x16xf32>
    %c2_68 = arith.constant 2 : index
    %c0_69 = arith.constant 0 : index
    %c0_70 = arith.constant 0 : index
    %93 = vector.load %arg6[%c2_68, %c0_69, %c0_70] : memref<8x1x16xf32, #tpu.memory_space<vmem>>, vector<1x1x16xf32>
    %94 = vector.shape_cast %93 : vector<1x1x16xf32> to vector<1x16xf32>
    %95 = vector.broadcast %94 : vector<1x16xf32> to vector<16x16xf32>
    %96 = arith.addf %92, %95 : vector<16x16xf32>
    %c2_71 = arith.constant 2 : index
    %c0_72 = arith.constant 0 : index
    %c0_73 = arith.constant 0 : index
    %97 = vector.load %arg4[%c2_71, %c0_72, %c0_73] : memref<8x64x16xf32, #tpu.memory_space<vmem>>, vector<1x64x16xf32>
    %98 = vector.shape_cast %97 : vector<1x64x16xf32> to vector<64x16xf32>
    %cst_74 = arith.constant dense<0.000000e+00> : vector<16x16xf32>
    %99 = tpu.matmul %7, %98, %cst_74 {dimension_numbers = #tpu.dot_dimension_numbers<[1], [0], [0], [1], [0, 0, 1, 1], [], []>} : vector<16x64xf32>, vector<64x16xf32>, vector<16x16xf32> -> vector<16x16xf32>
    %c2_75 = arith.constant 2 : index
    %c0_76 = arith.constant 0 : index
    %c0_77 = arith.constant 0 : index
    %100 = vector.load %arg7[%c2_75, %c0_76, %c0_77] : memref<8x1x16xf32, #tpu.memory_space<vmem>>, vector<1x1x16xf32>
    %101 = vector.shape_cast %100 : vector<1x1x16xf32> to vector<1x16xf32>
    %102 = vector.broadcast %101 : vector<1x16xf32> to vector<16x16xf32>
    %103 = arith.addf %99, %102 : vector<16x16xf32>
    %c2_78 = arith.constant 2 : index
    %c0_79 = arith.constant 0 : index
    %c0_80 = arith.constant 0 : index
    %104 = vector.load %arg5[%c2_78, %c0_79, %c0_80] : memref<8x64x16xf32, #tpu.memory_space<vmem>>, vector<1x64x16xf32>
    %105 = vector.shape_cast %104 : vector<1x64x16xf32> to vector<64x16xf32>
    %cst_81 = arith.constant dense<0.000000e+00> : vector<16x16xf32>
    %106 = tpu.matmul %7, %105, %cst_81 {dimension_numbers = #tpu.dot_dimension_numbers<[1], [0], [0], [1], [0, 0, 1, 1], [], []>} : vector<16x64xf32>, vector<64x16xf32>, vector<16x16xf32> -> vector<16x16xf32>
    %c2_82 = arith.constant 2 : index
    %c0_83 = arith.constant 0 : index
    %c0_84 = arith.constant 0 : index
    %107 = vector.load %arg8[%c2_82, %c0_83, %c0_84] : memref<8x1x16xf32, #tpu.memory_space<vmem>>, vector<1x1x16xf32>
    %108 = vector.shape_cast %107 : vector<1x1x16xf32> to vector<1x16xf32>
    %109 = vector.broadcast %108 : vector<1x16xf32> to vector<16x16xf32>
    %110 = arith.addf %106, %109 : vector<16x16xf32>
    %cst_85 = arith.constant 2.500000e-01 : f32
    %111 = vector.broadcast %cst_85 : f32 to vector<16x16xf32>
    %112 = arith.mulf %96, %111 : vector<16x16xf32>
    %cst_86 = arith.constant dense<0.000000e+00> : vector<16x16xf32>
    %113 = tpu.matmul %112, %103, %cst_86 {dimension_numbers = #tpu.dot_dimension_numbers<[1], [1], [0], [0], [0, 0, 1, 0], [], []>} : vector<16x16xf32>, vector<16x16xf32>, vector<16x16xf32> -> vector<16x16xf32>
    %114 = arith.addf %113, %8 : vector<16x16xf32>
    %cst_87 = arith.constant dense<0xFF800000> : vector<16xf32>
    %115 = vector.multi_reduction <maximumf>, %114, %cst_87 [1] : vector<16x16xf32> to vector<16xf32>
    %116 = vector.shape_cast %115 : vector<16xf32> to vector<16x1xf32>
    %117 = vector.broadcast %116 : vector<16x1xf32> to vector<16x16xf32>
    %118 = arith.subf %114, %117 : vector<16x16xf32>
    %119 = math.exp %118 : vector<16x16xf32>
    %cst_88 = arith.constant dense<0.000000e+00> : vector<16xf32>
    %120 = vector.multi_reduction <add>, %119, %cst_88 [1] : vector<16x16xf32> to vector<16xf32>
    %121 = vector.shape_cast %120 : vector<16xf32> to vector<16x1xf32>
    %122 = tpu.reciprocal %121 {approx = true} : vector<16x1xf32> -> vector<16x1xf32>
    %123 = vector.broadcast %122 : vector<16x1xf32> to vector<16x16xf32>
    %124 = arith.mulf %119, %123 : vector<16x16xf32>
    %cst_89 = arith.constant dense<0.000000e+00> : vector<16x16xf32>
    %125 = tpu.matmul %124, %110, %cst_89 {dimension_numbers = #tpu.dot_dimension_numbers<[1], [0], [0], [1], [0, 0, 1, 1], [], []>} : vector<16x16xf32>, vector<16x16xf32>, vector<16x16xf32> -> vector<16x16xf32>
    %c2_90 = arith.constant 2 : index
    %c0_91 = arith.constant 0 : index
    %c0_92 = arith.constant 0 : index
    %126 = vector.load %arg9[%c2_90, %c0_91, %c0_92] : memref<8x16x64xf32, #tpu.memory_space<vmem>>, vector<1x16x64xf32>
    %127 = vector.shape_cast %126 : vector<1x16x64xf32> to vector<16x64xf32>
    %cst_93 = arith.constant dense<0.000000e+00> : vector<16x64xf32>
    %128 = tpu.matmul %125, %127, %cst_93 {dimension_numbers = #tpu.dot_dimension_numbers<[1], [0], [0], [1], [0, 0, 1, 1], [], []>} : vector<16x16xf32>, vector<16x64xf32>, vector<16x64xf32> -> vector<16x64xf32>
    %129 = arith.addf %89, %128 : vector<16x64xf32>
    %c3 = arith.constant 3 : index
    %c0_94 = arith.constant 0 : index
    %c0_95 = arith.constant 0 : index
    %130 = vector.load %arg3[%c3, %c0_94, %c0_95] : memref<8x64x16xf32, #tpu.memory_space<vmem>>, vector<1x64x16xf32>
    %131 = vector.shape_cast %130 : vector<1x64x16xf32> to vector<64x16xf32>
    %cst_96 = arith.constant dense<0.000000e+00> : vector<16x16xf32>
    %132 = tpu.matmul %7, %131, %cst_96 {dimension_numbers = #tpu.dot_dimension_numbers<[1], [0], [0], [1], [0, 0, 1, 1], [], []>} : vector<16x64xf32>, vector<64x16xf32>, vector<16x16xf32> -> vector<16x16xf32>
    %c3_97 = arith.constant 3 : index
    %c0_98 = arith.constant 0 : index
    %c0_99 = arith.constant 0 : index
    %133 = vector.load %arg6[%c3_97, %c0_98, %c0_99] : memref<8x1x16xf32, #tpu.memory_space<vmem>>, vector<1x1x16xf32>
    %134 = vector.shape_cast %133 : vector<1x1x16xf32> to vector<1x16xf32>
    %135 = vector.broadcast %134 : vector<1x16xf32> to vector<16x16xf32>
    %136 = arith.addf %132, %135 : vector<16x16xf32>
    %c3_100 = arith.constant 3 : index
    %c0_101 = arith.constant 0 : index
    %c0_102 = arith.constant 0 : index
    %137 = vector.load %arg4[%c3_100, %c0_101, %c0_102] : memref<8x64x16xf32, #tpu.memory_space<vmem>>, vector<1x64x16xf32>
    %138 = vector.shape_cast %137 : vector<1x64x16xf32> to vector<64x16xf32>
    %cst_103 = arith.constant dense<0.000000e+00> : vector<16x16xf32>
    %139 = tpu.matmul %7, %138, %cst_103 {dimension_numbers = #tpu.dot_dimension_numbers<[1], [0], [0], [1], [0, 0, 1, 1], [], []>} : vector<16x64xf32>, vector<64x16xf32>, vector<16x16xf32> -> vector<16x16xf32>
    %c3_104 = arith.constant 3 : index
    %c0_105 = arith.constant 0 : index
    %c0_106 = arith.constant 0 : index
    %140 = vector.load %arg7[%c3_104, %c0_105, %c0_106] : memref<8x1x16xf32, #tpu.memory_space<vmem>>, vector<1x1x16xf32>
    %141 = vector.shape_cast %140 : vector<1x1x16xf32> to vector<1x16xf32>
    %142 = vector.broadcast %141 : vector<1x16xf32> to vector<16x16xf32>
    %143 = arith.addf %139, %142 : vector<16x16xf32>
    %c3_107 = arith.constant 3 : index
    %c0_108 = arith.constant 0 : index
    %c0_109 = arith.constant 0 : index
    %144 = vector.load %arg5[%c3_107, %c0_108, %c0_109] : memref<8x64x16xf32, #tpu.memory_space<vmem>>, vector<1x64x16xf32>
    %145 = vector.shape_cast %144 : vector<1x64x16xf32> to vector<64x16xf32>
    %cst_110 = arith.constant dense<0.000000e+00> : vector<16x16xf32>
    %146 = tpu.matmul %7, %145, %cst_110 {dimension_numbers = #tpu.dot_dimension_numbers<[1], [0], [0], [1], [0, 0, 1, 1], [], []>} : vector<16x64xf32>, vector<64x16xf32>, vector<16x16xf32> -> vector<16x16xf32>
    %c3_111 = arith.constant 3 : index
    %c0_112 = arith.constant 0 : index
    %c0_113 = arith.constant 0 : index
    %147 = vector.load %arg8[%c3_111, %c0_112, %c0_113] : memref<8x1x16xf32, #tpu.memory_space<vmem>>, vector<1x1x16xf32>
    %148 = vector.shape_cast %147 : vector<1x1x16xf32> to vector<1x16xf32>
    %149 = vector.broadcast %148 : vector<1x16xf32> to vector<16x16xf32>
    %150 = arith.addf %146, %149 : vector<16x16xf32>
    %cst_114 = arith.constant 2.500000e-01 : f32
    %151 = vector.broadcast %cst_114 : f32 to vector<16x16xf32>
    %152 = arith.mulf %136, %151 : vector<16x16xf32>
    %cst_115 = arith.constant dense<0.000000e+00> : vector<16x16xf32>
    %153 = tpu.matmul %152, %143, %cst_115 {dimension_numbers = #tpu.dot_dimension_numbers<[1], [1], [0], [0], [0, 0, 1, 0], [], []>} : vector<16x16xf32>, vector<16x16xf32>, vector<16x16xf32> -> vector<16x16xf32>
    %154 = arith.addf %153, %8 : vector<16x16xf32>
    %cst_116 = arith.constant dense<0xFF800000> : vector<16xf32>
    %155 = vector.multi_reduction <maximumf>, %154, %cst_116 [1] : vector<16x16xf32> to vector<16xf32>
    %156 = vector.shape_cast %155 : vector<16xf32> to vector<16x1xf32>
    %157 = vector.broadcast %156 : vector<16x1xf32> to vector<16x16xf32>
    %158 = arith.subf %154, %157 : vector<16x16xf32>
    %159 = math.exp %158 : vector<16x16xf32>
    %cst_117 = arith.constant dense<0.000000e+00> : vector<16xf32>
    %160 = vector.multi_reduction <add>, %159, %cst_117 [1] : vector<16x16xf32> to vector<16xf32>
    %161 = vector.shape_cast %160 : vector<16xf32> to vector<16x1xf32>
    %162 = tpu.reciprocal %161 {approx = true} : vector<16x1xf32> -> vector<16x1xf32>
    %163 = vector.broadcast %162 : vector<16x1xf32> to vector<16x16xf32>
    %164 = arith.mulf %159, %163 : vector<16x16xf32>
    %cst_118 = arith.constant dense<0.000000e+00> : vector<16x16xf32>
    %165 = tpu.matmul %164, %150, %cst_118 {dimension_numbers = #tpu.dot_dimension_numbers<[1], [0], [0], [1], [0, 0, 1, 1], [], []>} : vector<16x16xf32>, vector<16x16xf32>, vector<16x16xf32> -> vector<16x16xf32>
    %c3_119 = arith.constant 3 : index
    %c0_120 = arith.constant 0 : index
    %c0_121 = arith.constant 0 : index
    %166 = vector.load %arg9[%c3_119, %c0_120, %c0_121] : memref<8x16x64xf32, #tpu.memory_space<vmem>>, vector<1x16x64xf32>
    %167 = vector.shape_cast %166 : vector<1x16x64xf32> to vector<16x64xf32>
    %cst_122 = arith.constant dense<0.000000e+00> : vector<16x64xf32>
    %168 = tpu.matmul %165, %167, %cst_122 {dimension_numbers = #tpu.dot_dimension_numbers<[1], [0], [0], [1], [0, 0, 1, 1], [], []>} : vector<16x16xf32>, vector<16x64xf32>, vector<16x64xf32> -> vector<16x64xf32>
    %169 = arith.addf %129, %168 : vector<16x64xf32>
    %c0_123 = arith.constant 0 : index
    %c0_124 = arith.constant 0 : index
    %c0_125 = arith.constant 0 : index
    %170 = vector.load %arg10[%c0_123, %c0_124, %c0_125] : memref<2x1x64xf32, #tpu.memory_space<vmem>>, vector<1x1x64xf32>
    %171 = vector.shape_cast %170 : vector<1x1x64xf32> to vector<1x64xf32>
    %172 = vector.broadcast %171 : vector<1x64xf32> to vector<16x64xf32>
    %173 = arith.addf %169, %172 : vector<16x64xf32>
    %174 = arith.addf %7, %173 : vector<16x64xf32>
    %c0_126 = arith.constant 0 : index
    %c0_127 = arith.constant 0 : index
    %c0_128 = arith.constant 0 : index
    %175 = vector.load %arg11[%c0_126, %c0_127, %c0_128] : memref<2x1x64xf32, #tpu.memory_space<vmem>>, vector<1x1x64xf32>
    %176 = vector.shape_cast %175 : vector<1x1x64xf32> to vector<1x64xf32>
    %c0_129 = arith.constant 0 : index
    %c0_130 = arith.constant 0 : index
    %c0_131 = arith.constant 0 : index
    %177 = vector.load %arg12[%c0_129, %c0_130, %c0_131] : memref<2x1x64xf32, #tpu.memory_space<vmem>>, vector<1x1x64xf32>
    %178 = vector.shape_cast %177 : vector<1x1x64xf32> to vector<1x64xf32>
    %cst_132 = arith.constant dense<0.000000e+00> : vector<16xf32>
    %179 = vector.multi_reduction <add>, %174, %cst_132 [1] : vector<16x64xf32> to vector<16xf32>
    %180 = vector.shape_cast %179 : vector<16xf32> to vector<16x1xf32>
    %cst_133 = arith.constant 6.400000e+01 : f32
    %181 = vector.broadcast %cst_133 : f32 to vector<16x1xf32>
    %182 = arith.divf %180, %181 : vector<16x1xf32>
    %183 = vector.broadcast %182 : vector<16x1xf32> to vector<16x64xf32>
    %184 = arith.subf %174, %183 : vector<16x64xf32>
    %185 = arith.mulf %184, %184 : vector<16x64xf32>
    %cst_134 = arith.constant dense<0.000000e+00> : vector<16xf32>
    %186 = vector.multi_reduction <add>, %185, %cst_134 [1] : vector<16x64xf32> to vector<16xf32>
    %187 = vector.shape_cast %186 : vector<16xf32> to vector<16x1xf32>
    %cst_135 = arith.constant 6.400000e+01 : f32
    %188 = vector.broadcast %cst_135 : f32 to vector<16x1xf32>
    %189 = arith.divf %187, %188 : vector<16x1xf32>
    %190 = vector.broadcast %182 : vector<16x1xf32> to vector<16x64xf32>
    %191 = arith.subf %174, %190 : vector<16x64xf32>
    %cst_136 = arith.constant 9.99999974E-6 : f32
    %192 = vector.broadcast %cst_136 : f32 to vector<16x1xf32>
    %193 = arith.addf %189, %192 : vector<16x1xf32>
    %194 = math.rsqrt %193 : vector<16x1xf32>
    %195 = vector.broadcast %194 : vector<16x1xf32> to vector<16x64xf32>
    %196 = arith.mulf %191, %195 : vector<16x64xf32>
    %197 = vector.broadcast %176 : vector<1x64xf32> to vector<16x64xf32>
    %198 = arith.mulf %196, %197 : vector<16x64xf32>
    %199 = vector.broadcast %178 : vector<1x64xf32> to vector<16x64xf32>
    %200 = arith.addf %198, %199 : vector<16x64xf32>
    %c0_137 = arith.constant 0 : index
    %c0_138 = arith.constant 0 : index
    %c0_139 = arith.constant 0 : index
    %201 = vector.load %arg13[%c0_137, %c0_138, %c0_139] : memref<2x64x256xf32, #tpu.memory_space<vmem>>, vector<1x64x256xf32>
    %202 = vector.shape_cast %201 : vector<1x64x256xf32> to vector<64x256xf32>
    %cst_140 = arith.constant dense<0.000000e+00> : vector<16x256xf32>
    %203 = tpu.matmul %200, %202, %cst_140 {dimension_numbers = #tpu.dot_dimension_numbers<[1], [0], [0], [1], [0, 0, 1, 1], [], []>} : vector<16x64xf32>, vector<64x256xf32>, vector<16x256xf32> -> vector<16x256xf32>
    %c0_141 = arith.constant 0 : index
    %c0_142 = arith.constant 0 : index
    %c0_143 = arith.constant 0 : index
    %204 = vector.load %arg14[%c0_141, %c0_142, %c0_143] : memref<2x1x256xf32, #tpu.memory_space<vmem>>, vector<1x1x256xf32>
    %205 = vector.shape_cast %204 : vector<1x1x256xf32> to vector<1x256xf32>
    %206 = vector.broadcast %205 : vector<1x256xf32> to vector<16x256xf32>
    %207 = arith.addf %203, %206 : vector<16x256xf32>
    %cst_144 = arith.constant 0.000000e+00 : f32
    %208 = vector.broadcast %cst_144 : f32 to vector<16x256xf32>
    %209 = arith.maximumf %207, %208 : vector<16x256xf32>
    %c0_145 = arith.constant 0 : index
    %c0_146 = arith.constant 0 : index
    %c0_147 = arith.constant 0 : index
    %210 = vector.load %arg15[%c0_145, %c0_146, %c0_147] : memref<2x256x64xf32, #tpu.memory_space<vmem>>, vector<1x256x64xf32>
    %211 = vector.shape_cast %210 : vector<1x256x64xf32> to vector<256x64xf32>
    %cst_148 = arith.constant dense<0.000000e+00> : vector<16x64xf32>
    %212 = tpu.matmul %209, %211, %cst_148 {dimension_numbers = #tpu.dot_dimension_numbers<[1], [0], [0], [1], [0, 0, 1, 1], [], []>} : vector<16x256xf32>, vector<256x64xf32>, vector<16x64xf32> -> vector<16x64xf32>
    %c0_149 = arith.constant 0 : index
    %c0_150 = arith.constant 0 : index
    %c0_151 = arith.constant 0 : index
    %213 = vector.load %arg16[%c0_149, %c0_150, %c0_151] : memref<2x1x64xf32, #tpu.memory_space<vmem>>, vector<1x1x64xf32>
    %214 = vector.shape_cast %213 : vector<1x1x64xf32> to vector<1x64xf32>
    %215 = vector.broadcast %214 : vector<1x64xf32> to vector<16x64xf32>
    %216 = arith.addf %212, %215 : vector<16x64xf32>
    %217 = arith.addf %200, %216 : vector<16x64xf32>
    %c0_152 = arith.constant 0 : index
    %c0_153 = arith.constant 0 : index
    %c0_154 = arith.constant 0 : index
    %218 = vector.load %arg17[%c0_152, %c0_153, %c0_154] : memref<2x1x64xf32, #tpu.memory_space<vmem>>, vector<1x1x64xf32>
    %219 = vector.shape_cast %218 : vector<1x1x64xf32> to vector<1x64xf32>
    %c0_155 = arith.constant 0 : index
    %c0_156 = arith.constant 0 : index
    %c0_157 = arith.constant 0 : index
    %220 = vector.load %arg18[%c0_155, %c0_156, %c0_157] : memref<2x1x64xf32, #tpu.memory_space<vmem>>, vector<1x1x64xf32>
    %221 = vector.shape_cast %220 : vector<1x1x64xf32> to vector<1x64xf32>
    %cst_158 = arith.constant dense<0.000000e+00> : vector<16xf32>
    %222 = vector.multi_reduction <add>, %217, %cst_158 [1] : vector<16x64xf32> to vector<16xf32>
    %223 = vector.shape_cast %222 : vector<16xf32> to vector<16x1xf32>
    %cst_159 = arith.constant 6.400000e+01 : f32
    %224 = vector.broadcast %cst_159 : f32 to vector<16x1xf32>
    %225 = arith.divf %223, %224 : vector<16x1xf32>
    %226 = vector.broadcast %225 : vector<16x1xf32> to vector<16x64xf32>
    %227 = arith.subf %217, %226 : vector<16x64xf32>
    %228 = arith.mulf %227, %227 : vector<16x64xf32>
    %cst_160 = arith.constant dense<0.000000e+00> : vector<16xf32>
    %229 = vector.multi_reduction <add>, %228, %cst_160 [1] : vector<16x64xf32> to vector<16xf32>
    %230 = vector.shape_cast %229 : vector<16xf32> to vector<16x1xf32>
    %cst_161 = arith.constant 6.400000e+01 : f32
    %231 = vector.broadcast %cst_161 : f32 to vector<16x1xf32>
    %232 = arith.divf %230, %231 : vector<16x1xf32>
    %233 = vector.broadcast %225 : vector<16x1xf32> to vector<16x64xf32>
    %234 = arith.subf %217, %233 : vector<16x64xf32>
    %cst_162 = arith.constant 9.99999974E-6 : f32
    %235 = vector.broadcast %cst_162 : f32 to vector<16x1xf32>
    %236 = arith.addf %232, %235 : vector<16x1xf32>
    %237 = math.rsqrt %236 : vector<16x1xf32>
    %238 = vector.broadcast %237 : vector<16x1xf32> to vector<16x64xf32>
    %239 = arith.mulf %234, %238 : vector<16x64xf32>
    %240 = vector.broadcast %219 : vector<1x64xf32> to vector<16x64xf32>
    %241 = arith.mulf %239, %240 : vector<16x64xf32>
    %242 = vector.broadcast %221 : vector<1x64xf32> to vector<16x64xf32>
    %243 = arith.addf %241, %242 : vector<16x64xf32>
    %cst_163 = arith.constant 0.000000e+00 : f32
    %244 = vector.broadcast %cst_163 : f32 to vector<16x64xf32>
    %c4 = arith.constant 4 : index
    %c0_164 = arith.constant 0 : index
    %c0_165 = arith.constant 0 : index
    %245 = vector.load %arg3[%c4, %c0_164, %c0_165] : memref<8x64x16xf32, #tpu.memory_space<vmem>>, vector<1x64x16xf32>
    %246 = vector.shape_cast %245 : vector<1x64x16xf32> to vector<64x16xf32>
    %cst_166 = arith.constant dense<0.000000e+00> : vector<16x16xf32>
    %247 = tpu.matmul %243, %246, %cst_166 {dimension_numbers = #tpu.dot_dimension_numbers<[1], [0], [0], [1], [0, 0, 1, 1], [], []>} : vector<16x64xf32>, vector<64x16xf32>, vector<16x16xf32> -> vector<16x16xf32>
    %c4_167 = arith.constant 4 : index
    %c0_168 = arith.constant 0 : index
    %c0_169 = arith.constant 0 : index
    %248 = vector.load %arg6[%c4_167, %c0_168, %c0_169] : memref<8x1x16xf32, #tpu.memory_space<vmem>>, vector<1x1x16xf32>
    %249 = vector.shape_cast %248 : vector<1x1x16xf32> to vector<1x16xf32>
    %250 = vector.broadcast %249 : vector<1x16xf32> to vector<16x16xf32>
    %251 = arith.addf %247, %250 : vector<16x16xf32>
    %c4_170 = arith.constant 4 : index
    %c0_171 = arith.constant 0 : index
    %c0_172 = arith.constant 0 : index
    %252 = vector.load %arg4[%c4_170, %c0_171, %c0_172] : memref<8x64x16xf32, #tpu.memory_space<vmem>>, vector<1x64x16xf32>
    %253 = vector.shape_cast %252 : vector<1x64x16xf32> to vector<64x16xf32>
    %cst_173 = arith.constant dense<0.000000e+00> : vector<16x16xf32>
    %254 = tpu.matmul %243, %253, %cst_173 {dimension_numbers = #tpu.dot_dimension_numbers<[1], [0], [0], [1], [0, 0, 1, 1], [], []>} : vector<16x64xf32>, vector<64x16xf32>, vector<16x16xf32> -> vector<16x16xf32>
    %c4_174 = arith.constant 4 : index
    %c0_175 = arith.constant 0 : index
    %c0_176 = arith.constant 0 : index
    %255 = vector.load %arg7[%c4_174, %c0_175, %c0_176] : memref<8x1x16xf32, #tpu.memory_space<vmem>>, vector<1x1x16xf32>
    %256 = vector.shape_cast %255 : vector<1x1x16xf32> to vector<1x16xf32>
    %257 = vector.broadcast %256 : vector<1x16xf32> to vector<16x16xf32>
    %258 = arith.addf %254, %257 : vector<16x16xf32>
    %c4_177 = arith.constant 4 : index
    %c0_178 = arith.constant 0 : index
    %c0_179 = arith.constant 0 : index
    %259 = vector.load %arg5[%c4_177, %c0_178, %c0_179] : memref<8x64x16xf32, #tpu.memory_space<vmem>>, vector<1x64x16xf32>
    %260 = vector.shape_cast %259 : vector<1x64x16xf32> to vector<64x16xf32>
    %cst_180 = arith.constant dense<0.000000e+00> : vector<16x16xf32>
    %261 = tpu.matmul %243, %260, %cst_180 {dimension_numbers = #tpu.dot_dimension_numbers<[1], [0], [0], [1], [0, 0, 1, 1], [], []>} : vector<16x64xf32>, vector<64x16xf32>, vector<16x16xf32> -> vector<16x16xf32>
    %c4_181 = arith.constant 4 : index
    %c0_182 = arith.constant 0 : index
    %c0_183 = arith.constant 0 : index
    %262 = vector.load %arg8[%c4_181, %c0_182, %c0_183] : memref<8x1x16xf32, #tpu.memory_space<vmem>>, vector<1x1x16xf32>
    %263 = vector.shape_cast %262 : vector<1x1x16xf32> to vector<1x16xf32>
    %264 = vector.broadcast %263 : vector<1x16xf32> to vector<16x16xf32>
    %265 = arith.addf %261, %264 : vector<16x16xf32>
    %cst_184 = arith.constant 2.500000e-01 : f32
    %266 = vector.broadcast %cst_184 : f32 to vector<16x16xf32>
    %267 = arith.mulf %251, %266 : vector<16x16xf32>
    %cst_185 = arith.constant dense<0.000000e+00> : vector<16x16xf32>
    %268 = tpu.matmul %267, %258, %cst_185 {dimension_numbers = #tpu.dot_dimension_numbers<[1], [1], [0], [0], [0, 0, 1, 0], [], []>} : vector<16x16xf32>, vector<16x16xf32>, vector<16x16xf32> -> vector<16x16xf32>
    %269 = arith.addf %268, %8 : vector<16x16xf32>
    %cst_186 = arith.constant dense<0xFF800000> : vector<16xf32>
    %270 = vector.multi_reduction <maximumf>, %269, %cst_186 [1] : vector<16x16xf32> to vector<16xf32>
    %271 = vector.shape_cast %270 : vector<16xf32> to vector<16x1xf32>
    %272 = vector.broadcast %271 : vector<16x1xf32> to vector<16x16xf32>
    %273 = arith.subf %269, %272 : vector<16x16xf32>
    %274 = math.exp %273 : vector<16x16xf32>
    %cst_187 = arith.constant dense<0.000000e+00> : vector<16xf32>
    %275 = vector.multi_reduction <add>, %274, %cst_187 [1] : vector<16x16xf32> to vector<16xf32>
    %276 = vector.shape_cast %275 : vector<16xf32> to vector<16x1xf32>
    %277 = tpu.reciprocal %276 {approx = true} : vector<16x1xf32> -> vector<16x1xf32>
    %278 = vector.broadcast %277 : vector<16x1xf32> to vector<16x16xf32>
    %279 = arith.mulf %274, %278 : vector<16x16xf32>
    %cst_188 = arith.constant dense<0.000000e+00> : vector<16x16xf32>
    %280 = tpu.matmul %279, %265, %cst_188 {dimension_numbers = #tpu.dot_dimension_numbers<[1], [0], [0], [1], [0, 0, 1, 1], [], []>} : vector<16x16xf32>, vector<16x16xf32>, vector<16x16xf32> -> vector<16x16xf32>
    %c4_189 = arith.constant 4 : index
    %c0_190 = arith.constant 0 : index
    %c0_191 = arith.constant 0 : index
    %281 = vector.load %arg9[%c4_189, %c0_190, %c0_191] : memref<8x16x64xf32, #tpu.memory_space<vmem>>, vector<1x16x64xf32>
    %282 = vector.shape_cast %281 : vector<1x16x64xf32> to vector<16x64xf32>
    %cst_192 = arith.constant dense<0.000000e+00> : vector<16x64xf32>
    %283 = tpu.matmul %280, %282, %cst_192 {dimension_numbers = #tpu.dot_dimension_numbers<[1], [0], [0], [1], [0, 0, 1, 1], [], []>} : vector<16x16xf32>, vector<16x64xf32>, vector<16x64xf32> -> vector<16x64xf32>
    %284 = arith.addf %244, %283 : vector<16x64xf32>
    %c5 = arith.constant 5 : index
    %c0_193 = arith.constant 0 : index
    %c0_194 = arith.constant 0 : index
    %285 = vector.load %arg3[%c5, %c0_193, %c0_194] : memref<8x64x16xf32, #tpu.memory_space<vmem>>, vector<1x64x16xf32>
    %286 = vector.shape_cast %285 : vector<1x64x16xf32> to vector<64x16xf32>
    %cst_195 = arith.constant dense<0.000000e+00> : vector<16x16xf32>
    %287 = tpu.matmul %243, %286, %cst_195 {dimension_numbers = #tpu.dot_dimension_numbers<[1], [0], [0], [1], [0, 0, 1, 1], [], []>} : vector<16x64xf32>, vector<64x16xf32>, vector<16x16xf32> -> vector<16x16xf32>
    %c5_196 = arith.constant 5 : index
    %c0_197 = arith.constant 0 : index
    %c0_198 = arith.constant 0 : index
    %288 = vector.load %arg6[%c5_196, %c0_197, %c0_198] : memref<8x1x16xf32, #tpu.memory_space<vmem>>, vector<1x1x16xf32>
    %289 = vector.shape_cast %288 : vector<1x1x16xf32> to vector<1x16xf32>
    %290 = vector.broadcast %289 : vector<1x16xf32> to vector<16x16xf32>
    %291 = arith.addf %287, %290 : vector<16x16xf32>
    %c5_199 = arith.constant 5 : index
    %c0_200 = arith.constant 0 : index
    %c0_201 = arith.constant 0 : index
    %292 = vector.load %arg4[%c5_199, %c0_200, %c0_201] : memref<8x64x16xf32, #tpu.memory_space<vmem>>, vector<1x64x16xf32>
    %293 = vector.shape_cast %292 : vector<1x64x16xf32> to vector<64x16xf32>
    %cst_202 = arith.constant dense<0.000000e+00> : vector<16x16xf32>
    %294 = tpu.matmul %243, %293, %cst_202 {dimension_numbers = #tpu.dot_dimension_numbers<[1], [0], [0], [1], [0, 0, 1, 1], [], []>} : vector<16x64xf32>, vector<64x16xf32>, vector<16x16xf32> -> vector<16x16xf32>
    %c5_203 = arith.constant 5 : index
    %c0_204 = arith.constant 0 : index
    %c0_205 = arith.constant 0 : index
    %295 = vector.load %arg7[%c5_203, %c0_204, %c0_205] : memref<8x1x16xf32, #tpu.memory_space<vmem>>, vector<1x1x16xf32>
    %296 = vector.shape_cast %295 : vector<1x1x16xf32> to vector<1x16xf32>
    %297 = vector.broadcast %296 : vector<1x16xf32> to vector<16x16xf32>
    %298 = arith.addf %294, %297 : vector<16x16xf32>
    %c5_206 = arith.constant 5 : index
    %c0_207 = arith.constant 0 : index
    %c0_208 = arith.constant 0 : index
    %299 = vector.load %arg5[%c5_206, %c0_207, %c0_208] : memref<8x64x16xf32, #tpu.memory_space<vmem>>, vector<1x64x16xf32>
    %300 = vector.shape_cast %299 : vector<1x64x16xf32> to vector<64x16xf32>
    %cst_209 = arith.constant dense<0.000000e+00> : vector<16x16xf32>
    %301 = tpu.matmul %243, %300, %cst_209 {dimension_numbers = #tpu.dot_dimension_numbers<[1], [0], [0], [1], [0, 0, 1, 1], [], []>} : vector<16x64xf32>, vector<64x16xf32>, vector<16x16xf32> -> vector<16x16xf32>
    %c5_210 = arith.constant 5 : index
    %c0_211 = arith.constant 0 : index
    %c0_212 = arith.constant 0 : index
    %302 = vector.load %arg8[%c5_210, %c0_211, %c0_212] : memref<8x1x16xf32, #tpu.memory_space<vmem>>, vector<1x1x16xf32>
    %303 = vector.shape_cast %302 : vector<1x1x16xf32> to vector<1x16xf32>
    %304 = vector.broadcast %303 : vector<1x16xf32> to vector<16x16xf32>
    %305 = arith.addf %301, %304 : vector<16x16xf32>
    %cst_213 = arith.constant 2.500000e-01 : f32
    %306 = vector.broadcast %cst_213 : f32 to vector<16x16xf32>
    %307 = arith.mulf %291, %306 : vector<16x16xf32>
    %cst_214 = arith.constant dense<0.000000e+00> : vector<16x16xf32>
    %308 = tpu.matmul %307, %298, %cst_214 {dimension_numbers = #tpu.dot_dimension_numbers<[1], [1], [0], [0], [0, 0, 1, 0], [], []>} : vector<16x16xf32>, vector<16x16xf32>, vector<16x16xf32> -> vector<16x16xf32>
    %309 = arith.addf %308, %8 : vector<16x16xf32>
    %cst_215 = arith.constant dense<0xFF800000> : vector<16xf32>
    %310 = vector.multi_reduction <maximumf>, %309, %cst_215 [1] : vector<16x16xf32> to vector<16xf32>
    %311 = vector.shape_cast %310 : vector<16xf32> to vector<16x1xf32>
    %312 = vector.broadcast %311 : vector<16x1xf32> to vector<16x16xf32>
    %313 = arith.subf %309, %312 : vector<16x16xf32>
    %314 = math.exp %313 : vector<16x16xf32>
    %cst_216 = arith.constant dense<0.000000e+00> : vector<16xf32>
    %315 = vector.multi_reduction <add>, %314, %cst_216 [1] : vector<16x16xf32> to vector<16xf32>
    %316 = vector.shape_cast %315 : vector<16xf32> to vector<16x1xf32>
    %317 = tpu.reciprocal %316 {approx = true} : vector<16x1xf32> -> vector<16x1xf32>
    %318 = vector.broadcast %317 : vector<16x1xf32> to vector<16x16xf32>
    %319 = arith.mulf %314, %318 : vector<16x16xf32>
    %cst_217 = arith.constant dense<0.000000e+00> : vector<16x16xf32>
    %320 = tpu.matmul %319, %305, %cst_217 {dimension_numbers = #tpu.dot_dimension_numbers<[1], [0], [0], [1], [0, 0, 1, 1], [], []>} : vector<16x16xf32>, vector<16x16xf32>, vector<16x16xf32> -> vector<16x16xf32>
    %c5_218 = arith.constant 5 : index
    %c0_219 = arith.constant 0 : index
    %c0_220 = arith.constant 0 : index
    %321 = vector.load %arg9[%c5_218, %c0_219, %c0_220] : memref<8x16x64xf32, #tpu.memory_space<vmem>>, vector<1x16x64xf32>
    %322 = vector.shape_cast %321 : vector<1x16x64xf32> to vector<16x64xf32>
    %cst_221 = arith.constant dense<0.000000e+00> : vector<16x64xf32>
    %323 = tpu.matmul %320, %322, %cst_221 {dimension_numbers = #tpu.dot_dimension_numbers<[1], [0], [0], [1], [0, 0, 1, 1], [], []>} : vector<16x16xf32>, vector<16x64xf32>, vector<16x64xf32> -> vector<16x64xf32>
    %324 = arith.addf %284, %323 : vector<16x64xf32>
    %c6 = arith.constant 6 : index
    %c0_222 = arith.constant 0 : index
    %c0_223 = arith.constant 0 : index
    %325 = vector.load %arg3[%c6, %c0_222, %c0_223] : memref<8x64x16xf32, #tpu.memory_space<vmem>>, vector<1x64x16xf32>
    %326 = vector.shape_cast %325 : vector<1x64x16xf32> to vector<64x16xf32>
    %cst_224 = arith.constant dense<0.000000e+00> : vector<16x16xf32>
    %327 = tpu.matmul %243, %326, %cst_224 {dimension_numbers = #tpu.dot_dimension_numbers<[1], [0], [0], [1], [0, 0, 1, 1], [], []>} : vector<16x64xf32>, vector<64x16xf32>, vector<16x16xf32> -> vector<16x16xf32>
    %c6_225 = arith.constant 6 : index
    %c0_226 = arith.constant 0 : index
    %c0_227 = arith.constant 0 : index
    %328 = vector.load %arg6[%c6_225, %c0_226, %c0_227] : memref<8x1x16xf32, #tpu.memory_space<vmem>>, vector<1x1x16xf32>
    %329 = vector.shape_cast %328 : vector<1x1x16xf32> to vector<1x16xf32>
    %330 = vector.broadcast %329 : vector<1x16xf32> to vector<16x16xf32>
    %331 = arith.addf %327, %330 : vector<16x16xf32>
    %c6_228 = arith.constant 6 : index
    %c0_229 = arith.constant 0 : index
    %c0_230 = arith.constant 0 : index
    %332 = vector.load %arg4[%c6_228, %c0_229, %c0_230] : memref<8x64x16xf32, #tpu.memory_space<vmem>>, vector<1x64x16xf32>
    %333 = vector.shape_cast %332 : vector<1x64x16xf32> to vector<64x16xf32>
    %cst_231 = arith.constant dense<0.000000e+00> : vector<16x16xf32>
    %334 = tpu.matmul %243, %333, %cst_231 {dimension_numbers = #tpu.dot_dimension_numbers<[1], [0], [0], [1], [0, 0, 1, 1], [], []>} : vector<16x64xf32>, vector<64x16xf32>, vector<16x16xf32> -> vector<16x16xf32>
    %c6_232 = arith.constant 6 : index
    %c0_233 = arith.constant 0 : index
    %c0_234 = arith.constant 0 : index
    %335 = vector.load %arg7[%c6_232, %c0_233, %c0_234] : memref<8x1x16xf32, #tpu.memory_space<vmem>>, vector<1x1x16xf32>
    %336 = vector.shape_cast %335 : vector<1x1x16xf32> to vector<1x16xf32>
    %337 = vector.broadcast %336 : vector<1x16xf32> to vector<16x16xf32>
    %338 = arith.addf %334, %337 : vector<16x16xf32>
    %c6_235 = arith.constant 6 : index
    %c0_236 = arith.constant 0 : index
    %c0_237 = arith.constant 0 : index
    %339 = vector.load %arg5[%c6_235, %c0_236, %c0_237] : memref<8x64x16xf32, #tpu.memory_space<vmem>>, vector<1x64x16xf32>
    %340 = vector.shape_cast %339 : vector<1x64x16xf32> to vector<64x16xf32>
    %cst_238 = arith.constant dense<0.000000e+00> : vector<16x16xf32>
    %341 = tpu.matmul %243, %340, %cst_238 {dimension_numbers = #tpu.dot_dimension_numbers<[1], [0], [0], [1], [0, 0, 1, 1], [], []>} : vector<16x64xf32>, vector<64x16xf32>, vector<16x16xf32> -> vector<16x16xf32>
    %c6_239 = arith.constant 6 : index
    %c0_240 = arith.constant 0 : index
    %c0_241 = arith.constant 0 : index
    %342 = vector.load %arg8[%c6_239, %c0_240, %c0_241] : memref<8x1x16xf32, #tpu.memory_space<vmem>>, vector<1x1x16xf32>
    %343 = vector.shape_cast %342 : vector<1x1x16xf32> to vector<1x16xf32>
    %344 = vector.broadcast %343 : vector<1x16xf32> to vector<16x16xf32>
    %345 = arith.addf %341, %344 : vector<16x16xf32>
    %cst_242 = arith.constant 2.500000e-01 : f32
    %346 = vector.broadcast %cst_242 : f32 to vector<16x16xf32>
    %347 = arith.mulf %331, %346 : vector<16x16xf32>
    %cst_243 = arith.constant dense<0.000000e+00> : vector<16x16xf32>
    %348 = tpu.matmul %347, %338, %cst_243 {dimension_numbers = #tpu.dot_dimension_numbers<[1], [1], [0], [0], [0, 0, 1, 0], [], []>} : vector<16x16xf32>, vector<16x16xf32>, vector<16x16xf32> -> vector<16x16xf32>
    %349 = arith.addf %348, %8 : vector<16x16xf32>
    %cst_244 = arith.constant dense<0xFF800000> : vector<16xf32>
    %350 = vector.multi_reduction <maximumf>, %349, %cst_244 [1] : vector<16x16xf32> to vector<16xf32>
    %351 = vector.shape_cast %350 : vector<16xf32> to vector<16x1xf32>
    %352 = vector.broadcast %351 : vector<16x1xf32> to vector<16x16xf32>
    %353 = arith.subf %349, %352 : vector<16x16xf32>
    %354 = math.exp %353 : vector<16x16xf32>
    %cst_245 = arith.constant dense<0.000000e+00> : vector<16xf32>
    %355 = vector.multi_reduction <add>, %354, %cst_245 [1] : vector<16x16xf32> to vector<16xf32>
    %356 = vector.shape_cast %355 : vector<16xf32> to vector<16x1xf32>
    %357 = tpu.reciprocal %356 {approx = true} : vector<16x1xf32> -> vector<16x1xf32>
    %358 = vector.broadcast %357 : vector<16x1xf32> to vector<16x16xf32>
    %359 = arith.mulf %354, %358 : vector<16x16xf32>
    %cst_246 = arith.constant dense<0.000000e+00> : vector<16x16xf32>
    %360 = tpu.matmul %359, %345, %cst_246 {dimension_numbers = #tpu.dot_dimension_numbers<[1], [0], [0], [1], [0, 0, 1, 1], [], []>} : vector<16x16xf32>, vector<16x16xf32>, vector<16x16xf32> -> vector<16x16xf32>
    %c6_247 = arith.constant 6 : index
    %c0_248 = arith.constant 0 : index
    %c0_249 = arith.constant 0 : index
    %361 = vector.load %arg9[%c6_247, %c0_248, %c0_249] : memref<8x16x64xf32, #tpu.memory_space<vmem>>, vector<1x16x64xf32>
    %362 = vector.shape_cast %361 : vector<1x16x64xf32> to vector<16x64xf32>
    %cst_250 = arith.constant dense<0.000000e+00> : vector<16x64xf32>
    %363 = tpu.matmul %360, %362, %cst_250 {dimension_numbers = #tpu.dot_dimension_numbers<[1], [0], [0], [1], [0, 0, 1, 1], [], []>} : vector<16x16xf32>, vector<16x64xf32>, vector<16x64xf32> -> vector<16x64xf32>
    %364 = arith.addf %324, %363 : vector<16x64xf32>
    %c7 = arith.constant 7 : index
    %c0_251 = arith.constant 0 : index
    %c0_252 = arith.constant 0 : index
    %365 = vector.load %arg3[%c7, %c0_251, %c0_252] : memref<8x64x16xf32, #tpu.memory_space<vmem>>, vector<1x64x16xf32>
    %366 = vector.shape_cast %365 : vector<1x64x16xf32> to vector<64x16xf32>
    %cst_253 = arith.constant dense<0.000000e+00> : vector<16x16xf32>
    %367 = tpu.matmul %243, %366, %cst_253 {dimension_numbers = #tpu.dot_dimension_numbers<[1], [0], [0], [1], [0, 0, 1, 1], [], []>} : vector<16x64xf32>, vector<64x16xf32>, vector<16x16xf32> -> vector<16x16xf32>
    %c7_254 = arith.constant 7 : index
    %c0_255 = arith.constant 0 : index
    %c0_256 = arith.constant 0 : index
    %368 = vector.load %arg6[%c7_254, %c0_255, %c0_256] : memref<8x1x16xf32, #tpu.memory_space<vmem>>, vector<1x1x16xf32>
    %369 = vector.shape_cast %368 : vector<1x1x16xf32> to vector<1x16xf32>
    %370 = vector.broadcast %369 : vector<1x16xf32> to vector<16x16xf32>
    %371 = arith.addf %367, %370 : vector<16x16xf32>
    %c7_257 = arith.constant 7 : index
    %c0_258 = arith.constant 0 : index
    %c0_259 = arith.constant 0 : index
    %372 = vector.load %arg4[%c7_257, %c0_258, %c0_259] : memref<8x64x16xf32, #tpu.memory_space<vmem>>, vector<1x64x16xf32>
    %373 = vector.shape_cast %372 : vector<1x64x16xf32> to vector<64x16xf32>
    %cst_260 = arith.constant dense<0.000000e+00> : vector<16x16xf32>
    %374 = tpu.matmul %243, %373, %cst_260 {dimension_numbers = #tpu.dot_dimension_numbers<[1], [0], [0], [1], [0, 0, 1, 1], [], []>} : vector<16x64xf32>, vector<64x16xf32>, vector<16x16xf32> -> vector<16x16xf32>
    %c7_261 = arith.constant 7 : index
    %c0_262 = arith.constant 0 : index
    %c0_263 = arith.constant 0 : index
    %375 = vector.load %arg7[%c7_261, %c0_262, %c0_263] : memref<8x1x16xf32, #tpu.memory_space<vmem>>, vector<1x1x16xf32>
    %376 = vector.shape_cast %375 : vector<1x1x16xf32> to vector<1x16xf32>
    %377 = vector.broadcast %376 : vector<1x16xf32> to vector<16x16xf32>
    %378 = arith.addf %374, %377 : vector<16x16xf32>
    %c7_264 = arith.constant 7 : index
    %c0_265 = arith.constant 0 : index
    %c0_266 = arith.constant 0 : index
    %379 = vector.load %arg5[%c7_264, %c0_265, %c0_266] : memref<8x64x16xf32, #tpu.memory_space<vmem>>, vector<1x64x16xf32>
    %380 = vector.shape_cast %379 : vector<1x64x16xf32> to vector<64x16xf32>
    %cst_267 = arith.constant dense<0.000000e+00> : vector<16x16xf32>
    %381 = tpu.matmul %243, %380, %cst_267 {dimension_numbers = #tpu.dot_dimension_numbers<[1], [0], [0], [1], [0, 0, 1, 1], [], []>} : vector<16x64xf32>, vector<64x16xf32>, vector<16x16xf32> -> vector<16x16xf32>
    %c7_268 = arith.constant 7 : index
    %c0_269 = arith.constant 0 : index
    %c0_270 = arith.constant 0 : index
    %382 = vector.load %arg8[%c7_268, %c0_269, %c0_270] : memref<8x1x16xf32, #tpu.memory_space<vmem>>, vector<1x1x16xf32>
    %383 = vector.shape_cast %382 : vector<1x1x16xf32> to vector<1x16xf32>
    %384 = vector.broadcast %383 : vector<1x16xf32> to vector<16x16xf32>
    %385 = arith.addf %381, %384 : vector<16x16xf32>
    %cst_271 = arith.constant 2.500000e-01 : f32
    %386 = vector.broadcast %cst_271 : f32 to vector<16x16xf32>
    %387 = arith.mulf %371, %386 : vector<16x16xf32>
    %cst_272 = arith.constant dense<0.000000e+00> : vector<16x16xf32>
    %388 = tpu.matmul %387, %378, %cst_272 {dimension_numbers = #tpu.dot_dimension_numbers<[1], [1], [0], [0], [0, 0, 1, 0], [], []>} : vector<16x16xf32>, vector<16x16xf32>, vector<16x16xf32> -> vector<16x16xf32>
    %389 = arith.addf %388, %8 : vector<16x16xf32>
    %cst_273 = arith.constant dense<0xFF800000> : vector<16xf32>
    %390 = vector.multi_reduction <maximumf>, %389, %cst_273 [1] : vector<16x16xf32> to vector<16xf32>
    %391 = vector.shape_cast %390 : vector<16xf32> to vector<16x1xf32>
    %392 = vector.broadcast %391 : vector<16x1xf32> to vector<16x16xf32>
    %393 = arith.subf %389, %392 : vector<16x16xf32>
    %394 = math.exp %393 : vector<16x16xf32>
    %cst_274 = arith.constant dense<0.000000e+00> : vector<16xf32>
    %395 = vector.multi_reduction <add>, %394, %cst_274 [1] : vector<16x16xf32> to vector<16xf32>
    %396 = vector.shape_cast %395 : vector<16xf32> to vector<16x1xf32>
    %397 = tpu.reciprocal %396 {approx = true} : vector<16x1xf32> -> vector<16x1xf32>
    %398 = vector.broadcast %397 : vector<16x1xf32> to vector<16x16xf32>
    %399 = arith.mulf %394, %398 : vector<16x16xf32>
    %cst_275 = arith.constant dense<0.000000e+00> : vector<16x16xf32>
    %400 = tpu.matmul %399, %385, %cst_275 {dimension_numbers = #tpu.dot_dimension_numbers<[1], [0], [0], [1], [0, 0, 1, 1], [], []>} : vector<16x16xf32>, vector<16x16xf32>, vector<16x16xf32> -> vector<16x16xf32>
    %c7_276 = arith.constant 7 : index
    %c0_277 = arith.constant 0 : index
    %c0_278 = arith.constant 0 : index
    %401 = vector.load %arg9[%c7_276, %c0_277, %c0_278] : memref<8x16x64xf32, #tpu.memory_space<vmem>>, vector<1x16x64xf32>
    %402 = vector.shape_cast %401 : vector<1x16x64xf32> to vector<16x64xf32>
    %cst_279 = arith.constant dense<0.000000e+00> : vector<16x64xf32>
    %403 = tpu.matmul %400, %402, %cst_279 {dimension_numbers = #tpu.dot_dimension_numbers<[1], [0], [0], [1], [0, 0, 1, 1], [], []>} : vector<16x16xf32>, vector<16x64xf32>, vector<16x64xf32> -> vector<16x64xf32>
    %404 = arith.addf %364, %403 : vector<16x64xf32>
    %c1_280 = arith.constant 1 : index
    %c0_281 = arith.constant 0 : index
    %c0_282 = arith.constant 0 : index
    %405 = vector.load %arg10[%c1_280, %c0_281, %c0_282] : memref<2x1x64xf32, #tpu.memory_space<vmem>>, vector<1x1x64xf32>
    %406 = vector.shape_cast %405 : vector<1x1x64xf32> to vector<1x64xf32>
    %407 = vector.broadcast %406 : vector<1x64xf32> to vector<16x64xf32>
    %408 = arith.addf %404, %407 : vector<16x64xf32>
    %409 = arith.addf %243, %408 : vector<16x64xf32>
    %c1_283 = arith.constant 1 : index
    %c0_284 = arith.constant 0 : index
    %c0_285 = arith.constant 0 : index
    %410 = vector.load %arg11[%c1_283, %c0_284, %c0_285] : memref<2x1x64xf32, #tpu.memory_space<vmem>>, vector<1x1x64xf32>
    %411 = vector.shape_cast %410 : vector<1x1x64xf32> to vector<1x64xf32>
    %c1_286 = arith.constant 1 : index
    %c0_287 = arith.constant 0 : index
    %c0_288 = arith.constant 0 : index
    %412 = vector.load %arg12[%c1_286, %c0_287, %c0_288] : memref<2x1x64xf32, #tpu.memory_space<vmem>>, vector<1x1x64xf32>
    %413 = vector.shape_cast %412 : vector<1x1x64xf32> to vector<1x64xf32>
    %cst_289 = arith.constant dense<0.000000e+00> : vector<16xf32>
    %414 = vector.multi_reduction <add>, %409, %cst_289 [1] : vector<16x64xf32> to vector<16xf32>
    %415 = vector.shape_cast %414 : vector<16xf32> to vector<16x1xf32>
    %cst_290 = arith.constant 6.400000e+01 : f32
    %416 = vector.broadcast %cst_290 : f32 to vector<16x1xf32>
    %417 = arith.divf %415, %416 : vector<16x1xf32>
    %418 = vector.broadcast %417 : vector<16x1xf32> to vector<16x64xf32>
    %419 = arith.subf %409, %418 : vector<16x64xf32>
    %420 = arith.mulf %419, %419 : vector<16x64xf32>
    %cst_291 = arith.constant dense<0.000000e+00> : vector<16xf32>
    %421 = vector.multi_reduction <add>, %420, %cst_291 [1] : vector<16x64xf32> to vector<16xf32>
    %422 = vector.shape_cast %421 : vector<16xf32> to vector<16x1xf32>
    %cst_292 = arith.constant 6.400000e+01 : f32
    %423 = vector.broadcast %cst_292 : f32 to vector<16x1xf32>
    %424 = arith.divf %422, %423 : vector<16x1xf32>
    %425 = vector.broadcast %417 : vector<16x1xf32> to vector<16x64xf32>
    %426 = arith.subf %409, %425 : vector<16x64xf32>
    %cst_293 = arith.constant 9.99999974E-6 : f32
    %427 = vector.broadcast %cst_293 : f32 to vector<16x1xf32>
    %428 = arith.addf %424, %427 : vector<16x1xf32>
    %429 = math.rsqrt %428 : vector<16x1xf32>
    %430 = vector.broadcast %429 : vector<16x1xf32> to vector<16x64xf32>
    %431 = arith.mulf %426, %430 : vector<16x64xf32>
    %432 = vector.broadcast %411 : vector<1x64xf32> to vector<16x64xf32>
    %433 = arith.mulf %431, %432 : vector<16x64xf32>
    %434 = vector.broadcast %413 : vector<1x64xf32> to vector<16x64xf32>
    %435 = arith.addf %433, %434 : vector<16x64xf32>
    %c1_294 = arith.constant 1 : index
    %c0_295 = arith.constant 0 : index
    %c0_296 = arith.constant 0 : index
    %436 = vector.load %arg13[%c1_294, %c0_295, %c0_296] : memref<2x64x256xf32, #tpu.memory_space<vmem>>, vector<1x64x256xf32>
    %437 = vector.shape_cast %436 : vector<1x64x256xf32> to vector<64x256xf32>
    %cst_297 = arith.constant dense<0.000000e+00> : vector<16x256xf32>
    %438 = tpu.matmul %435, %437, %cst_297 {dimension_numbers = #tpu.dot_dimension_numbers<[1], [0], [0], [1], [0, 0, 1, 1], [], []>} : vector<16x64xf32>, vector<64x256xf32>, vector<16x256xf32> -> vector<16x256xf32>
    %c1_298 = arith.constant 1 : index
    %c0_299 = arith.constant 0 : index
    %c0_300 = arith.constant 0 : index
    %439 = vector.load %arg14[%c1_298, %c0_299, %c0_300] : memref<2x1x256xf32, #tpu.memory_space<vmem>>, vector<1x1x256xf32>
    %440 = vector.shape_cast %439 : vector<1x1x256xf32> to vector<1x256xf32>
    %441 = vector.broadcast %440 : vector<1x256xf32> to vector<16x256xf32>
    %442 = arith.addf %438, %441 : vector<16x256xf32>
    %cst_301 = arith.constant 0.000000e+00 : f32
    %443 = vector.broadcast %cst_301 : f32 to vector<16x256xf32>
    %444 = arith.maximumf %442, %443 : vector<16x256xf32>
    %c1_302 = arith.constant 1 : index
    %c0_303 = arith.constant 0 : index
    %c0_304 = arith.constant 0 : index
    %445 = vector.load %arg15[%c1_302, %c0_303, %c0_304] : memref<2x256x64xf32, #tpu.memory_space<vmem>>, vector<1x256x64xf32>
    %446 = vector.shape_cast %445 : vector<1x256x64xf32> to vector<256x64xf32>
    %cst_305 = arith.constant dense<0.000000e+00> : vector<16x64xf32>
    %447 = tpu.matmul %444, %446, %cst_305 {dimension_numbers = #tpu.dot_dimension_numbers<[1], [0], [0], [1], [0, 0, 1, 1], [], []>} : vector<16x256xf32>, vector<256x64xf32>, vector<16x64xf32> -> vector<16x64xf32>
    %c1_306 = arith.constant 1 : index
    %c0_307 = arith.constant 0 : index
    %c0_308 = arith.constant 0 : index
    %448 = vector.load %arg16[%c1_306, %c0_307, %c0_308] : memref<2x1x64xf32, #tpu.memory_space<vmem>>, vector<1x1x64xf32>
    %449 = vector.shape_cast %448 : vector<1x1x64xf32> to vector<1x64xf32>
    %450 = vector.broadcast %449 : vector<1x64xf32> to vector<16x64xf32>
    %451 = arith.addf %447, %450 : vector<16x64xf32>
    %452 = arith.addf %435, %451 : vector<16x64xf32>
    %c1_309 = arith.constant 1 : index
    %c0_310 = arith.constant 0 : index
    %c0_311 = arith.constant 0 : index
    %453 = vector.load %arg17[%c1_309, %c0_310, %c0_311] : memref<2x1x64xf32, #tpu.memory_space<vmem>>, vector<1x1x64xf32>
    %454 = vector.shape_cast %453 : vector<1x1x64xf32> to vector<1x64xf32>
    %c1_312 = arith.constant 1 : index
    %c0_313 = arith.constant 0 : index
    %c0_314 = arith.constant 0 : index
    %455 = vector.load %arg18[%c1_312, %c0_313, %c0_314] : memref<2x1x64xf32, #tpu.memory_space<vmem>>, vector<1x1x64xf32>
    %456 = vector.shape_cast %455 : vector<1x1x64xf32> to vector<1x64xf32>
    %cst_315 = arith.constant dense<0.000000e+00> : vector<16xf32>
    %457 = vector.multi_reduction <add>, %452, %cst_315 [1] : vector<16x64xf32> to vector<16xf32>
    %458 = vector.shape_cast %457 : vector<16xf32> to vector<16x1xf32>
    %cst_316 = arith.constant 6.400000e+01 : f32
    %459 = vector.broadcast %cst_316 : f32 to vector<16x1xf32>
    %460 = arith.divf %458, %459 : vector<16x1xf32>
    %461 = vector.broadcast %460 : vector<16x1xf32> to vector<16x64xf32>
    %462 = arith.subf %452, %461 : vector<16x64xf32>
    %463 = arith.mulf %462, %462 : vector<16x64xf32>
    %cst_317 = arith.constant dense<0.000000e+00> : vector<16xf32>
    %464 = vector.multi_reduction <add>, %463, %cst_317 [1] : vector<16x64xf32> to vector<16xf32>
    %465 = vector.shape_cast %464 : vector<16xf32> to vector<16x1xf32>
    %cst_318 = arith.constant 6.400000e+01 : f32
    %466 = vector.broadcast %cst_318 : f32 to vector<16x1xf32>
    %467 = arith.divf %465, %466 : vector<16x1xf32>
    %468 = vector.broadcast %460 : vector<16x1xf32> to vector<16x64xf32>
    %469 = arith.subf %452, %468 : vector<16x64xf32>
    %cst_319 = arith.constant 9.99999974E-6 : f32
    %470 = vector.broadcast %cst_319 : f32 to vector<16x1xf32>
    %471 = arith.addf %467, %470 : vector<16x1xf32>
    %472 = math.rsqrt %471 : vector<16x1xf32>
    %473 = vector.broadcast %472 : vector<16x1xf32> to vector<16x64xf32>
    %474 = arith.mulf %469, %473 : vector<16x64xf32>
    %475 = vector.broadcast %454 : vector<1x64xf32> to vector<16x64xf32>
    %476 = arith.mulf %474, %475 : vector<16x64xf32>
    %477 = vector.broadcast %456 : vector<1x64xf32> to vector<16x64xf32>
    %478 = arith.addf %476, %477 : vector<16x64xf32>
    %c0_320 = arith.constant 0 : index
    %c0_321 = arith.constant 0 : index
    %479 = vector.load %arg21[%c0_320, %c0_321] : memref<16x64xf32, #tpu.memory_space<vmem>>, vector<16x64xf32>
    tpu.vector_store %arg21[%c0_320, %c0_321], %478 {strides = array<i32>} : memref<16x64xf32, #tpu.memory_space<vmem>>, vector<16x64xf32>,
    %c0_322 = arith.constant 0 : index
    %c0_323 = arith.constant 0 : index
    %480 = vector.load %arg19[%c0_322, %c0_323] : memref<64x1024xf32, #tpu.memory_space<vmem>>, vector<64x1024xf32>
    %cst_324 = arith.constant dense<0.000000e+00> : vector<16x1024xf32>
    %481 = tpu.matmul %478, %480, %cst_324 {dimension_numbers = #tpu.dot_dimension_numbers<[1], [0], [0], [1], [0, 0, 1, 1], [], []>} : vector<16x64xf32>, vector<64x1024xf32>, vector<16x1024xf32> -> vector<16x1024xf32>
    %c0_325 = arith.constant 0 : index
    %c0_326 = arith.constant 0 : index
    %482 = vector.load %arg20[%c0_325, %c0_326] : memref<1x1024xf32, #tpu.memory_space<vmem>>, vector<1x1024xf32>
    %483 = vector.broadcast %482 : vector<1x1024xf32> to vector<16x1024xf32>
    %484 = arith.addf %481, %483 : vector<16x1024xf32>
    %c0_327 = arith.constant 0 : index
    %c0_328 = arith.constant 0 : index
    %485 = vector.load %arg22[%c0_327, %c0_328] : memref<16x1024xf32, #tpu.memory_space<vmem>>, vector<16x1024xf32>
    tpu.vector_store %arg22[%c0_327, %c0_328], %484 {strides = array<i32>} : memref<16x1024xf32, #tpu.memory_space<vmem>>, vector<16x1024xf32>,
    return
  }
}

</mosaic_0001>

<bundles_post_ra>
// kernel: model_forward.1
= control target key start
LH: loop header
LB: loop body
LE: loop exit
PB: predicated region body
PF: predicated region fallthrough
CT: control target
= control target key end

     0   :  { %s5928_s0 = inlined_call_operand.vmem [shape: s32[16,1], index: 0, kind: input, shape index: {}]   ;;  %s5929_s1 = inlined_call_operand.vmem [shape: f32[16,16], index: 1, kind: input, shape index: {}]   ;;  %s5930_s2 = inlined_call_operand.vmem [shape: f32[1024,64], index: 2, kind: input, shape index: {}]   ;;  %s5931_s3 = inlined_call_operand.vmem [shape: f32[8,64,16], index: 3, kind: input, shape index: {}]   ;;  %s5932_s4 = inlined_call_operand.vmem [shape: f32[8,64,16], index: 4, kind: input, shape index: {}]   ;;  %s5933_s5 = inlined_call_operand.vmem [shape: f32[8,64,16], index: 5, kind: input, shape index: {}]   ;;  %s5934_s6 = inlined_call_operand.vmem [shape: f32[8,1,16], index: 6, kind: input, shape index: {}]   ;;  %s5935_s7 = inlined_call_operand.vmem [shape: f32[8,1,16], index: 7, kind: input, shape index: {}]   ;;  %s5936_s8 = inlined_call_operand.vmem [shape: f32[8,1,16], index: 8, kind: input, shape index: {}]   ;;  %s5937_s9 = inlined_call_operand.vmem [shape: f32[8,16,64], index: 9, kind: input, shape index: {}]   ;;  %s5938_s10 = inlined_call_operand.vmem [shape: f32[2,1,64], index: 10, kind: input, shape index: {}]   ;;  %s5939_s11 = inlined_call_operand.vmem [shape: f32[2,1,64], index: 11, kind: input, shape index: {}]   ;;  %s5940_s12 = inlined_call_operand.vmem [shape: f32[2,1,64], index: 12, kind: input, shape index: {}]   ;;  %s5941_s13 = inlined_call_operand.vmem [shape: f32[2,64,256], index: 13, kind: input, shape index: {}]   ;;  %s5942_s14 = inlined_call_operand.vmem [shape: f32[2,1,256], index: 14, kind: input, shape index: {}]   ;;  %s5943_s15 = inlined_call_operand.vmem [shape: f32[2,256,64], index: 15, kind: input, shape index: {}]   ;;  %s5944_s16 = inlined_call_operand.vmem [shape: f32[2,1,64], index: 16, kind: input, shape index: {}]   ;;  %s5945_s17 = inlined_call_operand.vmem [shape: f32[2,1,64], index: 17, kind: input, shape index: {}]   ;;  %s5946_s18 = inlined_call_operand.vmem [shape: f32[2,1,64], index: 18, kind: input, shape index: {}]   ;;  %s5947_s19 = inlined_call_operand.vmem [shape: f32[64,1024], index: 19, kind: input, shape index: {}]   ;;  %s5948_s20 = inlined_call_operand.vmem [shape: f32[1,1024], index: 20, kind: input, shape index: {}]   ;;  %s5949_s21 = inlined_call_operand.hbm [shape: f32[16,64], index: 21, kind: output, shape index: {0}]   ;;  %s5950_s22 = inlined_call_operand.vmem [shape: f32[16,1024], index: 22, kind: output, shape index: {1}]  }
   0x1   :  { %5959 = sst [smem:[#allocation5_spill]] %s5928_s0 }
   0x2   :  { %5960 = sst [smem:[#allocation6_spill]] %s5929_s1 }
   0x3   :  { %5961 = sst [smem:[#allocation7_spill]] %s5930_s2 }
   0x4   :  { %5962 = sst [smem:[#allocation8_spill]] %s5931_s3 }
   0x5   :  { %5963 = sst [smem:[#allocation9_spill]] %s5932_s4 }
   0x6   :  { %5964 = sst [smem:[#allocation10_spill]] %s5933_s5 }
   0x7   :  { %5965 = sst [smem:[#allocation11_spill]] %s5934_s6 }
   0x8   :  { %5966 = sst [smem:[#allocation12_spill]] %s5945_s17 }
   0x9   :  { %s5967_s29 = sld [smem:[#allocation5_spill]]  ;;  %v3784_v2 = vmov 0  }
   0xa   :  { %s5968_s17 = sld [smem:[#allocation7_spill]]  ;;  %3637 = vset.pattern.permute.xlu0 %v3784_v2 }
   0xf   :  { %v71_v0 = vld [vmem:[%s5967_s29] sm:$0xff]  ;;  %v72_v18 = vld [vmem:[%s5967_s29 + $0x8] sm:$0xff] }
  0x10   :  { %v151_v1 = vld [vmem:[%s5968_s17 + $0x78] sm:$0xff]  ;;  %83 = vperm.xlu0 %3637, %v71_v0   ;;  %v150_v6 = vld [vmem:[%s5968_s17 + $0x70] sm:$0xff]  ;;  %v149_v10 = vld [vmem:[%s5968_s17 + $0x68] sm:$0xff] }
  0x11   :  { %264 = vmatpush.msra.mxu0 %v151_v1  ;;  %v167_v3 = vld [vmem:[%s5968_s17 + $0xf8] sm:$0xff]  ;;  %v166_v7 = vld [vmem:[%s5968_s17 + $0xf0] sm:$0xff]  ;;  %v165_v11 = vld [vmem:[%s5968_s17 + $0xe8] sm:$0xff] }
  0x12   :  { %v183_v4 = vld [vmem:[%s5968_s17 + $0x178] sm:$0xff]  ;;  %287 = vmatpush.msra.mxu1 %v167_v3  ;;  %v182_v8 = vld [vmem:[%s5968_s17 + $0x170] sm:$0xff]  ;;  %v181_v12 = vld [vmem:[%s5968_s17 + $0x168] sm:$0xff] }
  0x13   :  { %v199_v5 = vld [vmem:[%s5968_s17 + $0x1f8] sm:$0xff]  ;;  %310 = vmatpush.msra.mxu2 %v183_v4  ;;  %v198_v9 = vld [vmem:[%s5968_s17 + $0x1f0] sm:$0xff]  ;;  %265 = vmatpush.msra.mxu0 %v150_v6  ;;  %v197_v13 = vld [vmem:[%s5968_s17 + $0x1e8] sm:$0xff] }
  0x14   :  { %333 = vmatpush.msra.mxu3 %v199_v5  ;;  %288 = vmatpush.msra.mxu1 %v166_v7  ;;  %v148_v14 = vld [vmem:[%s5968_s17 + $0x60] sm:$0xff]  ;;  %v147_v19 = vld [vmem:[%s5968_s17 + $0x58] sm:$0xff]  ;;  %v146_v23 = vld [vmem:[%s5968_s17 + $0x50] sm:$0xff] }
  0x15   :  { %311 = vmatpush.msra.mxu2 %v182_v8  ;;  %v164_v15 = vld [vmem:[%s5968_s17 + $0xe0] sm:$0xff]  ;;  %266 = vmatpush.msra.mxu0 %v149_v10  ;;  %v163_v20 = vld [vmem:[%s5968_s17 + $0xd8] sm:$0xff]  ;;  %v162_v24 = vld [vmem:[%s5968_s17 + $0xd0] sm:$0xff] }
  0x16   :  { %334 = vmatpush.msra.mxu3 %v198_v9  ;;  %289 = vmatpush.msra.mxu1 %v165_v11  ;;  %v180_v16 = vld [vmem:[%s5968_s17 + $0x160] sm:$0xff]  ;;  %v179_v21 = vld [vmem:[%s5968_s17 + $0x158] sm:$0xff]  ;;  %v178_v25 = vld [vmem:[%s5968_s17 + $0x150] sm:$0xff] }
  0x17   :  { %v196_v17 = vld [vmem:[%s5968_s17 + $0x1e0] sm:$0xff]  ;;  %312 = vmatpush.msra.mxu2 %v181_v12  ;;  %267 = vmatpush.msra.mxu0 %v148_v14  ;;  %v195_v22 = vld [vmem:[%s5968_s17 + $0x1d8] sm:$0xff]  ;;  %v194_v26 = vld [vmem:[%s5968_s17 + $0x1d0] sm:$0xff] }
  0x18   :  { %335 = vmatpush.msra.mxu3 %v197_v13  ;;  %290 = vmatpush.msra.mxu1 %v164_v15  ;;  %v145_v27 = vld [vmem:[%s5968_s17 + $0x48] sm:$0xff]  ;;  %v144_v31 = vld [vmem:[%s5968_s17 + $0x40] sm:$0xff]  ;;  %v143_v35 = vld [vmem:[%s5968_s17 + $0x38] sm:$0xff] }
  0x19   :  { %313 = vmatpush.msra.mxu2 %v180_v16  ;;  %86 = vperm.xlu0 %3637, %v72_v18   ;;  %v161_v28 = vld [vmem:[%s5968_s17 + $0xc8] sm:$0xff]  ;;  %v160_v32 = vld [vmem:[%s5968_s17 + $0xc0] sm:$0xff]  ;;  %v159_v36 = vld [vmem:[%s5968_s17 + $0xb8] sm:$0xff] }
  0x1a   :  { %336 = vmatpush.msra.mxu3 %v196_v17  ;;  %268 = vmatpush.msra.mxu0 %v147_v19  ;;  %v177_v29 = vld [vmem:[%s5968_s17 + $0x148] sm:$0xff]  ;;  %v176_v33 = vld [vmem:[%s5968_s17 + $0x140] sm:$0xff]  ;;  %v175_v37 = vld [vmem:[%s5968_s17 + $0x138] sm:$0xff] }
  0x1b   :  { %291 = vmatpush.msra.mxu1 %v163_v20  ;;  %314 = vmatpush.msra.mxu2 %v179_v21  ;;  %v193_v30 = vld [vmem:[%s5968_s17 + $0x1c8] sm:$0xff]  ;;  %v192_v34 = vld [vmem:[%s5968_s17 + $0x1c0] sm:$0xff]  ;;  %v191_v38 = vld [vmem:[%s5968_s17 + $0x1b8] sm:$0xff] }
  0x1c   :  { %337 = vmatpush.msra.mxu3 %v195_v22  ;;  %269 = vmatpush.msra.mxu0 %v146_v23  ;;  %v142_v39 = vld [vmem:[%s5968_s17 + $0x30] sm:$0xff]  ;;  %v141_v43 = vld [vmem:[%s5968_s17 + $0x28] sm:$0xff]  ;;  %v140_v47 = vld [vmem:[%s5968_s17 + $0x20] sm:$0xff] }
  0x1d   :  { %292 = vmatpush.msra.mxu1 %v162_v24  ;;  %315 = vmatpush.msra.mxu2 %v178_v25  ;;  %v158_v40 = vld [vmem:[%s5968_s17 + $0xb0] sm:$0xff]  ;;  %v157_v44 = vld [vmem:[%s5968_s17 + $0xa8] sm:$0xff]  ;;  %v156_v48 = vld [vmem:[%s5968_s17 + $0xa0] sm:$0xff] }
  0x1e   :  { %338 = vmatpush.msra.mxu3 %v194_v26  ;;  %270 = vmatpush.msra.mxu0 %v145_v27  ;;  %v174_v41 = vld [vmem:[%s5968_s17 + $0x130] sm:$0xff]  ;;  %v173_v45 = vld [vmem:[%s5968_s17 + $0x128] sm:$0xff]  ;;  %v172_v49 = vld [vmem:[%s5968_s17 + $0x120] sm:$0xff] }
  0x1f   :  { %293 = vmatpush.msra.mxu1 %v161_v28  ;;  %316 = vmatpush.msra.mxu2 %v177_v29  ;;  %v190_v42 = vld [vmem:[%s5968_s17 + $0x1b0] sm:$0xff]  ;;  %v189_v46 = vld [vmem:[%s5968_s17 + $0x1a8] sm:$0xff]  ;;  %v188_v50 = vld [vmem:[%s5968_s17 + $0x1a0] sm:$0xff] }
  0x20   :  { %339 = vmatpush.msra.mxu3 %v193_v30  ;;  %271 = vmatpush.msra.mxu0 %v144_v31  ;;  %v139_v51 = vld [vmem:[%s5968_s17 + $0x18] sm:$0xff]  ;;  %v138_v55 = vld [vmem:[%s5968_s17 + $0x10] sm:$0xff]  ;;  %v137_v59 = vld [vmem:[%s5968_s17 + $0x8] sm:$0xff] }
  0x21   :  { %294 = vmatpush.msra.mxu1 %v160_v32  ;;  %317 = vmatpush.msra.mxu2 %v176_v33  ;;  %v155_v52 = vld [vmem:[%s5968_s17 + $0x98] sm:$0xff]  ;;  %v154_v56 = vld [vmem:[%s5968_s17 + $0x90] sm:$0xff]  ;;  %v153_v60 = vld [vmem:[%s5968_s17 + $0x88] sm:$0xff] }
  0x22   :  { %340 = vmatpush.msra.mxu3 %v192_v34  ;;  %272 = vmatpush.msra.mxu0 %v143_v35  ;;  %v171_v53 = vld [vmem:[%s5968_s17 + $0x118] sm:$0xff]  ;;  %v170_v57 = vld [vmem:[%s5968_s17 + $0x110] sm:$0xff]  ;;  %v169_v61 = vld [vmem:[%s5968_s17 + $0x108] sm:$0xff] }
  0x23   :  { %295 = vmatpush.msra.mxu1 %v159_v36  ;;  %318 = vmatpush.msra.mxu2 %v175_v37  ;;  %v187_v54 = vld [vmem:[%s5968_s17 + $0x198] sm:$0xff]  ;;  %v186_v58 = vld [vmem:[%s5968_s17 + $0x190] sm:$0xff]  ;;  %v185_v62 = vld [vmem:[%s5968_s17 + $0x188] sm:$0xff] }
  0x24   :  { %341 = vmatpush.msra.mxu3 %v191_v38  ;;  %273 = vmatpush.msra.mxu0 %v142_v39  ;;  %v136_v63 = vld [vmem:[%s5968_s17] sm:$0xff]  ;;  %v215_v3 = vld [vmem:[%s5968_s17 + $0x278] sm:$0xff]  ;;  %v214_v7 = vld [vmem:[%s5968_s17 + $0x270] sm:$0xff] }
  0x25   :  { %296 = vmatpush.msra.mxu1 %v158_v40  ;;  %319 = vmatpush.msra.mxu2 %v174_v41  ;;  %v152_v0 = vld [vmem:[%s5968_s17 + $0x80] sm:$0xff]  ;;  %v231_v4 = vld [vmem:[%s5968_s17 + $0x2f8] sm:$0xff]  ;;  %v230_v8 = vld [vmem:[%s5968_s17 + $0x2f0] sm:$0xff] }
  0x26   :  { %342 = vmatpush.msra.mxu3 %v190_v42  ;;  %274 = vmatpush.msra.mxu0 %v141_v43  ;;  %v168_v1 = vld [vmem:[%s5968_s17 + $0x100] sm:$0xff]  ;;  %v247_v5 = vld [vmem:[%s5968_s17 + $0x378] sm:$0xff]  ;;  %v246_v9 = vld [vmem:[%s5968_s17 + $0x370] sm:$0xff] }
  0x27   :  { %297 = vmatpush.msra.mxu1 %v157_v44  ;;  %320 = vmatpush.msra.mxu2 %v173_v45  ;;  %v184_v2 = vld [vmem:[%s5968_s17 + $0x180] sm:$0xff]  ;;  %v263_v6 = vld [vmem:[%s5968_s17 + $0x3f8] sm:$0xff]  ;;  %v262_v10 = vld [vmem:[%s5968_s17 + $0x3f0] sm:$0xff] }
  0x28   :  { %343 = vmatpush.msra.mxu3 %v189_v46  ;;  %275 = vmatpush.msra.mxu0 %v140_v47  ;;  %v213_v11 = vld [vmem:[%s5968_s17 + $0x268] sm:$0xff]  ;;  %v212_v15 = vld [vmem:[%s5968_s17 + $0x260] sm:$0xff]  ;;  %v211_v19 = vld [vmem:[%s5968_s17 + $0x258] sm:$0xff] }
  0x29   :  { %298 = vmatpush.msra.mxu1 %v156_v48  ;;  %321 = vmatpush.msra.mxu2 %v172_v49  ;;  %v229_v12 = vld [vmem:[%s5968_s17 + $0x2e8] sm:$0xff]  ;;  %v228_v16 = vld [vmem:[%s5968_s17 + $0x2e0] sm:$0xff]  ;;  %v227_v20 = vld [vmem:[%s5968_s17 + $0x2d8] sm:$0xff] }
  0x2a   :  { %344 = vmatpush.msra.mxu3 %v188_v50  ;;  %276 = vmatpush.msra.mxu0 %v139_v51  ;;  %v245_v13 = vld [vmem:[%s5968_s17 + $0x368] sm:$0xff]  ;;  %v244_v17 = vld [vmem:[%s5968_s17 + $0x360] sm:$0xff]  ;;  %v243_v21 = vld [vmem:[%s5968_s17 + $0x358] sm:$0xff] }
  0x2b   :  { %299 = vmatpush.msra.mxu1 %v155_v52  ;;  %322 = vmatpush.msra.mxu2 %v171_v53  ;;  %v261_v14 = vld [vmem:[%s5968_s17 + $0x3e8] sm:$0xff]  ;;  %v260_v18 = vld [vmem:[%s5968_s17 + $0x3e0] sm:$0xff]  ;;  %v259_v22 = vld [vmem:[%s5968_s17 + $0x3d8] sm:$0xff] }
  0x2c   :  { %345 = vmatpush.msra.mxu3 %v187_v54  ;;  %277 = vmatpush.msra.mxu0 %v138_v55  ;;  %v210_v23 = vld [vmem:[%s5968_s17 + $0x250] sm:$0xff]  ;;  %v209_v27 = vld [vmem:[%s5968_s17 + $0x248] sm:$0xff] }
  0x2d   :  { %300 = vmatpush.msra.mxu1 %v154_v56  ;;  %323 = vmatpush.msra.mxu2 %v170_v57  ;;  %v226_v24 = vld [vmem:[%s5968_s17 + $0x2d0] sm:$0xff] }
  0x2e   :  { %346 = vmatpush.msra.mxu3 %v186_v58  ;;  %278 = vmatpush.msra.mxu0 %v137_v59  ;;  %v242_v25 = vld [vmem:[%s5968_s17 + $0x350] sm:$0xff] }
  0x2f   :  { %301 = vmatpush.msra.mxu1 %v153_v60  ;;  %324 = vmatpush.msra.mxu2 %v169_v61  ;;  %v258_v26 = vld [vmem:[%s5968_s17 + $0x3d0] sm:$0xff] }
  0x30   :  { %347 = vmatpush.msra.mxu3 %v185_v62  ;;  %279 = vmatpush.msra.mxu0 %v136_v63 }
  0x31   :  { %302 = vmatpush.msra.mxu1 %v152_v0  ;;  %325 = vmatpush.msra.mxu2 %v168_v1 }
  0x32   :  { %348 = vmatpush.msra.mxu3 %v184_v2  ;;  %356 = vmatpush.msrb.mxu0 %v215_v3 }
  0x33   :  { %379 = vmatpush.msrb.mxu1 %v231_v4  ;;  %402 = vmatpush.msrb.mxu2 %v247_v5 }
  0x34   :  { %425 = vmatpush.msrb.mxu3 %v263_v6  ;;  %357 = vmatpush.msrb.mxu0 %v214_v7 }
  0x35   :  { %380 = vmatpush.msrb.mxu1 %v230_v8  ;;  %403 = vmatpush.msrb.mxu2 %v246_v9 }
  0x36   :  { %426 = vmatpush.msrb.mxu3 %v262_v10  ;;  %358 = vmatpush.msrb.mxu0 %v213_v11 }
  0x37   :  { %381 = vmatpush.msrb.mxu1 %v229_v12  ;;  %404 = vmatpush.msrb.mxu2 %v245_v13 }
  0x38   :  { %427 = vmatpush.msrb.mxu3 %v261_v14  ;;  %359 = vmatpush.msrb.mxu0 %v212_v15 }
  0x39   :  { %382 = vmatpush.msrb.mxu1 %v228_v16  ;;  %405 = vmatpush.msrb.mxu2 %v244_v17 }
  0x3a   :  { %428 = vmatpush.msrb.mxu3 %v260_v18  ;;  %360 = vmatpush.msrb.mxu0 %v211_v19 }
  0x3b   :  { %383 = vmatpush.msrb.mxu1 %v227_v20  ;;  %406 = vmatpush.msrb.mxu2 %v243_v21 }
  0x3c   :  { %28 = vsyncpa [#allocation3], 0  ;;  %429 = vmatpush.msrb.mxu3 %v259_v22  ;;  %361 = vmatpush.msrb.mxu0 %v210_v23  ;;  %v225_v28 = vld [vmem:[%s5968_s17 + $0x2c8] sm:$0xff]  ;;  %v208_v31 = vld [vmem:[%s5968_s17 + $0x240] sm:$0xff]  ;;  %v73_v3 = vlaneseq  ;;  %v3785_v9 = vmov 1.0   ;;  %s5969_s24 = sld [smem:[#allocation8_spill]] }
  0x3d   :  { %v241_v29 = vld [vmem:[%s5968_s17 + $0x348] sm:$0xff]  ;;  %384 = vmatpush.msrb.mxu1 %v226_v24  ;;  %407 = vmatpush.msrb.mxu2 %v242_v25  ;;  %v224_v32 = vld [vmem:[%s5968_s17 + $0x2c0] sm:$0xff]  ;;  %v207_v35 = vld [vmem:[%s5968_s17 + $0x238] sm:$0xff]  ;;  %s5970_s26 = sld [smem:[#allocation9_spill]]  ;;  %s3787_s6 = smov [#allocation2]  }
  0x3e   :  { %v257_v30 = vld [vmem:[%s5968_s17 + $0x3c8] sm:$0xff]  ;;  %430 = vmatpush.msrb.mxu3 %v258_v26  ;;  %362 = vmatpush.msrb.mxu0 %v209_v27  ;;  %v240_v33 = vld [vmem:[%s5968_s17 + $0x340] sm:$0xff]  ;;  %v223_v36 = vld [vmem:[%s5968_s17 + $0x2b8] sm:$0xff]  ;;  %v74_v4 = vand.u32 127, %v73_v3  ;;  %s5971_s3 = sld [smem:[#allocation10_spill]]  ;;  %s3189_s27 = sshll.u32 %s5949_s21, 4  ;;  %s3190_s27 = int_to_ptr.hbm [resolvable:$true] %s3189_s27 }
  0x3f   :  { %385 = vmatpush.msrb.mxu1 %v225_v28  ;;  %408 = vmatpush.msrb.mxu2 %v241_v29  ;;  %v256_v34 = vld [vmem:[%s5968_s17 + $0x3c0] sm:$0xff]  ;;  %v239_v37 = vld [vmem:[%s5968_s17 + $0x338] sm:$0xff]  ;;  %v206_v39 = vld [vmem:[%s5968_s17 + $0x230] sm:$0xff]  ;;  %s5972_s29 = sld [smem:[#allocation11_spill]]  ;;  %s3788_s28 = smov 128  }
  0x40   :  { %431 = vmatpush.msrb.mxu3 %v257_v30  ;;  %363 = vmatpush.msrb.mxu0 %v208_v31  ;;  %v255_v38 = vld [vmem:[%s5968_s17 + $0x3b8] sm:$0xff]  ;;  %v222_v40 = vld [vmem:[%s5968_s17 + $0x2b0] sm:$0xff]  ;;  %v205_v43 = vld [vmem:[%s5968_s17 + $0x228] sm:$0xff]  ;;  %v75_v5 = vadd.s32 128, %v74_v4  ;;  %v76_v6 = vadd.s32 256, %v74_v4  ;;  %v77_v7 = vadd.s32 384, %v74_v4 }
  0x41   :  { %386 = vmatpush.msrb.mxu1 %v224_v32  ;;  %409 = vmatpush.msrb.mxu2 %v240_v33  ;;  %v238_v41 = vld [vmem:[%s5968_s17 + $0x330] sm:$0xff]  ;;  %v221_v44 = vld [vmem:[%s5968_s17 + $0x2a8] sm:$0xff]  ;;  %v204_v47 = vld [vmem:[%s5968_s17 + $0x220] sm:$0xff]  ;;  %v78_v11 = vadd.s32 512, %v74_v4  ;;  %v79_v12 = vadd.s32 640, %v74_v4  ;;  %v80_v13 = vadd.s32 768, %v74_v4 }
  0x42   :  { %432 = vmatpush.msrb.mxu3 %v256_v34  ;;  %364 = vmatpush.msrb.mxu0 %v207_v35  ;;  %v254_v42 = vld [vmem:[%s5968_s17 + $0x3b0] sm:$0xff]  ;;  %v237_v45 = vld [vmem:[%s5968_s17 + $0x328] sm:$0xff]  ;;  %v220_v48 = vld [vmem:[%s5968_s17 + $0x2a0] sm:$0xff]  ;;  %v81_v14 = vadd.s32 896, %v74_v4  ;;  %s5973_s2 = sld [smem:[#allocation6_spill]]  ;;  %s3789_s30 = smov 8  }
  0x43   :  { %387 = vmatpush.msrb.mxu1 %v223_v36  ;;  %410 = vmatpush.msrb.mxu2 %v239_v37  ;;  %v253_v46 = vld [vmem:[%s5968_s17 + $0x3a8] sm:$0xff]  ;;  %v236_v49 = vld [vmem:[%s5968_s17 + $0x320] sm:$0xff]  ;;  %v203_v51 = vld [vmem:[%s5968_s17 + $0x218] sm:$0xff]  ;;  %s5974_s23 = sld [smem:[#allocation12_spill]] }
  0x44   :  { %433 = vmatpush.msrb.mxu3 %v255_v38  ;;  %365 = vmatpush.msrb.mxu0 %v206_v39  ;;  %v252_v50 = vld [vmem:[%s5968_s17 + $0x3a0] sm:$0xff]  ;;  %v219_v52 = vld [vmem:[%s5968_s17 + $0x298] sm:$0xff]  ;;  %v202_v55 = vld [vmem:[%s5968_s17 + $0x210] sm:$0xff] }
  0x45   :  { %388 = vmatpush.msrb.mxu1 %v222_v40  ;;  %411 = vmatpush.msrb.mxu2 %v238_v41  ;;  %v235_v53 = vld [vmem:[%s5968_s17 + $0x318] sm:$0xff]  ;;  %v218_v56 = vld [vmem:[%s5968_s17 + $0x290] sm:$0xff]  ;;  %v201_v59 = vld [vmem:[%s5968_s17 + $0x208] sm:$0xff] }
  0x46   :  { %434 = vmatpush.msrb.mxu3 %v254_v42  ;;  %366 = vmatpush.msrb.mxu0 %v205_v43  ;;  %v251_v54 = vld [vmem:[%s5968_s17 + $0x398] sm:$0xff]  ;;  %v234_v57 = vld [vmem:[%s5968_s17 + $0x310] sm:$0xff]  ;;  %v217_v60 = vld [vmem:[%s5968_s17 + $0x288] sm:$0xff] }
  0x47   :  { %389 = vmatpush.msrb.mxu1 %v221_v44  ;;  %412 = vmatpush.msrb.mxu2 %v237_v45  ;;  %v250_v58 = vld [vmem:[%s5968_s17 + $0x390] sm:$0xff]  ;;  %v233_v61 = vld [vmem:[%s5968_s17 + $0x308] sm:$0xff]  ;;  %v200_v63 = vld [vmem:[%s5968_s17 + $0x200] sm:$0xff] }
  0x48   :  { %435 = vmatpush.msrb.mxu3 %v253_v46  ;;  %367 = vmatpush.msrb.mxu0 %v204_v47  ;;  %v249_v62 = vld [vmem:[%s5968_s17 + $0x388] sm:$0xff]  ;;  %v216_v0 = vld [vmem:[%s5968_s17 + $0x280] sm:$0xff]  ;;  %v457_v15 = vld [vmem:[%s5969_s24 + $0x38] sm:$0xff] }
  0x49   :  { %390 = vmatpush.msrb.mxu1 %v220_v48  ;;  %413 = vmatpush.msrb.mxu2 %v236_v49  ;;  %v232_v1 = vld [vmem:[%s5968_s17 + $0x300] sm:$0xff]  ;;  %v499_v16 = vld [vmem:[%s5970_s26 + $0x38] sm:$0xff]  ;;  %v456_v18 = vld [vmem:[%s5969_s24 + $0x30] sm:$0xff] }
  0x4a   :  { %436 = vmatpush.msrb.mxu3 %v252_v50  ;;  %368 = vmatpush.msrb.mxu0 %v203_v51  ;;  %v248_v2 = vld [vmem:[%s5968_s17 + $0x380] sm:$0xff]  ;;  %v534_v17 = vld [vmem:[%s5971_s3 + $0x38] sm:$0xff]  ;;  %v498_v19 = vld [vmem:[%s5970_s26 + $0x30] sm:$0xff] }
  0x4b   :  { %391 = vmatpush.msrb.mxu1 %v219_v52  ;;  %414 = vmatpush.msrb.mxu2 %v235_v53  ;;  %v533_v20 = vld [vmem:[%s5971_s3 + $0x30] sm:$0xff]  ;;  %v455_v21 = vld [vmem:[%s5969_s24 + $0x28] sm:$0xff]  ;;  %v454_v24 = vld [vmem:[%s5969_s24 + $0x20] sm:$0xff] }
  0x4c   :  { %437 = vmatpush.msrb.mxu3 %v251_v54  ;;  %369 = vmatpush.msrb.mxu0 %v202_v55  ;;  %v497_v22 = vld [vmem:[%s5970_s26 + $0x28] sm:$0xff]  ;;  %v496_v25 = vld [vmem:[%s5970_s26 + $0x20] sm:$0xff]  ;;  %v453_v27 = vld [vmem:[%s5969_s24 + $0x18] sm:$0xff] }
  0x4d   :  { %392 = vmatpush.msrb.mxu1 %v218_v56  ;;  %415 = vmatpush.msrb.mxu2 %v234_v57  ;;  %v532_v23 = vld [vmem:[%s5971_s3 + $0x28] sm:$0xff]  ;;  %v531_v26 = vld [vmem:[%s5971_s3 + $0x20] sm:$0xff]  ;;  %v495_v28 = vld [vmem:[%s5970_s26 + $0x18] sm:$0xff] }
  0x4e   :  { %438 = vmatpush.msrb.mxu3 %v250_v58  ;;  %370 = vmatpush.msrb.mxu0 %v201_v59  ;;  %v530_v29 = vld [vmem:[%s5971_s3 + $0x18] sm:$0xff]  ;;  %v452_v30 = vld [vmem:[%s5969_s24 + $0x10] sm:$0xff]  ;;  %v451_v33 = vld [vmem:[%s5969_s24 + $0x8] sm:$0xff] }
  0x4f   :  { %393 = vmatpush.msrb.mxu1 %v217_v60  ;;  %416 = vmatpush.msrb.mxu2 %v233_v61  ;;  %v494_v31 = vld [vmem:[%s5970_s26 + $0x10] sm:$0xff]  ;;  %v493_v34 = vld [vmem:[%s5970_s26 + $0x8] sm:$0xff]  ;;  %v450_v36 = vld [vmem:[%s5969_s24] sm:$0xff] }
  0x50   :  { %439 = vmatpush.msrb.mxu3 %v249_v62  ;;  %371 = vmatpush.msrb.mxu0 %v200_v63  ;;  %v529_v32 = vld [vmem:[%s5971_s3 + $0x10] sm:$0xff]  ;;  %v528_v35 = vld [vmem:[%s5971_s3 + $0x8] sm:$0xff]  ;;  %v492_v37 = vld [vmem:[%s5970_s26] sm:$0xff] }
  0x51   :  { %394 = vmatpush.msrb.mxu1 %v216_v0  ;;  %417 = vmatpush.msrb.mxu2 %v232_v1  ;;  %v527_v38 = vld [vmem:[%s5971_s3] sm:$0xff]  ;;  %v3256_v39 = vld [vmem:[%s5969_s24 + $0x78] sm:$0xff]  ;;  %v3255_v41 = vld [vmem:[%s5969_s24 + $0x70] sm:$0xff] }
  0x52   :  { %440 = vmatpush.msrb.mxu3 %v248_v2  ;;  %v3267_v40 = vld [vmem:[%s5970_s26 + $0x78] sm:$0xff]  ;;  %v3266_v42 = vld [vmem:[%s5970_s26 + $0x70] sm:$0xff]  ;;  %v3254_v45 = vld [vmem:[%s5969_s24 + $0x68] sm:$0xff] }
  0x53   :  { %v3265_v46 = vld [vmem:[%s5970_s26 + $0x68] sm:$0xff]  ;;  %v3253_v47 = vld [vmem:[%s5969_s24 + $0x60] sm:$0xff]  ;;  %v3252_v49 = vld [vmem:[%s5969_s24 + $0x58] sm:$0xff] }
  0x54   :  { %v3264_v48 = vld [vmem:[%s5970_s26 + $0x60] sm:$0xff]  ;;  %v3263_v50 = vld [vmem:[%s5970_s26 + $0x58] sm:$0xff]  ;;  %v3251_v51 = vld [vmem:[%s5969_s24 + $0x50] sm:$0xff] }
  0x55   :  { %v3262_v52 = vld [vmem:[%s5970_s26 + $0x50] sm:$0xff]  ;;  %v3250_v55 = vld [vmem:[%s5969_s24 + $0x48] sm:$0xff]  ;;  %v3249_v59 = vld [vmem:[%s5969_s24 + $0x40] sm:$0xff] }
  0x56   :  { %v3261_v56 = vld [vmem:[%s5970_s26 + $0x48] sm:$0xff]  ;;  %v3260_v60 = vld [vmem:[%s5970_s26 + $0x40] sm:$0xff] }
  0x82   :  { %v84_v8 = vpop.permute.xlu0 %83 }
  0x83   :  { %vm88_vm0 = vcmp.eq.s32.totalorder %v74_v4, %v84_v8  ;;  %vm89_vm1 = vcmp.eq.s32.totalorder %v75_v5, %v84_v8  ;;  %vm90_vm2 = vcmp.eq.s32.totalorder %v76_v6, %v84_v8  ;;  %vm91_vm3 = vcmp.eq.s32.totalorder %v77_v7, %v84_v8 }
  0x84   :  { %3221 = vmatmul.msk.f32.vlgmr.msra.gmra.mxu0 %vm88_vm0, %v3785_v9  ;;  %3223 = vmatmul.msk.f32.vlgmr.msra.gmra.mxu1 %vm89_vm1, %v3785_v9  ;;  %vm92_vm8 = vcmp.eq.s32.totalorder %v78_v11, %v84_v8  ;;  %vm93_vm9 = vcmp.eq.s32.totalorder %v79_v12, %v84_v8  ;;  %vm94_vm10 = vcmp.eq.s32.totalorder %v80_v13, %v84_v8  ;;  %vm462_vm0 = vcmask 523264  }
  0x85   :  { %3225 = vmatmul.msk.f32.vlgmr.msra.gmra.mxu2 %vm90_vm2, %v3785_v9  ;;  %3227 = vmatmul.msk.f32.vlgmr.msra.gmra.mxu3 %vm91_vm3, %v3785_v9  ;;  %vm95_vm11 = vcmp.eq.s32.totalorder %v81_v14, %v84_v8  ;;  %vm564_vm1 = vcmask 130048  }
  0x86   :  { %477 = vmatpush.msra.mxu0 %v457_v15  ;;  %512 = vmatpush.msra.mxu1 %v499_v16 }
  0x87   :  { %547 = vmatpush.msra.mxu2 %v534_v17 }
  0x88   :  { %478 = vmatpush.msra.mxu0 %v456_v18  ;;  %513 = vmatpush.msra.mxu1 %v498_v19 }
  0x89   :  { %548 = vmatpush.msra.mxu2 %v533_v20 }
  0x8a   :  { %479 = vmatpush.msra.mxu0 %v455_v21  ;;  %514 = vmatpush.msra.mxu1 %v497_v22 }
  0x8b   :  { %v87_v10 = vpop.permute.xlu0 %86  ;;  %549 = vmatpush.msra.mxu2 %v532_v23  ;;  %v3639_v23 = vld [vmem:[%s5935_s7] ss:$0 sm:$0xff] }
  0x8c   :  { %vm96_vm4 = vcmp.eq.s32.totalorder %v74_v4, %v87_v10  ;;  %vm97_vm5 = vcmp.eq.s32.totalorder %v75_v5, %v87_v10  ;;  %vm98_vm6 = vcmp.eq.s32.totalorder %v76_v6, %v87_v10  ;;  %vm99_vm7 = vcmp.eq.s32.totalorder %v77_v7, %v87_v10  ;;  %480 = vmatpush.msra.mxu0 %v454_v24 }
  0x8d   :  { %3222 = vmatmul.msk.f32.gmra.mxu0 %vm96_vm4, %v3785_v9  ;;  %3224 = vmatmul.msk.f32.gmra.mxu1 %vm97_vm5, %v3785_v9  ;;  %vm100_vm12 = vcmp.eq.s32.totalorder %v78_v11, %v87_v10  ;;  %vm101_vm13 = vcmp.eq.s32.totalorder %v79_v12, %v87_v10  ;;  %vm102_vm14 = vcmp.eq.s32.totalorder %v80_v13, %v87_v10 }
  0x8e   :  { %3226 = vmatmul.msk.f32.gmra.mxu2 %vm98_vm6, %v3785_v9  ;;  %3228 = vmatmul.msk.f32.gmra.mxu3 %vm99_vm7, %v3785_v9  ;;  %vm103_vm15 = vcmp.eq.s32.totalorder %v81_v14, %v87_v10 }
  0x8f   :  { %515 = vmatpush.msra.mxu1 %v496_v25  ;;  %550 = vmatpush.msra.mxu2 %v531_v26  ;;  %v3638_v25 = vld [vmem:[%s5972_s29] ss:$0 sm:$0xff] }
  0x90   :  { %481 = vmatpush.msra.mxu0 %v453_v27 }
  0x91   :  { %516 = vmatpush.msra.mxu1 %v495_v28  ;;  %551 = vmatpush.msra.mxu2 %v530_v29 }
  0x92   :  { %482 = vmatpush.msra.mxu0 %v452_v30  ;;  %v3278_v30 = vld [vmem:[%s5971_s3 + $0x78] sm:$0xff] }
  0x93   :  { %517 = vmatpush.msra.mxu1 %v494_v31  ;;  %552 = vmatpush.msra.mxu2 %v529_v32  ;;  %v3640_v31 = vld [vmem:[%s5936_s8] ss:$0 sm:$0xff] }
  0x94   :  { %483 = vmatpush.msra.mxu0 %v451_v33 }
  0x95   :  { %3229 = vmatmul.msk.f32.vlgmr.msrb.gmra.mxu0 %vm92_vm8, %v3785_v9  ;;  %3231 = vmatmul.msk.f32.vlgmr.msrb.gmra.mxu1 %vm93_vm9, %v3785_v9 }
  0x96   :  { %3233 = vmatmul.msk.f32.vlgmr.msrb.gmra.mxu2 %vm94_vm10, %v3785_v9  ;;  %3235 = vmatmul.msk.f32.vlgmr.msrb.gmra.mxu3 %vm95_vm11, %v3785_v9 }
  0x97   :  { %518 = vmatpush.msra.mxu1 %v493_v34  ;;  %553 = vmatpush.msra.mxu2 %v528_v35  ;;  %v3277_v35 = vld [vmem:[%s5971_s3 + $0x70] sm:$0xff] }
  0x98   :  { %484 = vmatpush.msra.mxu0 %v450_v36 }
  0x99   :  { %519 = vmatpush.msra.mxu1 %v492_v37  ;;  %554 = vmatpush.msra.mxu2 %v527_v38  ;;  %v3276_v38 = vld [vmem:[%s5971_s3 + $0x68] sm:$0xff] }
  0x9b   :  { %675 = vmatpush.msrb.mxu1 %v3256_v39  ;;  %712 = vmatpush.msrb.mxu2 %v3267_v40  ;;  %v3275_v40 = vld [vmem:[%s5971_s3 + $0x60] sm:$0xff] }
  0x9d   :  { %3230 = vmatmul.msk.f32.gmra.mxu0 %vm100_vm12, %v3785_v9  ;;  %3232 = vmatmul.msk.f32.gmra.mxu1 %vm101_vm13, %v3785_v9 }
  0x9e   :  { %3234 = vmatmul.msk.f32.gmra.mxu2 %vm102_vm14, %v3785_v9  ;;  %3236 = vmatmul.msk.f32.gmra.mxu3 %vm103_vm15, %v3785_v9 }
  0x9f   :  { %676 = vmatpush.msrb.mxu1 %v3255_v41  ;;  %713 = vmatpush.msrb.mxu2 %v3266_v42  ;;  %v3274_v41 = vld [vmem:[%s5971_s3 + $0x58] sm:$0xff] }
  0xa1   :  { %677 = vmatpush.msrb.mxu1 %v3254_v45  ;;  %714 = vmatpush.msrb.mxu2 %v3265_v46  ;;  %v3272_v45 = vld [vmem:[%s5971_s3 + $0x48] sm:$0xff]  ;;  %v3271_v46 = vld [vmem:[%s5971_s3 + $0x40] sm:$0xff] }
  0xa3   :  { %678 = vmatpush.msrb.mxu1 %v3253_v47  ;;  %715 = vmatpush.msrb.mxu2 %v3264_v48  ;;  %v3642_v47 = vld [vmem:[%s5935_s7 + $0x1] ss:$0 sm:$0xff] }
  0xa5   :  { %679 = vmatpush.msrb.mxu1 %v3252_v49  ;;  %716 = vmatpush.msrb.mxu2 %v3263_v50 }
  0xa7   :  { %680 = vmatpush.msrb.mxu1 %v3251_v51  ;;  %717 = vmatpush.msrb.mxu2 %v3262_v52  ;;  %v4488_v51 = vld [vmem:[%s5973_s2] sm:$0xff] }
  0xa9   :  { %681 = vmatpush.msrb.mxu1 %v3250_v55  ;;  %718 = vmatpush.msrb.mxu2 %v3261_v56  ;;  %v4495_v55 = vld [vmem:[%s5973_s2 + $0x8] sm:$0xff] }
  0xab   :  { %682 = vmatpush.msrb.mxu1 %v3249_v59  ;;  %719 = vmatpush.msrb.mxu2 %v3260_v60  ;;  %v3643_v60 = vld [vmem:[%s5936_s8 + $0x1] ss:$0 sm:$0xff] }
 0x101   :  { %v281_v43 = vpop.f32.mrf.mxu0  ;;  %v304_v44 = vpop.f32.mrf.mxu1 }
 0x102   :  { %v305_v61 = vadd.f32 %v304_v44, %v281_v43  ;;  %v3273_v44 = vld [vmem:[%s5971_s3 + $0x50] sm:$0xff] }
 0x108   :  { %v327_v53 = vpop.f32.mrf.mxu2  ;;  %v350_v54 = vpop.f32.mrf.mxu3 }
 0x109   :  { %v328_v62 = vadd.f32 %v327_v53, %v305_v61 }
 0x10a   :  { %v284_v57 = vpop.f32.mrf.mxu0  ;;  %v307_v58 = vpop.f32.mrf.mxu1 }
 0x10b   :  { %v351_v1 = vadd.f32 %v350_v54, %v328_v62  ;;  %v308_v3 = vadd.f32 %v307_v58, %v284_v57 }
 0x111   :  { %v330_v63 = vpop.f32.mrf.mxu2  ;;  %v353_v0 = vpop.f32.mrf.mxu3 }
 0x112   :  { %v373_v2 = vpop.f32.mrf.mxu0  ;;  %v396_v5 = vpop.f32.mrf.mxu1  ;;  %v331_v6 = vadd.f32 %v330_v63, %v308_v3 }
 0x113   :  { %v374_v4 = vadd.f32 %v373_v2, %v351_v1 }
 0x114   :  { %v354_v10 = vadd.f32 %v353_v0, %v331_v6 }
 0x115   :  { %v397_v7 = vadd.f32 %v396_v5, %v374_v4 }
 0x119   :  { %v419_v8 = vpop.f32.mrf.mxu2  ;;  %v442_v9 = vpop.f32.mrf.mxu3 }
 0x11a   :  { %v420_v11 = vadd.f32 %v419_v8, %v397_v7  ;;  %v376_v12 = vpop.f32.mrf.mxu0  ;;  %v399_v15 = vpop.f32.mrf.mxu1 }
 0x11b   :  { %v377_v14 = vadd.f32 %v376_v12, %v354_v10 }
 0x11c   :  { %v4415_v13 = vadd.f32 %v442_v9, %v420_v11 }
 0x11d   :  { %v400_v16 = vadd.f32 %v399_v15, %v377_v14  ;;  %v3301_v15 = vld [vmem:[%s5969_s24 + $0xb8] sm:$0xff] }
 0x11e   :  { %3237 = vmatmul.msk.f32.vlgmr.msra.gmra.mxu0 %vm462_vm0, %v4415_v13  ;;  %3239 = vmatmul.msk.f32.vlgmr.msra.gmra.mxu1 %vm462_vm0, %v4415_v13 }
 0x11f   :  { %3241 = vmatmul.msk.f32.vlgmr.msra.gmra.mxu2 %vm462_vm0, %v4415_v13 }
 0x121   :  { %v422_v17 = vpop.f32.mrf.mxu2  ;;  %v445_v19 = vpop.f32.mrf.mxu3 }
 0x122   :  { %v423_v18 = vadd.f32 %v422_v17, %v400_v16  ;;  %v3300_v16 = vld [vmem:[%s5969_s24 + $0xb0] sm:$0xff]  ;;  %v3299_v17 = vld [vmem:[%s5969_s24 + $0xa8] sm:$0xff] }
 0x124   :  { %v4423_v20 = vadd.f32 %v445_v19, %v423_v18  ;;  %v3298_v18 = vld [vmem:[%s5969_s24 + $0xa0] sm:$0xff] }
 0x126   :  { %3238 = vmatmul.msk.f32.gmra.mxu0 %vm462_vm0, %v4423_v20  ;;  %3240 = vmatmul.msk.f32.gmra.mxu1 %vm462_vm0, %v4423_v20 }
 0x127   :  { %3242 = vmatmul.msk.f32.gmra.mxu2 %vm462_vm0, %v4423_v20 }
 0x12e   :  { %3258 = vmatmul.msk.f32.vlgmr.msrb.gmra.mxu1 %vm462_vm0, %v4415_v13 }
 0x12f   :  { %3269 = vmatmul.msk.f32.vlgmr.msrb.gmra.mxu2 %vm462_vm0, %v4415_v13 }
 0x136   :  { %3259 = vmatmul.msk.f32.gmra.mxu1 %vm462_vm0, %v4423_v20 }
 0x137   :  { %3270 = vmatmul.msk.f32.gmra.mxu2 %vm462_vm0, %v4423_v20 }
 0x19b   :  { %v521_v21 = vpop.f32.mrf.mxu1  ;;  %v486_v22 = vpop.f32.mrf.mxu0 }
 0x19c   :  { %v487_v28 = vadd.f32 %v3638_v25, %v486_v22  ;;  %v522_v29 = vadd.f32 %v3639_v23, %v521_v21  ;;  %v3641_v22 = vld [vmem:[%s5972_s29 + $0x1] ss:$0 sm:$0xff] }
 0x19e   :  { %v562_v33 = vmul.f32 0.25, %v487_v28  ;;  %v3295_v28 = vld [vmem:[%s5969_s24 + $0x88] sm:$0xff] }
 0x1a2   :  { %v556_v24 = vpop.f32.mrf.mxu2 }
 0x1a3   :  { %v524_v26 = vpop.f32.mrf.mxu1  ;;  %v489_v36 = vpop.f32.mrf.mxu0  ;;  %v557_v37 = vadd.f32 %v3640_v31, %v556_v24  ;;  %v3297_v24 = vld [vmem:[%s5969_s24 + $0x98] sm:$0xff] }
 0x1a4   :  { %v525_v27 = vadd.f32 %v3639_v23, %v524_v26  ;;  %v490_v39 = vadd.f32 %v3638_v25, %v489_v36  ;;  %v3296_v25 = vld [vmem:[%s5969_s24 + $0x90] sm:$0xff]  ;;  %v652_v26 = vld [vmem:[%s5937_s9 + $0x8] sm:$0xff] }
 0x1a6   :  { %3243 = vmatpush.xpose.msk.msra.mxu3 %vm564_vm1, %v525_v27  ;;  %v563_v43 = vmul.f32 0.25, %v490_v39 }
 0x1aa   :  { %v559_v32 = vpop.f32.mrf.mxu2  ;;  %3244 = vmatpush.xpose.msk.msra.mxu3 %vm564_vm1, %v522_v29  ;;  %v3294_v29 = vld [vmem:[%s5969_s24 + $0x80] sm:$0xff] }
 0x1ab   :  { %v560_v34 = vadd.f32 %v3640_v31, %v559_v32  ;;  %v684_v21 = vpop.f32.mrf.mxu1 }
 0x1ac   :  { %v685_v27 = vadd.f32 %v3641_v22, %v684_v21  ;;  %v3341_v21 = vld [vmem:[%s5969_s24 + $0xe0] sm:$0xff] }
 0x1ad   :  { %642 = vmatpush.msrb.mxu0 %v560_v34  ;;  %3245 = vmatmul.msk.f32.vlgmr.msra.gmra.mxu3 %vm564_vm1, %v562_v33  ;;  %v651_v34 = vld [vmem:[%s5937_s9] sm:$0xff] }
 0x1ae   :  { %749 = vmatpush.msrb.mxu3 %v3278_v30  ;;  %v764_v30 = vmul.f32 0.25, %v685_v27 }
 0x1af   :  { %643 = vmatpush.msrb.mxu0 %v557_v37 }
 0x1b0   :  { %750 = vmatpush.msrb.mxu3 %v3277_v35 }
 0x1b2   :  { %751 = vmatpush.msrb.mxu3 %v3276_v38  ;;  %v721_v42 = vpop.f32.mrf.mxu2 }
 0x1b3   :  { %v722_v50 = vadd.f32 %v3642_v47, %v721_v42  ;;  %v687_v31 = vpop.f32.mrf.mxu1 }
 0x1b4   :  { %752 = vmatpush.msrb.mxu3 %v3275_v40  ;;  %v688_v32 = vadd.f32 %v3641_v22, %v687_v31  ;;  %v3340_v22 = vld [vmem:[%s5969_s24 + $0xd8] sm:$0xff] }
 0x1b5   :  { %3246 = vmatmul.msk.f32.gmra.mxu3 %vm564_vm1, %v563_v43 }
 0x1b6   :  { %753 = vmatpush.msrb.mxu3 %v3274_v41  ;;  %v765_v33 = vmul.f32 0.25, %v688_v32 }
 0x1b8   :  { %754 = vmatpush.msrb.mxu3 %v3273_v44 }
 0x1ba   :  { %755 = vmatpush.msrb.mxu3 %v3272_v45  ;;  %v724_v48 = vpop.f32.mrf.mxu2 }
 0x1bb   :  { %v725_v49 = vadd.f32 %v3642_v47, %v724_v48 }
 0x1bc   :  { %756 = vmatpush.msrb.mxu3 %v3271_v46 }
 0x1bd   :  { %3282 = vmatpush.xpose.msk.msra.mxu0 %vm564_vm1, %v725_v49  ;;  %3280 = vmatmul.msk.f32.vlgmr.msrb.gmra.mxu3 %vm462_vm0, %v4415_v13 }
 0x1be   :  { %904 = vmatpush.msra.mxu3 %v652_v26  ;;  %v3337_v26 = vld [vmem:[%s5969_s24 + $0xc0] sm:$0xff] }
 0x1c0   :  { %905 = vmatpush.msra.mxu3 %v651_v34 }
 0x1c1   :  { %3283 = vmatpush.xpose.msk.msra.mxu0 %vm564_vm1, %v722_v50 }
 0x1c5   :  { %3281 = vmatmul.msk.f32.gmra.mxu3 %vm462_vm0, %v4423_v20 }
 0x230   :  { %v594_v52 = vpop.f32.mrf.mxu3 }
 0x231   :  { %v595_v53 = vadd.f32 %v594_v52, %v4488_v51 }
 0x233   :  { %v600_v54 = vsel %vm564_vm1, %v595_v53, -inf }
 0x234   :  { %601 = vmax.xlane.f32.xlu1 %v600_v54  ;;  %v3312_v54 = vld [vmem:[%s5970_s26 + $0xb8] sm:$0xff] }
 0x238   :  { %v597_v56 = vpop.f32.mrf.mxu3 }
 0x239   :  { %v598_v57 = vadd.f32 %v597_v56, %v4495_v55  ;;  %v3311_v56 = vld [vmem:[%s5970_s26 + $0xb0] sm:$0xff] }
 0x23b   :  { %v603_v58 = vsel %vm564_vm1, %v598_v57, -inf }
 0x23c   :  { %604 = vmax.xlane.f32.xlu1 %v603_v58  ;;  %v3309_v58 = vld [vmem:[%s5970_s26 + $0xa0] sm:$0xff] }
 0x240   :  { %v758_v59 = vpop.f32.mrf.mxu3 }
 0x241   :  { %v759_v63 = vadd.f32 %v3643_v60, %v758_v59  ;;  %v3308_v59 = vld [vmem:[%s5970_s26 + $0x98] sm:$0xff] }
 0x248   :  { %v761_v61 = vpop.f32.mrf.mxu3 }
 0x249   :  { %v762_v62 = vadd.f32 %v3643_v60, %v761_v61  ;;  %v3307_v60 = vld [vmem:[%s5970_s26 + $0x90] sm:$0xff]  ;;  %v3306_v61 = vld [vmem:[%s5970_s26 + $0x88] sm:$0xff] }
 0x24b   :  { %843 = vmatpush.msra.mxu1 %v762_v62  ;;  %v3305_v62 = vld [vmem:[%s5970_s26 + $0x80] sm:$0xff] }
 0x24d   :  { %844 = vmatpush.msra.mxu1 %v759_v63 }
 0x24f   :  { %972 = vmatpush.msrb.mxu1 %v3312_v54 }
 0x251   :  { %973 = vmatpush.msrb.mxu1 %v3311_v56 }
 0x2a7   :  { %v602_v0 = vpop.xlane.xlu1 %601 }
 0x2a8   :  { %v606_v1 = vsub.f32 %v595_v53, %v602_v0  ;;  %v3289_v0 = vld [vmem:[%s5937_s9 + $0x18] sm:$0xff] }
 0x2a9   :  { %875 = vmatpush.msra.mxu2 %v3289_v0 }
 0x2aa   :  { %v608_v2 = vmul.f32 1.442695, %v606_v1 }
 0x2ac   :  { %3674 = vpow2.f32 %v608_v2 }
 0x2af   :  { %v605_v3 = vpop.xlane.xlu1 %604 }
 0x2b0   :  { %v607_v4 = vsub.f32 %v598_v57, %v605_v3  ;;  %v3310_v57 = vld [vmem:[%s5970_s26 + $0xa8] sm:$0xff] }
 0x2b1   :  { %974 = vmatpush.msrb.mxu1 %v3310_v57 }
 0x2b2   :  { %v3675_v5 = vpop.eup %3674  ;;  %v610_v6 = vmul.f32 1.442695, %v607_v4 }
 0x2b3   :  { %v612_v7 = vsel %vm564_vm1, %v3675_v5, 0.0  ;;  %975 = vmatpush.msrb.mxu1 %v3309_v58  ;;  %v3333_v58 = vld [vmem:[%s5937_s9 + $0x20] sm:$0xff] }
 0x2b4   :  { %3676 = vpow2.f32 %v610_v6  ;;  %613 = vadd.xlane.f32.xlu2 %v612_v7  ;;  %v3288_v6 = vld [vmem:[%s5937_s9 + $0x10] sm:$0xff]  ;;  %v3323_v7 = vld [vmem:[%s5971_s3 + $0xb8] sm:$0xff] }
 0x2b5   :  { %976 = vmatpush.msrb.mxu1 %v3308_v59  ;;  %876 = vmatpush.msra.mxu2 %v3288_v6 }
 0x2b7   :  { %977 = vmatpush.msrb.mxu1 %v3307_v60  ;;  %1009 = vmatpush.msrb.mxu2 %v3323_v7 }
 0x2b9   :  { %978 = vmatpush.msrb.mxu1 %v3306_v61 }
 0x2ba   :  { %v3677_v8 = vpop.eup %3676 }
 0x2bb   :  { %v615_v9 = vsel %vm564_vm1, %v3677_v8, 0.0  ;;  %979 = vmatpush.msrb.mxu1 %v3305_v62 }
 0x2bc   :  { %616 = vadd.xlane.f32.xlu2 %v615_v9  ;;  %v3321_v9 = vld [vmem:[%s5971_s3 + $0xa8] sm:$0xff] }
 0x327   :  { %v614_v10 = vpop.xlane.xlu2 %613 }
 0x328   :  { %3678 = vrcp.f32 %v614_v10  ;;  %v3320_v10 = vld [vmem:[%s5971_s3 + $0xa0] sm:$0xff] }
 0x32e   :  { %v3679_v11 = vpop.eup %3678 }
 0x32f   :  { %v620_v12 = vmul.f32 %v3679_v11, %v3675_v5  ;;  %v617_v14 = vpop.xlane.xlu2 %616  ;;  %v3319_v11 = vld [vmem:[%s5971_s3 + $0x98] sm:$0xff] }
 0x330   :  { %3680 = vrcp.f32 %v617_v14  ;;  %v3317_v14 = vld [vmem:[%s5971_s3 + $0x88] sm:$0xff] }
 0x331   :  { %3247 = vmatmul.msk.f32.vlgmr.msrb.gmra.mxu0 %vm564_vm1, %v620_v12  ;;  %v3318_v12 = vld [vmem:[%s5971_s3 + $0x90] sm:$0xff] }
 0x332   :  { %935 = vmatpush.msrb.mxu0 %v3301_v15  ;;  %v3316_v15 = vld [vmem:[%s5971_s3 + $0x80] sm:$0xff] }
 0x334   :  { %936 = vmatpush.msrb.mxu0 %v3300_v16  ;;  %v3344_v16 = vld [vmem:[%s5969_s24 + $0xf8] sm:$0xff] }
 0x336   :  { %v3681_v19 = vpop.eup %3680  ;;  %937 = vmatpush.msrb.mxu0 %v3299_v17 }
 0x337   :  { %v621_v23 = vmul.f32 %v3681_v19, %v3677_v8  ;;  %v3322_v8 = vld [vmem:[%s5971_s3 + $0xb0] sm:$0xff]  ;;  %v3342_v19 = vld [vmem:[%s5969_s24 + $0xe8] sm:$0xff] }
 0x338   :  { %938 = vmatpush.msrb.mxu0 %v3298_v18  ;;  %1010 = vmatpush.msrb.mxu2 %v3322_v8  ;;  %v3343_v18 = vld [vmem:[%s5969_s24 + $0xf0] sm:$0xff] }
 0x339   :  { %3248 = vmatmul.msk.f32.gmra.mxu0 %vm564_vm1, %v621_v23 }
 0x33a   :  { %939 = vmatpush.msrb.mxu0 %v3297_v24  ;;  %1011 = vmatpush.msrb.mxu2 %v3321_v9  ;;  %v3339_v24 = vld [vmem:[%s5969_s24 + $0xd0] sm:$0xff] }
 0x33c   :  { %940 = vmatpush.msrb.mxu0 %v3296_v25  ;;  %1012 = vmatpush.msrb.mxu2 %v3320_v10  ;;  %v3338_v25 = vld [vmem:[%s5969_s24 + $0xc8] sm:$0xff] }
 0x33e   :  { %941 = vmatpush.msrb.mxu0 %v3295_v28  ;;  %1013 = vmatpush.msrb.mxu2 %v3319_v11 }
 0x340   :  { %942 = vmatpush.msrb.mxu0 %v3294_v29  ;;  %1014 = vmatpush.msrb.mxu2 %v3318_v12  ;;  %v3645_v29 = vld [vmem:[%s5935_s7 + $0x2] ss:$0 sm:$0xff] }
 0x341   :  { %3284 = vmatmul.msk.f32.vlgmr.msra.gmra.mxu0 %vm564_vm1, %v764_v30  ;;  %v3644_v30 = vld [vmem:[%s5972_s29 + $0x2] ss:$0 sm:$0xff] }
 0x342   :  { %1015 = vmatpush.msrb.mxu2 %v3317_v14 }
 0x344   :  { %1016 = vmatpush.msrb.mxu2 %v3316_v15 }
 0x349   :  { %3285 = vmatmul.msk.f32.gmra.mxu0 %vm564_vm1, %v765_v33 }
 0x351   :  { %3303 = vmatmul.msk.f32.vlgmr.msrb.gmra.mxu0 %vm462_vm0, %v4415_v13 }
 0x359   :  { %3304 = vmatmul.msk.f32.gmra.mxu0 %vm462_vm0, %v4423_v20 }
 0x3ae   :  { %v645_v35 = vpop.f32.mrf.mxu0 }
 0x3af   :  { %3292 = vmatmul.msk.f32.vlgmr.msra.gmra.mxu3 %vm564_vm1, %v645_v35  ;;  %v3355_v35 = vld [vmem:[%s5970_s26 + $0xf8] sm:$0xff] }
 0x3b6   :  { %v648_v36 = vpop.f32.mrf.mxu0 }
 0x3b7   :  { %3293 = vmatmul.msk.f32.gmra.mxu3 %vm564_vm1, %v648_v36 }
 0x3be   :  { %v795_v37 = vpop.f32.mrf.mxu0 }
 0x3bf   :  { %v796_v38 = vadd.f32 %v795_v37, %v4488_v51  ;;  %v3354_v37 = vld [vmem:[%s5970_s26 + $0xf0] sm:$0xff] }
 0x3c1   :  { %v801_v39 = vsel %vm564_vm1, %v796_v38, -inf }
 0x3c2   :  { %802 = vmax.xlane.f32.xlu0 %v801_v39  ;;  %v3353_v39 = vld [vmem:[%s5970_s26 + $0xe8] sm:$0xff] }
 0x3c6   :  { %v798_v40 = vpop.f32.mrf.mxu0 }
 0x3c7   :  { %v799_v41 = vadd.f32 %v798_v40, %v4495_v55 }
 0x3c9   :  { %v804_v42 = vsel %vm564_vm1, %v799_v41, -inf }
 0x3ca   :  { %805 = vmax.xlane.f32.xlu1 %v804_v42  ;;  %v3351_v42 = vld [vmem:[%s5970_s26 + $0xd8] sm:$0xff] }
 0x3ce   :  { %v944_v28 = vpop.f32.mrf.mxu0 }
 0x3cf   :  { %v945_v33 = vadd.f32 %v3644_v30, %v944_v28 }
 0x3d1   :  { %v1024_v36 = vmul.f32 0.25, %v945_v33 }
 0x435   :  { %v803_v43 = vpop.xlane.xlu0 %802 }
 0x436   :  { %v807_v44 = vsub.f32 %v796_v38, %v803_v43  ;;  %v947_v38 = vpop.f32.mrf.mxu0 }
 0x437   :  { %v948_v40 = vadd.f32 %v3644_v30, %v947_v38 }
 0x438   :  { %v809_v45 = vmul.f32 1.442695, %v807_v44  ;;  %v3350_v44 = vld [vmem:[%s5970_s26 + $0xd0] sm:$0xff] }
 0x439   :  { %v1025_v43 = vmul.f32 0.25, %v948_v40 }
 0x43a   :  { %3682 = vpow2.f32 %v809_v45  ;;  %v3349_v45 = vld [vmem:[%s5970_s26 + $0xc8] sm:$0xff] }
 0x43d   :  { %v806_v46 = vpop.xlane.xlu1 %805 }
 0x43e   :  { %v808_v47 = vsub.f32 %v799_v41, %v806_v46  ;;  %v3352_v41 = vld [vmem:[%s5970_s26 + $0xe0] sm:$0xff] }
 0x43f   :  { %v3348_v46 = vld [vmem:[%s5970_s26 + $0xc0] sm:$0xff] }
 0x440   :  { %v3683_v48 = vpop.eup %3682  ;;  %v811_v49 = vmul.f32 1.442695, %v808_v47 }
 0x441   :  { %v813_v50 = vsel %vm564_vm1, %v3683_v48, 0.0 }
 0x442   :  { %3684 = vpow2.f32 %v811_v49  ;;  %814 = vadd.xlane.f32.xlu2 %v813_v50  ;;  %v4689_v49 = vpop.f32.mrf.mxu3 }
 0x448   :  { %v3685_v52 = vpop.eup %3684 }
 0x449   :  { %v816_v53 = vsel %vm564_vm1, %v3685_v52, 0.0 }
 0x44a   :  { %817 = vadd.xlane.f32.xlu1 %v816_v53  ;;  %v3646_v53 = vld [vmem:[%s5936_s8 + $0x2] ss:$0 sm:$0xff]  ;;  %v4697_v56 = vpop.f32.mrf.mxu3 }
 0x4b5   :  { %v815_v63 = vpop.xlane.xlu2 %814 }
 0x4b6   :  { %3686 = vrcp.f32 %v815_v63 }
 0x4bc   :  { %v3687_v1 = vpop.eup %3686 }
 0x4bd   :  { %v821_v2 = vmul.f32 %v3687_v1, %v3683_v48  ;;  %v818_v3 = vpop.xlane.xlu1 %817 }
 0x4be   :  { %3688 = vrcp.f32 %v818_v3  ;;  %v3648_v3 = vld [vmem:[%s5935_s7 + $0x3] ss:$0 sm:$0xff] }
 0x4bf   :  { %3286 = vmatmul.msk.f32.vlgmr.msra.gmra.mxu1 %vm564_vm1, %v821_v2 }
 0x4c4   :  { %v3689_v4 = vpop.eup %3688 }
 0x4c5   :  { %v822_v5 = vmul.f32 %v3689_v4, %v3685_v52  ;;  %v3334_v52 = vld [vmem:[%s5937_s9 + $0x28] sm:$0xff] }
 0x4c6   :  { %1135 = vmatpush.msra.mxu1 %v3334_v52 }
 0x4c7   :  { %3287 = vmatmul.msk.f32.gmra.mxu1 %vm564_vm1, %v822_v5 }
 0x4c8   :  { %1136 = vmatpush.msra.mxu1 %v3333_v58 }
 0x4cf   :  { %3314 = vmatmul.msk.f32.vlgmr.msrb.gmra.mxu1 %vm462_vm0, %v4415_v13 }
 0x4d7   :  { %3315 = vmatmul.msk.f32.gmra.mxu1 %vm462_vm0, %v4423_v20 }
 0x53c   :  { %v846_v17 = vpop.f32.mrf.mxu1 }
 0x53d   :  { %3290 = vmatmul.msk.f32.vlgmr.msra.gmra.mxu2 %vm564_vm1, %v846_v17 }
 0x53e   :  { %1168 = vmatpush.msra.mxu2 %v3344_v16 }
 0x540   :  { %1169 = vmatpush.msra.mxu2 %v3343_v18  ;;  %v3366_v18 = vld [vmem:[%s5971_s3 + $0xf8] sm:$0xff] }
 0x542   :  { %1170 = vmatpush.msra.mxu2 %v3342_v19  ;;  %v3365_v19 = vld [vmem:[%s5971_s3 + $0xf0] sm:$0xff] }
 0x544   :  { %v849_v23 = vpop.f32.mrf.mxu1  ;;  %1171 = vmatpush.msra.mxu2 %v3341_v21  ;;  %v3364_v21 = vld [vmem:[%s5971_s3 + $0xe8] sm:$0xff] }
 0x545   :  { %3291 = vmatmul.msk.f32.gmra.mxu2 %vm564_vm1, %v849_v23  ;;  %v3362_v23 = vld [vmem:[%s5971_s3 + $0xd8] sm:$0xff] }
 0x546   :  { %1172 = vmatpush.msra.mxu2 %v3340_v22  ;;  %v3363_v22 = vld [vmem:[%s5971_s3 + $0xe0] sm:$0xff] }
 0x548   :  { %1173 = vmatpush.msra.mxu2 %v3339_v24  ;;  %v3361_v24 = vld [vmem:[%s5971_s3 + $0xd0] sm:$0xff] }
 0x54a   :  { %1174 = vmatpush.msra.mxu2 %v3338_v25  ;;  %v3360_v25 = vld [vmem:[%s5971_s3 + $0xc8] sm:$0xff] }
 0x54c   :  { %v981_v27 = vpop.f32.mrf.mxu1  ;;  %1175 = vmatpush.msra.mxu2 %v3337_v26  ;;  %v3359_v26 = vld [vmem:[%s5971_s3 + $0xc0] sm:$0xff] }
 0x54d   :  { %3325 = vmatmul.msk.f32.vlgmr.msrb.gmra.mxu2 %vm462_vm0, %v4415_v13  ;;  %v982_v34 = vadd.f32 %v3645_v29, %v981_v27 }
 0x554   :  { %v984_v31 = vpop.f32.mrf.mxu1 }
 0x555   :  { %v985_v32 = vadd.f32 %v3645_v29, %v984_v31  ;;  %3326 = vmatmul.msk.f32.gmra.mxu2 %vm462_vm0, %v4423_v20 }
 0x557   :  { %3327 = vmatpush.xpose.msk.msrb.mxu3 %vm564_vm1, %v985_v32 }
 0x55b   :  { %3328 = vmatpush.xpose.msk.msrb.mxu3 %vm564_vm1, %v982_v34 }
 0x55d   :  { %3346 = vmatmul.msk.f32.vlgmr.msra.gmra.mxu2 %vm462_vm0, %v4415_v13 }
 0x55e   :  { %3329 = vmatmul.msk.f32.vlgmr.msrb.gmra.mxu3 %vm564_vm1, %v1024_v36 }
 0x55f   :  { %1205 = vmatpush.msra.mxu3 %v3355_v35  ;;  %v3647_v35 = vld [vmem:[%s5972_s29 + $0x3] ss:$0 sm:$0xff] }
 0x561   :  { %1206 = vmatpush.msra.mxu3 %v3354_v37 }
 0x563   :  { %1207 = vmatpush.msra.mxu3 %v3353_v39 }
 0x565   :  { %1208 = vmatpush.msra.mxu3 %v3352_v41  ;;  %3347 = vmatmul.msk.f32.gmra.mxu2 %vm462_vm0, %v4423_v20 }
 0x566   :  { %3330 = vmatmul.msk.f32.gmra.mxu3 %vm564_vm1, %v1025_v43  ;;  %v3649_v43 = vld [vmem:[%s5936_s8 + $0x3] ss:$0 sm:$0xff] }
 0x567   :  { %1209 = vmatpush.msra.mxu3 %v3351_v42 }
 0x569   :  { %1210 = vmatpush.msra.mxu3 %v3350_v44 }
 0x56b   :  { %1211 = vmatpush.msra.mxu3 %v3349_v45 }
 0x56d   :  { %1212 = vmatpush.msra.mxu3 %v3348_v46 }
 0x56e   :  { %3357 = vmatmul.msk.f32.vlgmr.msra.gmra.mxu3 %vm462_vm0, %v4415_v13 }
 0x576   :  { %3358 = vmatmul.msk.f32.gmra.mxu3 %vm462_vm0, %v4423_v20 }
 0x5c0   :  { %v4685_v47 = vpop.f32.mrf.mxu2 }
 0x5c8   :  { %v4687_v48 = vpop.f32.mrf.mxu2 }
 0x5d0   :  { %v1018_v50 = vpop.f32.mrf.mxu2 }
 0x5d1   :  { %v1019_v59 = vadd.f32 %v3646_v53, %v1018_v50 }
 0x5d8   :  { %v1021_v54 = vpop.f32.mrf.mxu2 }
 0x5d9   :  { %v1022_v57 = vadd.f32 %v3646_v53, %v1021_v54 }
 0x5db   :  { %1103 = vmatpush.msra.mxu0 %v1022_v57 }
 0x5dd   :  { %1104 = vmatpush.msra.mxu0 %v1019_v59 }
 0x5df   :  { %1242 = vmatpush.msrb.mxu0 %v3366_v18  ;;  %v3650_v18 = vld [vmem:[%s5938_s10] ss:$0 sm:$0xff] }
 0x5e0   :  { %v1177_v34 = vpop.f32.mrf.mxu2 }
 0x5e1   :  { %v1055_v60 = vpop.f32.mrf.mxu3  ;;  %1243 = vmatpush.msrb.mxu0 %v3365_v19  ;;  %v1178_v37 = vadd.f32 %v3647_v35, %v1177_v34 }
 0x5e2   :  { %v1056_v61 = vadd.f32 %v1055_v60, %v4488_v51 }
 0x5e3   :  { %1244 = vmatpush.msrb.mxu0 %v3364_v21  ;;  %v1257_v38 = vmul.f32 0.25, %v1178_v37 }
 0x5e4   :  { %v1061_v62 = vsel %vm564_vm1, %v1056_v61, -inf }
 0x5e5   :  { %1062 = vmax.xlane.f32.xlu2 %v1061_v62  ;;  %1245 = vmatpush.msrb.mxu0 %v3363_v22 }
 0x5e7   :  { %1246 = vmatpush.msrb.mxu0 %v3362_v23  ;;  %v911_v23 = vadd.f32 %v4697_v56, %v4687_v48 }
 0x5e8   :  { %v1180_v39 = vpop.f32.mrf.mxu2 }
 0x5e9   :  { %v1058_v63 = vpop.f32.mrf.mxu3  ;;  %1247 = vmatpush.msrb.mxu0 %v3361_v24  ;;  %v1181_v41 = vadd.f32 %v3647_v35, %v1180_v39 }
 0x5ea   :  { %v1059_v0 = vadd.f32 %v1058_v63, %v4495_v55 }
 0x5eb   :  { %1248 = vmatpush.msrb.mxu0 %v3360_v25  ;;  %v1258_v42 = vmul.f32 0.25, %v1181_v41 }
 0x5ec   :  { %v1064_v1 = vsel %vm564_vm1, %v1059_v0, -inf }
 0x5ed   :  { %1065 = vmax.xlane.f32.xlu1 %v1064_v1  ;;  %1249 = vmatpush.msrb.mxu0 %v3359_v26 }
 0x5f1   :  { %v1214_v2 = vpop.f32.mrf.mxu3 }
 0x5f2   :  { %v1215_v6 = vadd.f32 %v3648_v3, %v1214_v2 }
 0x5f9   :  { %v1217_v4 = vpop.f32.mrf.mxu3 }
 0x5fa   :  { %v1218_v5 = vadd.f32 %v3648_v3, %v1217_v4 }
 0x5fc   :  { %3370 = vmatpush.xpose.msk.msrb.mxu1 %vm564_vm1, %v1218_v5 }
 0x600   :  { %3371 = vmatpush.xpose.msk.msrb.mxu1 %vm564_vm1, %v1215_v6 }
 0x658   :  { %v1063_v7 = vpop.xlane.xlu2 %1062 }
 0x659   :  { %v1067_v8 = vsub.f32 %v1056_v61, %v1063_v7 }
 0x65b   :  { %v1069_v9 = vmul.f32 1.442695, %v1067_v8 }
 0x65d   :  { %3690 = vpow2.f32 %v1069_v9 }
 0x660   :  { %v1066_v10 = vpop.xlane.xlu1 %1065 }
 0x661   :  { %v1068_v11 = vsub.f32 %v1059_v0, %v1066_v10 }
 0x663   :  { %v3691_v12 = vpop.eup %3690  ;;  %v1071_v14 = vmul.f32 1.442695, %v1068_v11 }
 0x664   :  { %v1073_v15 = vsel %vm564_vm1, %v3691_v12, 0.0 }
 0x665   :  { %3692 = vpow2.f32 %v1071_v14  ;;  %1074 = vadd.xlane.f32.xlu2 %v1073_v15 }
 0x66b   :  { %v3693_v16 = vpop.eup %3692 }
 0x66c   :  { %v1076_v17 = vsel %vm564_vm1, %v3693_v16, 0.0 }
 0x66d   :  { %1077 = vadd.xlane.f32.xlu1 %v1076_v17 }
 0x6d8   :  { %v1075_v27 = vpop.xlane.xlu2 %1074 }
 0x6d9   :  { %3694 = vrcp.f32 %v1075_v27 }
 0x6df   :  { %v3695_v28 = vpop.eup %3694 }
 0x6e0   :  { %v1081_v29 = vmul.f32 %v3695_v28, %v3691_v12  ;;  %v1078_v30 = vpop.xlane.xlu1 %1077  ;;  %v3376_v12 = vld [vmem:[%s5937_s9 + $0x30] sm:$0xff] }
 0x6e1   :  { %3696 = vrcp.f32 %v1078_v30  ;;  %v3786_v30 = vmov 64.0  }
 0x6e2   :  { %3331 = vmatmul.msk.f32.vlgmr.msra.gmra.mxu0 %vm564_vm1, %v1081_v29 }
 0x6e7   :  { %v3697_v31 = vpop.eup %3696 }
 0x6e8   :  { %v1082_v32 = vmul.f32 %v3697_v31, %v3693_v16  ;;  %v908_v16 = vadd.f32 %v4689_v49, %v4685_v47 }
 0x6ea   :  { %3332 = vmatmul.msk.f32.gmra.mxu0 %vm564_vm1, %v1082_v32 }
 0x6f2   :  { %3368 = vmatmul.msk.f32.vlgmr.msrb.gmra.mxu0 %vm462_vm0, %v4415_v13 }
 0x6fa   :  { %3369 = vmatmul.msk.f32.gmra.mxu0 %vm462_vm0, %v4423_v20 }
 0x75f   :  { %v1106_v33 = vpop.f32.mrf.mxu0 }
 0x760   :  { %3335 = vmatmul.msk.f32.vlgmr.msra.gmra.mxu1 %vm564_vm1, %v1106_v33 }
 0x767   :  { %v1109_v36 = vpop.f32.mrf.mxu0 }
 0x768   :  { %3336 = vmatmul.msk.f32.gmra.mxu1 %vm564_vm1, %v1109_v36 }
 0x76f   :  { %v1251_v40 = vpop.f32.mrf.mxu0 }
 0x770   :  { %3372 = vmatmul.msk.f32.vlgmr.msrb.gmra.mxu1 %vm564_vm1, %v1257_v38  ;;  %v1252_v46 = vadd.f32 %v3649_v43, %v1251_v40 }
 0x777   :  { %v1254_v44 = vpop.f32.mrf.mxu0 }
 0x778   :  { %v1255_v45 = vadd.f32 %v3649_v43, %v1254_v44  ;;  %3373 = vmatmul.msk.f32.gmra.mxu1 %vm564_vm1, %v1258_v42  ;;  %v1464_v43 = vld [vmem:[%s5941_s13 + $0x70] sm:$0xff]  ;;  %v1465_v44 = vld [vmem:[%s5941_s13 + $0x78] sm:$0xff] }
 0x779   :  { %1486 = vmatpush.msra.mxu0 %v1464_v43  ;;  %1509 = vmatpush.msra.mxu1 %v1465_v44  ;;  %v1531_v44 = vld [vmem:[%s5943_s15 + $0x18] sm:$0xff] }
 0x77a   :  { %1336 = vmatpush.msrb.mxu2 %v1255_v45  ;;  %v1462_v45 = vld [vmem:[%s5941_s13 + $0x60] sm:$0xff] }
 0x77b   :  { %1487 = vmatpush.msra.mxu0 %v1462_v45  ;;  %v1547_v45 = vld [vmem:[%s5943_s15 + $0x98] sm:$0xff] }
 0x77c   :  { %1337 = vmatpush.msrb.mxu2 %v1252_v46  ;;  %v1463_v46 = vld [vmem:[%s5941_s13 + $0x68] sm:$0xff] }
 0x77d   :  { %1510 = vmatpush.msra.mxu1 %v1463_v46 }
 0x7dd   :  { %v1138_v50 = vpop.f32.mrf.mxu1 }
 0x7de   :  { %v1144_v17 = vadd.f32 %v1138_v50, %v908_v16  ;;  %v1460_v50 = vld [vmem:[%s5941_s13 + $0x50] sm:$0xff]  ;;  %v1555_v16 = vld [vmem:[%s5943_s15 + $0xd8] sm:$0xff] }
 0x7df   :  { %1488 = vmatpush.msra.mxu0 %v1460_v50 }
 0x7e5   :  { %v1141_v52 = vpop.f32.mrf.mxu1 }
 0x7e6   :  { %v1145_v25 = vadd.f32 %v1141_v52, %v911_v23  ;;  %v1461_v52 = vld [vmem:[%s5941_s13 + $0x58] sm:$0xff]  ;;  %v1553_v23 = vld [vmem:[%s5943_s15 + $0xc8] sm:$0xff] }
 0x7e7   :  { %1511 = vmatpush.msra.mxu1 %v1461_v52 }
 0x7ed   :  { %v1288_v53 = vpop.f32.mrf.mxu1 }
 0x7ee   :  { %v1289_v54 = vadd.f32 %v1288_v53, %v4488_v51  ;;  %v1458_v53 = vld [vmem:[%s5941_s13 + $0x40] sm:$0xff] }
 0x7ef   :  { %1489 = vmatpush.msra.mxu0 %v1458_v53 }
 0x7f0   :  { %v1294_v57 = vsel %vm564_vm1, %v1289_v54, -inf }
 0x7f1   :  { %1295 = vmax.xlane.f32.xlu2 %v1294_v57  ;;  %v1456_v57 = vld [vmem:[%s5941_s13 + $0x30] sm:$0xff] }
 0x7f2   :  { %1490 = vmatpush.msra.mxu0 %v1456_v57  ;;  %v1530_v57 = vld [vmem:[%s5943_s15 + $0x10] sm:$0xff] }
 0x7f5   :  { %v1291_v58 = vpop.f32.mrf.mxu1 }
 0x7f6   :  { %v1292_v59 = vadd.f32 %v1291_v58, %v4495_v55  ;;  %v3377_v55 = vld [vmem:[%s5937_s9 + $0x38] sm:$0xff] }
 0x7f7   :  { %1368 = vmatpush.msrb.mxu3 %v3377_v55  ;;  %v1457_v58 = vld [vmem:[%s5941_s13 + $0x38] sm:$0xff]  ;;  %v1558_v55 = vld [vmem:[%s5943_s15 + $0xf0] sm:$0xff] }
 0x7f8   :  { %v1297_v60 = vsel %vm564_vm1, %v1292_v59, -inf }
 0x7f9   :  { %1298 = vmax.xlane.f32.xlu1 %v1297_v60  ;;  %1369 = vmatpush.msrb.mxu3 %v3376_v12  ;;  %v1455_v60 = vld [vmem:[%s5941_s13 + $0x28] sm:$0xff] }
 0x864   :  { %v1296_v61 = vpop.xlane.xlu2 %1295 }
 0x865   :  { %v1300_v62 = vsub.f32 %v1289_v54, %v1296_v61  ;;  %v1459_v54 = vld [vmem:[%s5941_s13 + $0x48] sm:$0xff]  ;;  %v1452_v61 = vld [vmem:[%s5941_s13 + $0x10] sm:$0xff] }
 0x866   :  { %1512 = vmatpush.msra.mxu1 %v1459_v54 }
 0x867   :  { %v1302_v63 = vmul.f32 1.442695, %v1300_v62  ;;  %v1453_v62 = vld [vmem:[%s5941_s13 + $0x18] sm:$0xff] }
 0x868   :  { %1513 = vmatpush.msra.mxu1 %v1457_v58  ;;  %v1546_v58 = vld [vmem:[%s5943_s15 + $0x90] sm:$0xff] }
 0x869   :  { %3698 = vpow2.f32 %v1302_v63  ;;  %v1450_v63 = vld [vmem:[%s5941_s13] sm:$0xff] }
 0x86a   :  { %1514 = vmatpush.msra.mxu1 %v1455_v60  ;;  %v1528_v60 = vld [vmem:[%s5943_s15] sm:$0xff] }
 0x86c   :  { %v1299_v0 = vpop.xlane.xlu1 %1298  ;;  %1515 = vmatpush.msra.mxu1 %v1453_v62  ;;  %v1466_v62 = vld [vmem:[%s5942_s14] sm:$0x3] }
 0x86d   :  { %v1301_v1 = vsub.f32 %v1292_v59, %v1299_v0  ;;  %v1454_v59 = vld [vmem:[%s5941_s13 + $0x20] sm:$0xff]  ;;  %v1451_v0 = vld [vmem:[%s5941_s13 + $0x8] sm:$0xff] }
 0x86e   :  { %1491 = vmatpush.msra.mxu0 %v1454_v59  ;;  %1516 = vmatpush.msra.mxu1 %v1451_v0  ;;  %v1545_v59 = vld [vmem:[%s5943_s15 + $0x88] sm:$0xff]  ;;  %v1469_v0 = vperm.slane %v1466_v62, 1 }
 0x86f   :  { %v3699_v2 = vpop.eup %3698  ;;  %v1304_v3 = vmul.f32 1.442695, %v1301_v1 }
 0x870   :  { %v1306_v4 = vsel %vm564_vm1, %v3699_v2, 0.0  ;;  %1492 = vmatpush.msra.mxu0 %v1452_v61  ;;  %v1544_v61 = vld [vmem:[%s5943_s15 + $0x80] sm:$0xff] }
 0x871   :  { %3700 = vpow2.f32 %v1304_v3  ;;  %1307 = vadd.xlane.f32.xlu2 %v1306_v4  ;;  %v1543_v4 = vld [vmem:[%s5943_s15 + $0x78] sm:$0xff] }
 0x872   :  { %1493 = vmatpush.msra.mxu0 %v1450_v63  ;;  %1564 = vmatpush.msra.mxu2 %v1543_v4  ;;  %v1468_v63 = vperm.slane %v1466_v62, 0 }
 0x877   :  { %v3701_v51 = vpop.eup %3700 }
 0x878   :  { %v1309_v5 = vsel %vm564_vm1, %v3701_v51, 0.0 }
 0x879   :  { %1310 = vadd.xlane.f32.xlu1 %v1309_v5  ;;  %v1542_v5 = vld [vmem:[%s5943_s15 + $0x70] sm:$0xff] }
 0x87a   :  { %1565 = vmatpush.msra.mxu2 %v1542_v5 }
 0x8e4   :  { %v1308_v6 = vpop.xlane.xlu2 %1307 }
 0x8e5   :  { %3702 = vrcp.f32 %v1308_v6  ;;  %v1541_v6 = vld [vmem:[%s5943_s15 + $0x68] sm:$0xff] }
 0x8e6   :  { %1566 = vmatpush.msra.mxu2 %v1541_v6 }
 0x8eb   :  { %v3703_v7 = vpop.eup %3702 }
 0x8ec   :  { %v1314_v8 = vmul.f32 %v3703_v7, %v3699_v2  ;;  %v1311_v9 = vpop.xlane.xlu1 %1310  ;;  %v1557_v7 = vld [vmem:[%s5943_s15 + $0xe8] sm:$0xff] }
 0x8ed   :  { %3704 = vrcp.f32 %v1311_v9 }
 0x8ee   :  { %3374 = vmatmul.msk.f32.vlgmr.msrb.gmra.mxu2 %vm564_vm1, %v1314_v8  ;;  %3706 = vrcp.f32 %v3786_v30 }
 0x8f3   :  { %v3705_v10 = vpop.eup %3704 }
 0x8f4   :  { %v1315_v11 = vmul.f32 %v3705_v10, %v3701_v51  ;;  %v3707_v31 = vpop.eup %3706  ;;  %v1559_v51 = vld [vmem:[%s5943_s15 + $0xf8] sm:$0xff]  ;;  %v1540_v10 = vld [vmem:[%s5943_s15 + $0x60] sm:$0xff] }
 0x8f5   :  { %v1396_v32 = vmul.f32 64.0, %v3707_v31  ;;  %vm1400_vm2 = vweird.f32 %v3707_v31  ;;  %1587 = vmatpush.msra.mxu3 %v1559_v51  ;;  %1567 = vmatpush.msra.mxu2 %v1540_v10 }
 0x8f6   :  { %3375 = vmatmul.msk.f32.gmra.mxu2 %vm564_vm1, %v1315_v11  ;;  %v1556_v11 = vld [vmem:[%s5943_s15 + $0xe0] sm:$0xff] }
 0x8f7   :  { %v1397_v33 = vsub.f32 1.0, %v1396_v32  ;;  %1588 = vmatpush.msra.mxu3 %v1558_v55  ;;  %v1534_v32 = vld [vmem:[%s5943_s15 + $0x30] sm:$0xff] }
 0x8f9   :  { %v1398_v48 = vmul.f32 %v3707_v31, %v1397_v33  ;;  %1589 = vmatpush.msra.mxu3 %v1557_v7  ;;  %v1550_v33 = vld [vmem:[%s5943_s15 + $0xb0] sm:$0xff] }
 0x8fb   :  { %v1399_v56 = vadd.f32 %v3707_v31, %v1398_v48  ;;  %1590 = vmatpush.msra.mxu3 %v1556_v11  ;;  %v3653_v11 = vld [vmem:[%s5944_s16] ss:$0 sm:$0xff] }
 0x8fd   :  { %1591 = vmatpush.msra.mxu3 %v1555_v16 }
 0x971   :  { %v1339_v14 = vpop.f32.mrf.mxu2 }
 0x972   :  { %3378 = vmatmul.msk.f32.vlgmr.msrb.gmra.mxu3 %vm564_vm1, %v1339_v14 }
 0x979   :  { %v1342_v15 = vpop.f32.mrf.mxu2 }
 0x97a   :  { %3379 = vmatmul.msk.f32.gmra.mxu3 %vm564_vm1, %v1342_v15  ;;  %v1539_v15 = vld [vmem:[%s5943_s15 + $0x58] sm:$0xff] }
 0x97b   :  { %1568 = vmatpush.msra.mxu2 %v1539_v15 }
 0x9f5   :  { %v1371_v19 = vpop.f32.mrf.mxu3 }
 0x9f6   :  { %v1377_v21 = vadd.f32 %v1371_v19, %v1144_v17  ;;  %v1554_v19 = vld [vmem:[%s5943_s15 + $0xd0] sm:$0xff] }
 0x9f7   :  { %1592 = vmatpush.msra.mxu3 %v1554_v19 }
 0x9f8   :  { %v1383_v22 = vadd.f32 %v3650_v18, %v1377_v21 }
 0x9f9   :  { %1593 = vmatpush.msra.mxu3 %v1553_v23 }
 0x9fa   :  { %v1385_v24 = vadd.f32 %v1383_v22, %v4415_v13  ;;  %v4780_v13 = vsel %vm1400_vm2, %v3707_v31, %v1399_v56  ;;  %v1537_v22 = vld [vmem:[%s5943_s15 + $0x48] sm:$0xff] }
 0x9fc   :  { %v1389_v26 = vsel %vm462_vm0, %v1385_v24, 0.0 }
 0x9fd   :  { %1390 = vadd.xlane.f32.xlu2 %v1389_v26  ;;  %v1374_v27 = vpop.f32.mrf.mxu3  ;;  %v1552_v26 = vld [vmem:[%s5943_s15 + $0xc0] sm:$0xff] }
 0x9fe   :  { %v1378_v28 = vadd.f32 %v1374_v27, %v1145_v25  ;;  %v1536_v25 = vld [vmem:[%s5943_s15 + $0x40] sm:$0xff]  ;;  %1594 = vmatpush.msra.mxu3 %v1552_v26 }
 0xa00   :  { %v1384_v47 = vadd.f32 %v3650_v18, %v1378_v28  ;;  %v1538_v18 = vld [vmem:[%s5943_s15 + $0x50] sm:$0xff] }
 0xa01   :  { %1569 = vmatpush.msra.mxu2 %v1538_v18 }
 0xa02   :  { %v1386_v49 = vadd.f32 %v1384_v47, %v4423_v20  ;;  %v1535_v47 = vld [vmem:[%s5943_s15 + $0x38] sm:$0xff] }
 0xa03   :  { %1570 = vmatpush.msra.mxu2 %v1537_v22 }
 0xa04   :  { %v1392_v29 = vsel %vm462_vm0, %v1386_v49, 0.0 }
 0xa05   :  { %1393 = vadd.xlane.f32.xlu0 %v1392_v29  ;;  %v3651_v29 = vld [vmem:[%s5939_s11] ss:$0 sm:$0xff]  ;;  %1571 = vmatpush.msra.mxu2 %v1536_v25 }
 0xa07   :  { %1572 = vmatpush.msra.mxu2 %v1535_v47 }
 0xa09   :  { %1573 = vmatpush.msra.mxu2 %v1534_v32 }
 0xa70   :  { %v1391_v34 = vpop.xlane.xlu2 %1390 }
 0xa71   :  { %v1402_v35 = vmul.f32 %v4780_v13, %v1391_v34 }
 0xa73   :  { %v4783_v36 = vsub.f32 %v1385_v24, %v1402_v35  ;;  %v3652_v35 = vld [vmem:[%s5940_s12] ss:$0 sm:$0xff] }
 0xa75   :  { %v1406_v20 = vmul.f32 %v4783_v36, %v4783_v36 }
 0xa77   :  { %v1408_v37 = vsel %vm462_vm0, %v1406_v20, 0.0  ;;  %v1533_v20 = vld [vmem:[%s5943_s15 + $0x28] sm:$0xff] }
 0xa78   :  { %1409 = vadd.xlane.f32.xlu1 %v1408_v37  ;;  %v1394_v38 = vpop.xlane.xlu0 %1393  ;;  %v1549_v37 = vld [vmem:[%s5943_s15 + $0xa8] sm:$0xff]  ;;  %1574 = vmatpush.msra.mxu2 %v1533_v20  ;;  %v3401_v20 = vld [vmem:[%s5970_s26 + $0x130] sm:$0xff] }
 0xa79   :  { %v1403_v39 = vmul.f32 %v4780_v13, %v1394_v38 }
 0xa7b   :  { %v4789_v40 = vsub.f32 %v1386_v49, %v1403_v39  ;;  %v1551_v49 = vld [vmem:[%s5943_s15 + $0xb8] sm:$0xff] }
 0xa7c   :  { %1595 = vmatpush.msra.mxu3 %v1551_v49 }
 0xa7d   :  { %v1407_v41 = vmul.f32 %v4789_v40, %v4789_v40 }
 0xa7e   :  { %1596 = vmatpush.msra.mxu3 %v1550_v33 }
 0xa7f   :  { %v1411_v42 = vsel %vm462_vm0, %v1407_v41, 0.0  ;;  %v1548_v41 = vld [vmem:[%s5943_s15 + $0xa0] sm:$0xff] }
 0xa80   :  { %1412 = vadd.xlane.f32.xlu2 %v1411_v42  ;;  %1597 = vmatpush.msra.mxu3 %v1549_v37  ;;  %v3431_v37 = vld [vmem:[%s5969_s24 + $0x170] sm:$0xff] }
 0xa82   :  { %1598 = vmatpush.msra.mxu3 %v1548_v41  ;;  %v3388_v41 = vld [vmem:[%s5969_s24 + $0x120] sm:$0xff] }
 0xa84   :  { %1599 = vmatpush.msra.mxu3 %v1547_v45  ;;  %v3398_v45 = vld [vmem:[%s5970_s26 + $0x118] sm:$0xff] }
 0xa86   :  { %1600 = vmatpush.msra.mxu3 %v1546_v58  ;;  %v3426_v58 = vld [vmem:[%s5969_s24 + $0x148] sm:$0xff] }
 0xa88   :  { %1601 = vmatpush.msra.mxu3 %v1545_v59  ;;  %v3395_v59 = vld [vmem:[%s5970_s26 + $0x100] sm:$0xff] }
 0xa8a   :  { %1602 = vmatpush.msra.mxu3 %v1544_v61  ;;  %v3413_v61 = vld [vmem:[%s5971_s3 + $0x138] sm:$0xff] }
 0xaeb   :  { %v1410_v1 = vpop.xlane.xlu1 %1409 }
 0xaec   :  { %v1414_v2 = vmul.f32 %v1410_v1, %v4780_v13 }
 0xaee   :  { %v1416_v3 = vadd.f32 1e-05, %v1414_v2 }
 0xaf0   :  { %3708 = vrsqrt.f32 %v1416_v3  ;;  %vm1424_vm4 = vweird.f32 %v1416_v3 }
 0xaf3   :  { %v1413_v8 = vpop.xlane.xlu2 %1412 }
 0xaf4   :  { %v1415_v9 = vmul.f32 %v1413_v8, %v4780_v13 }
 0xaf6   :  { %v3709_v12 = vpop.eup %3708  ;;  %v1417_v14 = vadd.f32 1e-05, %v1415_v9 }
 0xaf7   :  { %v1419_v17 = vmul.f32 %v3709_v12, %v1416_v3  ;;  %vm1425_vm3 = vweird.f32 %v3709_v12 }
 0xaf8   :  { %3710 = vrsqrt.f32 %v1417_v14  ;;  %vm1426_vm5 = vmor %vm1424_vm4, %vm1425_vm3  ;;  %vm1434_vm7 = vweird.f32 %v1417_v14 }
 0xaf9   :  { %v1420_v21 = vmul.f32 %v3709_v12, %v1419_v17 }
 0xafb   :  { %v1421_v24 = vmul.f32 0.5, %v1420_v21 }
 0xafd   :  { %v1422_v27 = vsub.f32 1.5, %v1421_v24 }
 0xafe   :  { %v3711_v28 = vpop.eup %3710 }
 0xaff   :  { %v1423_v30 = vmul.f32 %v3709_v12, %v1422_v27  ;;  %v1429_v31 = vmul.f32 %v3711_v28, %v1417_v14  ;;  %vm1435_vm6 = vweird.f32 %v3711_v28 }
 0xb00   :  { %vm1436_vm8 = vmor %vm1434_vm7, %vm1435_vm6 }
 0xb01   :  { %v1427_v48 = vsel %vm1426_vm5, %v3709_v12, %v1423_v30  ;;  %v1430_v56 = vmul.f32 %v3711_v28, %v1429_v31 }
 0xb02   :  { %v1438_v34 = vmul.f32 %v1427_v48, %v4783_v36  ;;  %v1532_v36 = vld [vmem:[%s5943_s15 + $0x20] sm:$0xff]  ;;  %v3391_v48 = vld [vmem:[%s5969_s24 + $0x138] sm:$0xff] }
 0xb03   :  { %v1431_v38 = vmul.f32 0.5, %v1430_v56  ;;  %1575 = vmatpush.msra.mxu2 %v1532_v36  ;;  %v3402_v56 = vld [vmem:[%s5970_s26 + $0x138] sm:$0xff]  ;;  %1696 = vmatpush.msrb.mxu0 %v3391_v48  ;;  %v3430_v36 = vld [vmem:[%s5969_s24 + $0x168] sm:$0xff]  ;;  %v3440_v48 = vld [vmem:[%s5970_s26 + $0x160] sm:$0xff] }
 0xb04   :  { %v1443_v39 = vmul.f32 %v3651_v29, %v1438_v34  ;;  %v3432_v34 = vld [vmem:[%s5969_s24 + $0x178] sm:$0xff]  ;;  %1733 = vmatpush.msrb.mxu1 %v3402_v56 }
 0xb05   :  { %v1432_v42 = vsub.f32 1.5, %v1431_v38  ;;  %1576 = vmatpush.msra.mxu2 %v1531_v44  ;;  %1898 = vmatpush.msrb.mxu3 %v3432_v34  ;;  %v3389_v38 = vld [vmem:[%s5969_s24 + $0x128] sm:$0xff]  ;;  %v3387_v44 = vld [vmem:[%s5969_s24 + $0x118] sm:$0xff] }
 0xb06   :  { %v1448_v43 = vadd.f32 %v3652_v35, %v1443_v39  ;;  %1734 = vmatpush.msrb.mxu1 %v3401_v20  ;;  %v3400_v39 = vld [vmem:[%s5970_s26 + $0x128] sm:$0xff]  ;;  %v3439_v34 = vld [vmem:[%s5970_s26 + $0x158] sm:$0xff]  ;;  %v3436_v20 = vld [vmem:[%s5970_s26 + $0x140] sm:$0xff] }
 0xb07   :  { %v1433_v46 = vmul.f32 %v3711_v28, %v1432_v42  ;;  %1577 = vmatpush.msra.mxu2 %v1530_v57  ;;  %1899 = vmatpush.msrb.mxu3 %v3431_v37  ;;  %v3399_v42 = vld [vmem:[%s5970_s26 + $0x120] sm:$0xff]  ;;  %v3396_v57 = vld [vmem:[%s5970_s26 + $0x108] sm:$0xff] }
 0xb08   :  { %3380 = vmatmul.msk.f32.vlgmr.msra.gmra.mxu0 %vm462_vm0, %v1448_v43  ;;  %3382 = vmatmul.msk.f32.vlgmr.msra.gmra.mxu1 %vm462_vm0, %v1448_v43 }
 0xb09   :  { %v1437_v50 = vsel %vm1436_vm8, %v3711_v28, %v1433_v46  ;;  %1735 = vmatpush.msrb.mxu1 %v3400_v39  ;;  %1900 = vmatpush.msrb.mxu3 %v3430_v36  ;;  %v3428_v46 = vld [vmem:[%s5969_s24 + $0x158] sm:$0xff]  ;;  %v3657_v39 = vld [vmem:[%s5935_s7 + $0x4] ss:$0 sm:$0xff] }
 0xb0a   :  { %v1439_v52 = vmul.f32 %v1437_v50, %v4789_v40  ;;  %v1529_v40 = vld [vmem:[%s5943_s15 + $0x8] sm:$0xff]  ;;  %v3386_v50 = vld [vmem:[%s5969_s24 + $0x110] sm:$0xff]  ;;  %v3656_v36 = vld [vmem:[%s5972_s29 + $0x4] ss:$0 sm:$0xff] }
 0xb0b   :  { %1578 = vmatpush.msra.mxu2 %v1529_v40  ;;  %1736 = vmatpush.msrb.mxu1 %v3399_v42  ;;  %v3384_v40 = vld [vmem:[%s5969_s24 + $0x100] sm:$0xff] }
 0xb0c   :  { %v1444_v53 = vmul.f32 %v3651_v29, %v1439_v52  ;;  %v3397_v52 = vld [vmem:[%s5970_s26 + $0x110] sm:$0xff] }
 0xb0d   :  { %1579 = vmatpush.msra.mxu2 %v1528_v60  ;;  %1737 = vmatpush.msrb.mxu1 %v3398_v45  ;;  %v3425_v60 = vld [vmem:[%s5969_s24 + $0x140] sm:$0xff] }
 0xb0e   :  { %v1449_v54 = vadd.f32 %v3652_v35, %v1444_v53  ;;  %v3390_v35 = vld [vmem:[%s5969_s24 + $0x130] sm:$0xff] }
 0xb0f   :  { %1697 = vmatpush.msrb.mxu0 %v3390_v35  ;;  %v3427_v53 = vld [vmem:[%s5969_s24 + $0x150] sm:$0xff]  ;;  %1738 = vmatpush.msrb.mxu1 %v3397_v52  ;;  %v3437_v35 = vld [vmem:[%s5970_s26 + $0x148] sm:$0xff] }
 0xb10   :  { %3381 = vmatmul.msk.f32.gmra.mxu0 %vm462_vm0, %v1449_v54  ;;  %3383 = vmatmul.msk.f32.gmra.mxu1 %vm462_vm0, %v1449_v54 }
 0xb11   :  { %1698 = vmatpush.msrb.mxu0 %v3389_v38  ;;  %1739 = vmatpush.msrb.mxu1 %v3396_v57 }
 0xb13   :  { %1699 = vmatpush.msrb.mxu0 %v3388_v41  ;;  %1740 = vmatpush.msrb.mxu1 %v3395_v59  ;;  %v3659_v59 = vld [vmem:[%s5936_s8 + $0x4] ss:$0 sm:$0xff] }
 0xb15   :  { %1700 = vmatpush.msrb.mxu0 %v3387_v44 }
 0xb17   :  { %1701 = vmatpush.msrb.mxu0 %v3386_v50 }
 0xb85   :  { %v1495_v1 = vpop.f32.mrf.mxu0  ;;  %v1518_v2 = vpop.f32.mrf.mxu1 }
 0xb86   :  { %v1496_v3 = vadd.f32 %v1495_v1, %v1468_v63  ;;  %v1519_v4 = vadd.f32 %v1518_v2, %v1469_v0  ;;  %v3411_v1 = vld [vmem:[%s5971_s3 + $0x128] sm:$0xff] }
 0xb88   :  { %v1524_v51 = vmax.f32 %v1496_v3, 0.0  ;;  %v1525_v5 = vmax.f32 %v1519_v4, 0.0  ;;  %v3410_v3 = vld [vmem:[%s5971_s3 + $0x120] sm:$0xff]  ;;  %v3409_v4 = vld [vmem:[%s5971_s3 + $0x118] sm:$0xff] }
 0xb8a   :  { %1580 = vmatmul.f32.vlgmr.msra.gmra.mxu2 %v1524_v51  ;;  %1603 = vmatmul.f32.vlgmr.msra.gmra.mxu3 %v1525_v5  ;;  %v3408_v51 = vld [vmem:[%s5971_s3 + $0x110] sm:$0xff] }
 0xb8d   :  { %v1498_v55 = vpop.f32.mrf.mxu0  ;;  %v1521_v6 = vpop.f32.mrf.mxu1 }
 0xb8e   :  { %v1499_v7 = vadd.f32 %v1498_v55, %v1468_v63  ;;  %v1522_v8 = vadd.f32 %v1521_v6, %v1469_v0  ;;  %v3412_v63 = vld [vmem:[%s5971_s3 + $0x130] sm:$0xff]  ;;  %v3407_v55 = vld [vmem:[%s5971_s3 + $0x108] sm:$0xff] }
 0xb90   :  { %v1526_v9 = vmax.f32 %v1499_v7, 0.0  ;;  %v1527_v10 = vmax.f32 %v1522_v8, 0.0  ;;  %v3406_v7 = vld [vmem:[%s5971_s3 + $0x100] sm:$0xff] }
 0xb92   :  { %1583 = vmatmul.f32.gmra.mxu2 %v1526_v9  ;;  %1606 = vmatmul.f32.gmra.mxu3 %v1527_v10 }
 0xc0d   :  { %v1581_v12 = vpop.f32.mrf.mxu2  ;;  %v1604_v14 = vpop.f32.mrf.mxu3 }
 0xc0e   :  { %v1582_v15 = vadd.f32 %v3653_v11, %v1581_v12 }
 0xc10   :  { %v1605_v16 = vadd.f32 %v1604_v14, %v1582_v15 }
 0xc12   :  { %v1610_v17 = vadd.f32 %v1605_v16, %v1448_v43  ;;  %v3429_v43 = vld [vmem:[%s5969_s24 + $0x160] sm:$0xff] }
 0xc13   :  { %1901 = vmatpush.msrb.mxu3 %v3429_v43 }
 0xc14   :  { %v1614_v18 = vsel %vm462_vm0, %v1610_v17, 0.0 }
 0xc15   :  { %1615 = vadd.xlane.f32.xlu0 %v1614_v18  ;;  %v1584_v19 = vpop.f32.mrf.mxu2  ;;  %v1607_v22 = vpop.f32.mrf.mxu3  ;;  %1902 = vmatpush.msrb.mxu3 %v3428_v46  ;;  %v3654_v18 = vld [vmem:[%s5974_s23] ss:$0 sm:$0xff]  ;;  %v3454_v46 = vld [vmem:[%s5971_s3 + $0x178] sm:$0xff] }
 0xc16   :  { %v1585_v21 = vadd.f32 %v3653_v11, %v1584_v19 }
 0xc17   :  { %1903 = vmatpush.msrb.mxu3 %v3427_v53  ;;  %v3453_v53 = vld [vmem:[%s5971_s3 + $0x170] sm:$0xff] }
 0xc18   :  { %v1608_v23 = vadd.f32 %v1607_v22, %v1585_v21  ;;  %v3655_v22 = vld [vmem:[%s5946_s18] ss:$0 sm:$0xff] }
 0xc19   :  { %1904 = vmatpush.msrb.mxu3 %v3426_v58  ;;  %v3451_v58 = vld [vmem:[%s5971_s3 + $0x160] sm:$0xff] }
 0xc1a   :  { %v1611_v24 = vadd.f32 %v1608_v23, %v1449_v54  ;;  %v3385_v54 = vld [vmem:[%s5969_s24 + $0x108] sm:$0xff] }
 0xc1b   :  { %1702 = vmatpush.msrb.mxu0 %v3385_v54  ;;  %1905 = vmatpush.msrb.mxu3 %v3425_v60  ;;  %v3452_v54 = vld [vmem:[%s5971_s3 + $0x168] sm:$0xff] }
 0xc1c   :  { %v1617_v25 = vsel %vm462_vm0, %v1611_v24, 0.0 }
 0xc1d   :  { %1618 = vadd.xlane.f32.xlu1 %v1617_v25  ;;  %1703 = vmatpush.msrb.mxu0 %v3384_v40  ;;  %v3450_v40 = vld [vmem:[%s5971_s3 + $0x158] sm:$0xff] }
 0xc1f   :  { %1770 = vmatpush.msra.mxu0 %v3413_v61 }
 0xc21   :  { %1771 = vmatpush.msra.mxu0 %v3412_v63 }
 0xc23   :  { %1772 = vmatpush.msra.mxu0 %v3411_v1 }
 0xc25   :  { %1773 = vmatpush.msra.mxu0 %v3410_v3 }
 0xc27   :  { %1774 = vmatpush.msra.mxu0 %v3409_v4  ;;  %v3660_v4 = vld [vmem:[%s5935_s7 + $0x5] ss:$0 sm:$0xff] }
 0xc29   :  { %1775 = vmatpush.msra.mxu0 %v3408_v51 }
 0xc2b   :  { %1776 = vmatpush.msra.mxu0 %v3407_v55 }
 0xc2d   :  { %1777 = vmatpush.msra.mxu0 %v3406_v7  ;;  %v5175_v7 = vld [vmem:[%s5973_s2] sm:$0xff] }
 0xc88   :  { %v1616_v26 = vpop.xlane.xlu0 %1615 }
 0xc89   :  { %v1620_v27 = vmul.f32 %v1616_v26, %v4780_v13 }
 0xc8b   :  { %v4961_v28 = vsub.f32 %v1610_v17, %v1620_v27 }
 0xc8d   :  { %v1624_v47 = vmul.f32 %v4961_v28, %v4961_v28 }
 0xc8f   :  { %v1626_v49 = vsel %vm462_vm0, %v1624_v47, 0.0  ;;  %v3443_v47 = vld [vmem:[%s5970_s26 + $0x178] sm:$0xff] }
 0xc90   :  { %v1619_v29 = vpop.xlane.xlu1 %1618  ;;  %1627 = vadd.xlane.f32.xlu2 %v1626_v49 }
 0xc91   :  { %v1621_v30 = vmul.f32 %v1619_v29, %v4780_v13 }
 0xc93   :  { %v4967_v31 = vsub.f32 %v1611_v24, %v1621_v30 }
 0xc95   :  { %v1625_v32 = vmul.f32 %v4967_v31, %v4967_v31 }
 0xc97   :  { %v1629_v33 = vsel %vm462_vm0, %v1625_v32, 0.0  ;;  %v3441_v32 = vld [vmem:[%s5970_s26 + $0x168] sm:$0xff] }
 0xc98   :  { %1630 = vadd.xlane.f32.xlu0 %v1629_v33 }
 0xd03   :  { %v1628_v62 = vpop.xlane.xlu2 %1627 }
 0xd04   :  { %v1632_v0 = vmul.f32 %v1628_v62, %v4780_v13  ;;  %v3449_v62 = vld [vmem:[%s5971_s3 + $0x150] sm:$0xff] }
 0xd06   :  { %v1634_v2 = vadd.f32 1e-05, %v1632_v0  ;;  %v3448_v0 = vld [vmem:[%s5971_s3 + $0x148] sm:$0xff] }
 0xd08   :  { %3712 = vrsqrt.f32 %v1634_v2  ;;  %vm1642_vm10 = vweird.f32 %v1634_v2 }
 0xd0b   :  { %v1631_v5 = vpop.xlane.xlu0 %1630 }
 0xd0c   :  { %v1633_v6 = vmul.f32 %v1631_v5, %v4780_v13 }
 0xd0e   :  { %v3713_v8 = vpop.eup %3712  ;;  %v1635_v9 = vadd.f32 1e-05, %v1633_v6 }
 0xd0f   :  { %v1637_v10 = vmul.f32 %v3713_v8, %v1634_v2  ;;  %vm1643_vm9 = vweird.f32 %v3713_v8  ;;  %v3447_v2 = vld [vmem:[%s5971_s3 + $0x140] sm:$0xff] }
 0xd10   :  { %3714 = vrsqrt.f32 %v1635_v9  ;;  %vm1644_vm11 = vmor %vm1642_vm10, %vm1643_vm9  ;;  %vm1652_vm13 = vweird.f32 %v1635_v9 }
 0xd11   :  { %v1638_v11 = vmul.f32 %v3713_v8, %v1637_v10 }
 0xd13   :  { %v1639_v12 = vmul.f32 0.5, %v1638_v11  ;;  %v5182_v11 = vld [vmem:[%s5973_s2 + $0x8] sm:$0xff] }
 0xd15   :  { %v1640_v14 = vsub.f32 1.5, %v1639_v12 }
 0xd16   :  { %v3715_v15 = vpop.eup %3714 }
 0xd17   :  { %v1641_v16 = vmul.f32 %v3713_v8, %v1640_v14  ;;  %v1647_v17 = vmul.f32 %v3715_v15, %v1635_v9  ;;  %vm1653_vm12 = vweird.f32 %v3715_v15 }
 0xd18   :  { %vm1654_vm14 = vmor %vm1652_vm13, %vm1653_vm12 }
 0xd19   :  { %v1645_v19 = vsel %vm1644_vm11, %v3713_v8, %v1641_v16  ;;  %v1648_v21 = vmul.f32 %v3715_v15, %v1647_v17  ;;  %v3661_v16 = vld [vmem:[%s5936_s8 + $0x5] ss:$0 sm:$0xff] }
 0xd1a   :  { %v1656_v23 = vmul.f32 %v1645_v19, %v4961_v28  ;;  %v3442_v28 = vld [vmem:[%s5970_s26 + $0x170] sm:$0xff] }
 0xd1b   :  { %v1649_v24 = vmul.f32 0.5, %v1648_v21 }
 0xd1c   :  { %v1661_v25 = vmul.f32 %v3654_v18, %v1656_v23 }
 0xd1d   :  { %v1650_v26 = vsub.f32 1.5, %v1649_v24 }
 0xd1e   :  { %v5077_v27 = vadd.f32 %v3655_v22, %v1661_v25 }
 0xd1f   :  { %v1651_v49 = vmul.f32 %v3715_v15, %v1650_v26 }
 0xd20   :  { %3393 = vmatmul.msk.f32.vlgmr.msrb.gmra.mxu0 %vm462_vm0, %v5077_v27  ;;  %3404 = vmatmul.msk.f32.vlgmr.msrb.gmra.mxu1 %vm462_vm0, %v5077_v27 }
 0xd21   :  { %v1655_v29 = vsel %vm1654_vm14, %v3715_v15, %v1651_v49  ;;  %3434 = vmatmul.msk.f32.vlgmr.msrb.gmra.mxu3 %vm462_vm0, %v5077_v27  ;;  %1935 = vmatpush.msrb.mxu0 %v3443_v47 }
 0xd22   :  { %v1657_v30 = vmul.f32 %v1655_v29, %v4967_v31  ;;  %v3438_v31 = vld [vmem:[%s5970_s26 + $0x150] sm:$0xff] }
 0xd23   :  { %1936 = vmatpush.msrb.mxu0 %v3442_v28 }
 0xd24   :  { %v1662_v33 = vmul.f32 %v3654_v18, %v1657_v30 }
 0xd25   :  { %1937 = vmatpush.msrb.mxu0 %v3441_v32 }
 0xd26   :  { %v5098_v56 = vadd.f32 %v3655_v22, %v1662_v33 }
 0xd27   :  { %1938 = vmatpush.msrb.mxu0 %v3440_v48 }
 0xd28   :  { %3394 = vmatmul.msk.f32.gmra.mxu0 %vm462_vm0, %v5098_v56  ;;  %3405 = vmatmul.msk.f32.gmra.mxu1 %vm462_vm0, %v5098_v56 }
 0xd29   :  { %3435 = vmatmul.msk.f32.gmra.mxu3 %vm462_vm0, %v5098_v56  ;;  %1939 = vmatpush.msrb.mxu0 %v3439_v34  ;;  %v3477_v34 = vld [vmem:[%s5969_s24 + $0x1b8] sm:$0xff] }
 0xd2b   :  { %1940 = vmatpush.msrb.mxu0 %v3438_v31  ;;  %v3476_v31 = vld [vmem:[%s5969_s24 + $0x1b0] sm:$0xff] }
 0xd2d   :  { %1941 = vmatpush.msrb.mxu0 %v3437_v35  ;;  %v3475_v35 = vld [vmem:[%s5969_s24 + $0x1a8] sm:$0xff] }
 0xd2f   :  { %1942 = vmatpush.msrb.mxu0 %v3436_v20  ;;  %v3474_v20 = vld [vmem:[%s5969_s24 + $0x1a0] sm:$0xff] }
 0xd30   :  { %3415 = vmatmul.msk.f32.vlgmr.msra.gmra.mxu0 %vm462_vm0, %v5077_v27 }
 0xd38   :  { %3416 = vmatmul.msk.f32.gmra.mxu0 %vm462_vm0, %v5098_v56 }
 0xd40   :  { %3445 = vmatmul.msk.f32.vlgmr.msrb.gmra.mxu0 %vm462_vm0, %v5077_v27 }
 0xd48   :  { %3446 = vmatmul.msk.f32.gmra.mxu0 %vm462_vm0, %v5098_v56 }
 0xd9d   :  { %v1705_v37 = vpop.f32.mrf.mxu0  ;;  %v1742_v38 = vpop.f32.mrf.mxu1 }
 0xd9e   :  { %v1706_v44 = vadd.f32 %v3656_v36, %v1705_v37  ;;  %v1743_v45 = vadd.f32 %v3657_v39, %v1742_v38 }
 0xda0   :  { %v1785_v50 = vmul.f32 0.25, %v1706_v44 }
 0xda4   :  { %v1907_v38 = vpop.f32.mrf.mxu3 }
 0xda5   :  { %v1708_v41 = vpop.f32.mrf.mxu0  ;;  %v1745_v42 = vpop.f32.mrf.mxu1 }
 0xda6   :  { %v1746_v43 = vadd.f32 %v3657_v39, %v1745_v42  ;;  %v1709_v57 = vadd.f32 %v3656_v36, %v1708_v41  ;;  %v3658_v39 = vld [vmem:[%s5972_s29 + $0x5] ss:$0 sm:$0xff]  ;;  %v3473_v41 = vld [vmem:[%s5969_s24 + $0x198] sm:$0xff]  ;;  %v3472_v42 = vld [vmem:[%s5969_s24 + $0x190] sm:$0xff] }
 0xda7   :  { %v1908_v44 = vadd.f32 %v3658_v39, %v1907_v38  ;;  %v3518_v38 = vld [vmem:[%s5969_s24 + $0x1e8] sm:$0xff] }
 0xda8   :  { %3417 = vmatpush.xpose.msk.msra.mxu1 %vm564_vm1, %v1746_v43  ;;  %v1786_v60 = vmul.f32 0.25, %v1709_v57  ;;  %v3424_v43 = vld [vmem:[%s5937_s9 + $0x48] sm:$0xff]  ;;  %v3423_v57 = vld [vmem:[%s5937_s9 + $0x40] sm:$0xff] }
 0xdac   :  { %3418 = vmatpush.xpose.msk.msra.mxu1 %vm564_vm1, %v1743_v45  ;;  %v3471_v45 = vld [vmem:[%s5969_s24 + $0x188] sm:$0xff] }
 0xdad   :  { %v1779_v52 = vpop.f32.mrf.mxu0 }
 0xdae   :  { %v1780_v1 = vadd.f32 %v3659_v59, %v1779_v52  ;;  %v1910_v52 = vpop.f32.mrf.mxu3 }
 0xdaf   :  { %3419 = vmatmul.msk.f32.vlgmr.msra.gmra.mxu1 %vm564_vm1, %v1785_v50  ;;  %v1987_v50 = vmul.f32 0.25, %v1908_v44  ;;  %v3513_v44 = vld [vmem:[%s5969_s24 + $0x1c0] sm:$0xff] }
 0xdb0   :  { %1972 = vmatpush.msrb.mxu1 %v3454_v46  ;;  %v3470_v46 = vld [vmem:[%s5969_s24 + $0x180] sm:$0xff] }
 0xdb2   :  { %1973 = vmatpush.msrb.mxu1 %v3453_v53  ;;  %v1911_v53 = vadd.f32 %v3658_v39, %v1910_v52  ;;  %v3517_v39 = vld [vmem:[%s5969_s24 + $0x1e0] sm:$0xff] }
 0xdb3   :  { %v3662_v52 = vld [vmem:[%s5972_s29 + $0x6] ss:$0 sm:$0xff] }
 0xdb4   :  { %1974 = vmatpush.msrb.mxu1 %v3452_v54  ;;  %v1988_v54 = vmul.f32 0.25, %v1911_v53 }
 0xdb5   :  { %v1782_v61 = vpop.f32.mrf.mxu0 }
 0xdb6   :  { %1975 = vmatpush.msrb.mxu1 %v3451_v58  ;;  %v1783_v63 = vadd.f32 %v3659_v59, %v1782_v61 }
 0xdb7   :  { %3420 = vmatmul.msk.f32.gmra.mxu1 %vm564_vm1, %v1786_v60 }
 0xdb8   :  { %1976 = vmatpush.msrb.mxu1 %v3450_v40  ;;  %1864 = vmatpush.msrb.mxu2 %v1783_v63 }
 0xdba   :  { %1977 = vmatpush.msrb.mxu1 %v3449_v62  ;;  %1865 = vmatpush.msrb.mxu2 %v1780_v1 }
 0xdbc   :  { %1978 = vmatpush.msrb.mxu1 %v3448_v0 }
 0xdbd   :  { %v1944_v3 = vpop.f32.mrf.mxu0 }
 0xdbe   :  { %1979 = vmatpush.msrb.mxu1 %v3447_v2  ;;  %v1945_v55 = vadd.f32 %v3660_v4, %v1944_v3 }
 0xdbf   :  { %3456 = vmatmul.msk.f32.vlgmr.msrb.gmra.mxu1 %vm462_vm0, %v5077_v27 }
 0xdc0   :  { %2127 = vmatpush.msra.mxu1 %v3424_v43  ;;  %v3514_v43 = vld [vmem:[%s5969_s24 + $0x1c8] sm:$0xff] }
 0xdc2   :  { %2128 = vmatpush.msra.mxu1 %v3423_v57 }
 0xdc5   :  { %v1947_v51 = vpop.f32.mrf.mxu0 }
 0xdc6   :  { %v1948_v5 = vadd.f32 %v3660_v4, %v1947_v51 }
 0xdc7   :  { %3457 = vmatmul.msk.f32.gmra.mxu1 %vm462_vm0, %v5098_v56 }
 0xdc8   :  { %3458 = vmatpush.xpose.msk.msra.mxu2 %vm564_vm1, %v1948_v5 }
 0xdcc   :  { %3459 = vmatpush.xpose.msk.msra.mxu2 %vm564_vm1, %v1945_v55 }
 0xe2c   :  { %v1816_v6 = vpop.f32.mrf.mxu1 }
 0xe2d   :  { %v1817_v8 = vadd.f32 %v5175_v7, %v1816_v6 }
 0xe2f   :  { %v1822_v9 = vsel %vm564_vm1, %v1817_v8, -inf }
 0xe30   :  { %1823 = vmax.xlane.f32.xlu1 %v1822_v9 }
 0xe34   :  { %v1819_v10 = vpop.f32.mrf.mxu1 }
 0xe35   :  { %v1820_v12 = vadd.f32 %v5182_v11, %v1819_v10  ;;  %v3488_v10 = vld [vmem:[%s5970_s26 + $0x1b8] sm:$0xff] }
 0xe37   :  { %v1825_v14 = vsel %vm564_vm1, %v1820_v12, -inf }
 0xe38   :  { %1826 = vmax.xlane.f32.xlu2 %v1825_v14  ;;  %v3486_v14 = vld [vmem:[%s5970_s26 + $0x1a8] sm:$0xff] }
 0xe3c   :  { %v1981_v15 = vpop.f32.mrf.mxu1 }
 0xe3d   :  { %v1982_v19 = vadd.f32 %v3661_v16, %v1981_v15  ;;  %v3485_v15 = vld [vmem:[%s5970_s26 + $0x1a0] sm:$0xff] }
 0xe44   :  { %v1984_v17 = vpop.f32.mrf.mxu1 }
 0xe45   :  { %v1985_v18 = vadd.f32 %v3661_v16, %v1984_v17  ;;  %v3484_v16 = vld [vmem:[%s5970_s26 + $0x198] sm:$0xff]  ;;  %v3483_v17 = vld [vmem:[%s5970_s26 + $0x190] sm:$0xff] }
 0xe47   :  { %2066 = vmatpush.msra.mxu3 %v1985_v18  ;;  %v3482_v18 = vld [vmem:[%s5970_s26 + $0x188] sm:$0xff] }
 0xe49   :  { %2067 = vmatpush.msra.mxu3 %v1982_v19  ;;  %v3481_v19 = vld [vmem:[%s5970_s26 + $0x180] sm:$0xff] }
 0xe4b   :  { %2195 = vmatpush.msrb.mxu3 %v3488_v10 }
 0xea3   :  { %v1824_v21 = vpop.xlane.xlu1 %1823 }
 0xea4   :  { %v1828_v22 = vsub.f32 %v1817_v8, %v1824_v21 }
 0xea6   :  { %v1830_v23 = vmul.f32 1.442695, %v1828_v22  ;;  %v3465_v22 = vld [vmem:[%s5937_s9 + $0x58] sm:$0xff] }
 0xea7   :  { %2098 = vmatpush.msra.mxu0 %v3465_v22 }
 0xea8   :  { %3716 = vpow2.f32 %v1830_v23 }
 0xeab   :  { %v1827_v24 = vpop.xlane.xlu2 %1826 }
 0xeac   :  { %v1829_v25 = vsub.f32 %v1820_v12, %v1827_v24  ;;  %v3487_v12 = vld [vmem:[%s5970_s26 + $0x1b0] sm:$0xff] }
 0xead   :  { %2196 = vmatpush.msrb.mxu3 %v3487_v12  ;;  %v3510_v12 = vld [vmem:[%s5937_s9 + $0x68] sm:$0xff] }
 0xeae   :  { %v3717_v26 = vpop.eup %3716  ;;  %v1832_v47 = vmul.f32 1.442695, %v1829_v25 }
 0xeaf   :  { %v1834_v49 = vsel %vm564_vm1, %v3717_v26, 0.0  ;;  %2197 = vmatpush.msrb.mxu3 %v3486_v14  ;;  %v3664_v14 = vld [vmem:[%s5936_s8 + $0x6] ss:$0 sm:$0xff] }
 0xeb0   :  { %3718 = vpow2.f32 %v1832_v47  ;;  %1835 = vadd.xlane.f32.xlu0 %v1834_v49  ;;  %v3464_v49 = vld [vmem:[%s5937_s9 + $0x50] sm:$0xff] }
 0xeb1   :  { %2198 = vmatpush.msrb.mxu3 %v3485_v15  ;;  %2099 = vmatpush.msra.mxu0 %v3464_v49 }
 0xeb3   :  { %2199 = vmatpush.msrb.mxu3 %v3484_v16 }
 0xeb5   :  { %2200 = vmatpush.msrb.mxu3 %v3483_v17  ;;  %v3509_v17 = vld [vmem:[%s5937_s9 + $0x60] sm:$0xff] }
 0xeb6   :  { %v3719_v28 = vpop.eup %3718 }
 0xeb7   :  { %v1837_v29 = vsel %vm564_vm1, %v3719_v28, 0.0  ;;  %2201 = vmatpush.msrb.mxu3 %v3482_v18 }
 0xeb8   :  { %1838 = vadd.xlane.f32.xlu1 %v1837_v29  ;;  %v3498_v29 = vld [vmem:[%s5971_s3 + $0x1b0] sm:$0xff] }
 0xeb9   :  { %2202 = vmatpush.msrb.mxu3 %v3481_v19 }
 0xf23   :  { %v1836_v30 = vpop.xlane.xlu0 %1835 }
 0xf24   :  { %3720 = vrcp.f32 %v1836_v30  ;;  %v3497_v30 = vld [vmem:[%s5971_s3 + $0x1a8] sm:$0xff] }
 0xf2a   :  { %v3721_v32 = vpop.eup %3720 }
 0xf2b   :  { %v1842_v33 = vmul.f32 %v3721_v32, %v3717_v26  ;;  %v1839_v48 = vpop.xlane.xlu1 %1838  ;;  %v3496_v32 = vld [vmem:[%s5971_s3 + $0x1a0] sm:$0xff] }
 0xf2c   :  { %3722 = vrcp.f32 %v1839_v48  ;;  %v3494_v48 = vld [vmem:[%s5971_s3 + $0x190] sm:$0xff] }
 0xf2d   :  { %3421 = vmatmul.msk.f32.vlgmr.msrb.gmra.mxu2 %vm564_vm1, %v1842_v33  ;;  %v3495_v33 = vld [vmem:[%s5971_s3 + $0x198] sm:$0xff] }
 0xf2e   :  { %2158 = vmatpush.msrb.mxu2 %v3477_v34  ;;  %v3493_v34 = vld [vmem:[%s5971_s3 + $0x188] sm:$0xff] }
 0xf30   :  { %2159 = vmatpush.msrb.mxu2 %v3476_v31  ;;  %v3492_v31 = vld [vmem:[%s5971_s3 + $0x180] sm:$0xff] }
 0xf32   :  { %v3723_v37 = vpop.eup %3722  ;;  %2160 = vmatpush.msrb.mxu2 %v3475_v35  ;;  %v3520_v35 = vld [vmem:[%s5969_s24 + $0x1f8] sm:$0xff] }
 0xf33   :  { %v1843_v36 = vmul.f32 %v3723_v37, %v3719_v28  ;;  %v3499_v28 = vld [vmem:[%s5971_s3 + $0x1b8] sm:$0xff]  ;;  %v3519_v37 = vld [vmem:[%s5969_s24 + $0x1f0] sm:$0xff] }
 0xf34   :  { %2161 = vmatpush.msrb.mxu2 %v3474_v20  ;;  %2232 = vmatpush.msrb.mxu0 %v3499_v28 }
 0xf35   :  { %3422 = vmatmul.msk.f32.gmra.mxu2 %vm564_vm1, %v1843_v36  ;;  %v3516_v36 = vld [vmem:[%s5969_s24 + $0x1d8] sm:$0xff] }
 0xf36   :  { %2162 = vmatpush.msrb.mxu2 %v3473_v41  ;;  %2233 = vmatpush.msrb.mxu0 %v3498_v29 }
 0xf38   :  { %2163 = vmatpush.msrb.mxu2 %v3472_v42  ;;  %2234 = vmatpush.msrb.mxu0 %v3497_v30  ;;  %v3515_v42 = vld [vmem:[%s5969_s24 + $0x1d0] sm:$0xff] }
 0xf3a   :  { %2164 = vmatpush.msrb.mxu2 %v3471_v45  ;;  %2235 = vmatpush.msrb.mxu0 %v3496_v32 }
 0xf3c   :  { %2165 = vmatpush.msrb.mxu2 %v3470_v46  ;;  %2236 = vmatpush.msrb.mxu0 %v3495_v33 }
 0xf3d   :  { %3460 = vmatmul.msk.f32.vlgmr.msra.gmra.mxu2 %vm564_vm1, %v1987_v50  ;;  %v3663_v50 = vld [vmem:[%s5935_s7 + $0x6] ss:$0 sm:$0xff] }
 0xf3e   :  { %2237 = vmatpush.msrb.mxu0 %v3494_v48 }
 0xf40   :  { %2238 = vmatpush.msrb.mxu0 %v3493_v34 }
 0xf42   :  { %2239 = vmatpush.msrb.mxu0 %v3492_v31 }
 0xf45   :  { %3461 = vmatmul.msk.f32.gmra.mxu2 %vm564_vm1, %v1988_v54 }
 0xf4d   :  { %3479 = vmatmul.msk.f32.vlgmr.msrb.gmra.mxu2 %vm462_vm0, %v5077_v27 }
 0xf55   :  { %3480 = vmatmul.msk.f32.gmra.mxu2 %vm462_vm0, %v5098_v56 }
 0xfb0   :  { %v1867_v58 = vpop.f32.mrf.mxu2 }
 0xfb1   :  { %3468 = vmatmul.msk.f32.vlgmr.msra.gmra.mxu1 %vm564_vm1, %v1867_v58 }
 0xfb8   :  { %v1870_v40 = vpop.f32.mrf.mxu2 }
 0xfb9   :  { %3469 = vmatmul.msk.f32.gmra.mxu1 %vm564_vm1, %v1870_v40  ;;  %v3531_v40 = vld [vmem:[%s5970_s26 + $0x1f8] sm:$0xff] }
 0xfc0   :  { %v2018_v59 = vpop.f32.mrf.mxu2 }
 0xfc1   :  { %v2019_v60 = vadd.f32 %v5175_v7, %v2018_v59 }
 0xfc3   :  { %v2024_v61 = vsel %vm564_vm1, %v2019_v60, -inf }
 0xfc4   :  { %2025 = vmax.xlane.f32.xlu2 %v2024_v61 }
 0xfc8   :  { %v2021_v62 = vpop.f32.mrf.mxu2 }
 0xfc9   :  { %v2022_v63 = vadd.f32 %v5182_v11, %v2021_v62  ;;  %v3529_v62 = vld [vmem:[%s5970_s26 + $0x1e8] sm:$0xff] }
 0xfcb   :  { %v2027_v0 = vsel %vm564_vm1, %v2022_v63, -inf }
 0xfcc   :  { %2028 = vmax.xlane.f32.xlu0 %v2027_v0  ;;  %v3528_v0 = vld [vmem:[%s5970_s26 + $0x1e0] sm:$0xff] }
 0xfd0   :  { %v2167_v46 = vpop.f32.mrf.mxu2 }
 0xfd1   :  { %v2168_v57 = vadd.f32 %v3662_v52, %v2167_v46  ;;  %v3535_v46 = vld [vmem:[%s5971_s3 + $0x1c0] sm:$0xff] }
 0xfd3   :  { %v2247_v59 = vmul.f32 0.25, %v2168_v57 }
 0xfd8   :  { %v2170_v61 = vpop.f32.mrf.mxu2 }
0x1037   :  { %v2026_v1 = vpop.xlane.xlu2 %2025 }
0x1038   :  { %v2030_v2 = vsub.f32 %v2019_v60, %v2026_v1  ;;  %v3530_v60 = vld [vmem:[%s5970_s26 + $0x1f0] sm:$0xff]  ;;  %v3527_v1 = vld [vmem:[%s5970_s26 + $0x1d8] sm:$0xff] }
0x103a   :  { %v2032_v3 = vmul.f32 1.442695, %v2030_v2 }
0x103c   :  { %3724 = vpow2.f32 %v2032_v3  ;;  %v3526_v3 = vld [vmem:[%s5970_s26 + $0x1d0] sm:$0xff] }
0x103f   :  { %v2029_v4 = vpop.xlane.xlu0 %2028 }
0x1040   :  { %v2031_v51 = vsub.f32 %v2022_v63, %v2029_v4  ;;  %v2171_v63 = vadd.f32 %v3662_v52, %v2170_v61  ;;  %v3525_v4 = vld [vmem:[%s5970_s26 + $0x1c8] sm:$0xff] }
0x1042   :  { %v3725_v5 = vpop.eup %3724  ;;  %v2034_v55 = vmul.f32 1.442695, %v2031_v51  ;;  %v2248_v2 = vmul.f32 0.25, %v2171_v63  ;;  %v3524_v51 = vld [vmem:[%s5970_s26 + $0x1c0] sm:$0xff] }
0x1043   :  { %v2036_v6 = vsel %vm564_vm1, %v3725_v5, 0.0 }
0x1044   :  { %3726 = vpow2.f32 %v2034_v55  ;;  %2037 = vadd.xlane.f32.xlu1 %v2036_v6 }
0x104a   :  { %v3727_v8 = vpop.eup %3726 }
0x104b   :  { %v2039_v9 = vsel %vm564_vm1, %v3727_v8, 0.0 }
0x104c   :  { %2040 = vadd.xlane.f32.xlu2 %v2039_v9 }
0x10b7   :  { %v2038_v21 = vpop.xlane.xlu1 %2037 }
0x10b8   :  { %3728 = vrcp.f32 %v2038_v21 }
0x10be   :  { %v3729_v23 = vpop.eup %3728 }
0x10bf   :  { %v2044_v24 = vmul.f32 %v3729_v23, %v3725_v5  ;;  %v2041_v25 = vpop.xlane.xlu2 %2040  ;;  %v5372_v5 = vpop.f32.mrf.mxu1 }
0x10c0   :  { %3730 = vrcp.f32 %v2041_v25 }
0x10c1   :  { %3462 = vmatmul.msk.f32.vlgmr.msra.gmra.mxu3 %vm564_vm1, %v2044_v24 }
0x10c2   :  { %2358 = vmatpush.msra.mxu3 %v3510_v12 }
0x10c4   :  { %2359 = vmatpush.msra.mxu3 %v3509_v17 }
0x10c6   :  { %v3731_v26 = vpop.eup %3730 }
0x10c7   :  { %v2045_v47 = vmul.f32 %v3731_v26, %v3727_v8  ;;  %v2133_v6 = vpop.f32.mrf.mxu1 }
0x10c9   :  { %3463 = vmatmul.msk.f32.gmra.mxu3 %vm564_vm1, %v2045_v47  ;;  %v3666_v47 = vld [vmem:[%s5935_s7 + $0x7] ss:$0 sm:$0xff] }
0x10d1   :  { %3490 = vmatmul.msk.f32.vlgmr.msrb.gmra.mxu3 %vm462_vm0, %v5077_v27 }
0x10d9   :  { %3491 = vmatmul.msk.f32.gmra.mxu3 %vm462_vm0, %v5098_v56 }
0x1144   :  { %v2069_v20 = vpop.f32.mrf.mxu3 }
0x1145   :  { %3466 = vmatmul.msk.f32.vlgmr.msra.gmra.mxu0 %vm564_vm1, %v2069_v20 }
0x1146   :  { %2391 = vmatpush.msra.mxu0 %v3520_v35 }
0x1148   :  { %2392 = vmatpush.msra.mxu0 %v3519_v37 }
0x114a   :  { %2393 = vmatpush.msra.mxu0 %v3518_v38 }
0x114c   :  { %v2072_v41 = vpop.f32.mrf.mxu3  ;;  %2394 = vmatpush.msra.mxu0 %v3517_v39  ;;  %v3542_v39 = vld [vmem:[%s5971_s3 + $0x1f8] sm:$0xff] }
0x114d   :  { %3467 = vmatmul.msk.f32.gmra.mxu0 %vm564_vm1, %v2072_v41  ;;  %v3540_v41 = vld [vmem:[%s5971_s3 + $0x1e8] sm:$0xff] }
0x114e   :  { %2395 = vmatpush.msra.mxu0 %v3516_v36  ;;  %v3541_v36 = vld [vmem:[%s5971_s3 + $0x1f0] sm:$0xff] }
0x1150   :  { %2396 = vmatpush.msra.mxu0 %v3515_v42  ;;  %v3539_v42 = vld [vmem:[%s5971_s3 + $0x1e0] sm:$0xff] }
0x1152   :  { %2397 = vmatpush.msra.mxu0 %v3514_v43  ;;  %v3538_v43 = vld [vmem:[%s5971_s3 + $0x1d8] sm:$0xff] }
0x1154   :  { %v2204_v45 = vpop.f32.mrf.mxu3  ;;  %2398 = vmatpush.msra.mxu0 %v3513_v44  ;;  %v3537_v44 = vld [vmem:[%s5971_s3 + $0x1d0] sm:$0xff] }
0x1155   :  { %3501 = vmatmul.msk.f32.vlgmr.msrb.gmra.mxu0 %vm462_vm0, %v5077_v27  ;;  %v2205_v58 = vadd.f32 %v3663_v50, %v2204_v45  ;;  %v3536_v45 = vld [vmem:[%s5971_s3 + $0x1c8] sm:$0xff] }
0x115c   :  { %v2207_v53 = vpop.f32.mrf.mxu3 }
0x115d   :  { %v2208_v54 = vadd.f32 %v3663_v50, %v2207_v53  ;;  %3502 = vmatmul.msk.f32.gmra.mxu0 %vm462_vm0, %v5098_v56 }
0x115f   :  { %3503 = vmatpush.xpose.msk.msrb.mxu1 %vm564_vm1, %v2208_v54 }
0x1163   :  { %3504 = vmatpush.xpose.msk.msrb.mxu1 %vm564_vm1, %v2205_v58 }
0x1165   :  { %3522 = vmatmul.msk.f32.vlgmr.msra.gmra.mxu0 %vm462_vm0, %v5077_v27 }
0x1166   :  { %3505 = vmatmul.msk.f32.vlgmr.msrb.gmra.mxu1 %vm564_vm1, %v2247_v59 }
0x1167   :  { %2428 = vmatpush.msra.mxu1 %v3531_v40 }
0x1169   :  { %2429 = vmatpush.msra.mxu1 %v3530_v60  ;;  %v3665_v60 = vld [vmem:[%s5972_s29 + $0x7] ss:$0 sm:$0xff] }
0x116b   :  { %2430 = vmatpush.msra.mxu1 %v3529_v62 }
0x116d   :  { %2431 = vmatpush.msra.mxu1 %v3528_v0  ;;  %3523 = vmatmul.msk.f32.gmra.mxu0 %vm462_vm0, %v5098_v56 }
0x116e   :  { %3506 = vmatmul.msk.f32.gmra.mxu1 %vm564_vm1, %v2248_v2 }
0x116f   :  { %2432 = vmatpush.msra.mxu1 %v3527_v1 }
0x1171   :  { %2433 = vmatpush.msra.mxu1 %v3526_v3 }
0x1173   :  { %2434 = vmatpush.msra.mxu1 %v3525_v4  ;;  %v3667_v4 = vld [vmem:[%s5936_s8 + $0x7] ss:$0 sm:$0xff] }
0x1175   :  { %2435 = vmatpush.msra.mxu1 %v3524_v51 }
0x1176   :  { %3533 = vmatmul.msk.f32.vlgmr.msra.gmra.mxu1 %vm462_vm0, %v5077_v27 }
0x117e   :  { %3534 = vmatmul.msk.f32.gmra.mxu1 %vm462_vm0, %v5098_v56 }
0x11c2   :  { %v5374_v55 = vpop.f32.mrf.mxu0 }
0x11ca   :  { %v2104_v8 = vpop.f32.mrf.mxu0 }
0x11cb   :  { %v5376_v9 = vadd.f32 %v2133_v6, %v2104_v8 }
0x11d2   :  { %v2241_v10 = vpop.f32.mrf.mxu0 }
0x11d3   :  { %v2242_v18 = vadd.f32 %v3664_v14, %v2241_v10  ;;  %v2131_v10 = vadd.f32 %v5372_v5, %v5374_v55 }
0x11da   :  { %v2244_v15 = vpop.f32.mrf.mxu0 }
0x11db   :  { %v2245_v16 = vadd.f32 %v3664_v14, %v2244_v15 }
0x11dd   :  { %2326 = vmatpush.msra.mxu2 %v2245_v16 }
0x11df   :  { %2327 = vmatpush.msra.mxu2 %v2242_v18 }
0x11e1   :  { %2465 = vmatpush.msrb.mxu2 %v3542_v39 }
0x11e2   :  { %v2400_v59 = vpop.f32.mrf.mxu0 }
0x11e3   :  { %v2278_v19 = vpop.f32.mrf.mxu1  ;;  %2466 = vmatpush.msrb.mxu2 %v3541_v36  ;;  %v2401_v62 = vadd.f32 %v3665_v60, %v2400_v59 }
0x11e4   :  { %v2279_v21 = vadd.f32 %v5175_v7, %v2278_v19 }
0x11e5   :  { %2467 = vmatpush.msrb.mxu2 %v3540_v41  ;;  %v2480_v63 = vmul.f32 0.25, %v2401_v62  ;;  %v3574_v62 = vld [vmem:[%s5941_s13 + $0xf8] sm:$0xff] }
0x11e6   :  { %v2284_v22 = vsel %vm564_vm1, %v2279_v21, -inf }
0x11e7   :  { %2285 = vmax.xlane.f32.xlu0 %v2284_v22  ;;  %2468 = vmatpush.msrb.mxu2 %v3539_v42 }
0x11e9   :  { %2469 = vmatpush.msrb.mxu2 %v3538_v43 }
0x11ea   :  { %v2403_v0 = vpop.f32.mrf.mxu0 }
0x11eb   :  { %v2281_v23 = vpop.f32.mrf.mxu1  ;;  %2470 = vmatpush.msrb.mxu2 %v3537_v44  ;;  %v2404_v2 = vadd.f32 %v3665_v60, %v2403_v0  ;;  %v3572_v0 = vld [vmem:[%s5941_s13 + $0xe8] sm:$0xff] }
0x11ec   :  { %v2282_v24 = vadd.f32 %v5182_v11, %v2281_v23 }
0x11ed   :  { %2471 = vmatpush.msrb.mxu2 %v3536_v45  ;;  %v2481_v3 = vmul.f32 0.25, %v2404_v2  ;;  %v3570_v2 = vld [vmem:[%s5941_s13 + $0xd8] sm:$0xff] }
0x11ee   :  { %v2287_v25 = vsel %vm564_vm1, %v2282_v24, -inf }
0x11ef   :  { %2288 = vmax.xlane.f32.xlu1 %v2287_v25  ;;  %2472 = vmatpush.msrb.mxu2 %v3535_v46 }
0x11f3   :  { %v2437_v26 = vpop.f32.mrf.mxu1 }
0x11f4   :  { %v2438_v29 = vadd.f32 %v3666_v47, %v2437_v26 }
0x11fb   :  { %v2440_v49 = vpop.f32.mrf.mxu1 }
0x11fc   :  { %v2441_v28 = vadd.f32 %v3666_v47, %v2440_v49 }
0x11fe   :  { %3546 = vmatpush.xpose.msk.msrb.mxu3 %vm564_vm1, %v2441_v28 }
0x1202   :  { %3547 = vmatpush.xpose.msk.msrb.mxu3 %vm564_vm1, %v2438_v29 }
0x125a   :  { %v2286_v30 = vpop.xlane.xlu0 %2285 }
0x125b   :  { %v2290_v32 = vsub.f32 %v2279_v21, %v2286_v30 }
0x125d   :  { %v2292_v33 = vmul.f32 1.442695, %v2290_v32 }
0x125f   :  { %3732 = vpow2.f32 %v2292_v33 }
0x1262   :  { %v2289_v48 = vpop.xlane.xlu1 %2288 }
0x1263   :  { %v2291_v34 = vsub.f32 %v2282_v24, %v2289_v48 }
0x1265   :  { %v3733_v31 = vpop.eup %3732  ;;  %v2294_v35 = vmul.f32 1.442695, %v2291_v34 }
0x1266   :  { %v2296_v20 = vsel %vm564_vm1, %v3733_v31, 0.0 }
0x1267   :  { %3734 = vpow2.f32 %v2294_v35  ;;  %2297 = vadd.xlane.f32.xlu2 %v2296_v20 }
0x126d   :  { %v3735_v37 = vpop.eup %3734 }
0x126e   :  { %v2299_v38 = vsel %vm564_vm1, %v3735_v37, 0.0 }
0x126f   :  { %2300 = vadd.xlane.f32.xlu0 %v2299_v38 }
0x12da   :  { %v2298_v50 = vpop.xlane.xlu2 %2297 }
0x12db   :  { %3736 = vrcp.f32 %v2298_v50 }
0x12e1   :  { %v3737_v52 = vpop.eup %3736 }
0x12e2   :  { %v2304_v53 = vmul.f32 %v3737_v52, %v3733_v31  ;;  %v2301_v54 = vpop.xlane.xlu0 %2300  ;;  %v3552_v31 = vld [vmem:[%s5937_s9 + $0x70] sm:$0xff] }
0x12e3   :  { %3738 = vrcp.f32 %v2301_v54 }
0x12e4   :  { %3507 = vmatmul.msk.f32.vlgmr.msra.gmra.mxu2 %vm564_vm1, %v2304_v53 }
0x12e9   :  { %v3739_v57 = vpop.eup %3738 }
0x12ea   :  { %v2305_v58 = vmul.f32 %v3739_v57, %v3735_v37  ;;  %v3668_v37 = vld [vmem:[%s5938_s10 + $0x1] ss:$0 sm:$0xff] }
0x12ec   :  { %3508 = vmatmul.msk.f32.gmra.mxu2 %vm564_vm1, %v2305_v58 }
0x12f4   :  { %3544 = vmatmul.msk.f32.vlgmr.msrb.gmra.mxu2 %vm462_vm0, %v5077_v27 }
0x12fc   :  { %3545 = vmatmul.msk.f32.gmra.mxu2 %vm462_vm0, %v5098_v56 }
0x1367   :  { %v2329_v40 = vpop.f32.mrf.mxu2 }
0x1368   :  { %3511 = vmatmul.msk.f32.vlgmr.msra.gmra.mxu3 %vm564_vm1, %v2329_v40 }
0x1369   :  { %2730 = vmatpush.msra.mxu3 %v3574_v62  ;;  %v3583_v62 = vld [vmem:[%s5943_s15 + $0x118] sm:$0xff] }
0x136b   :  { %2731 = vmatpush.msra.mxu3 %v3572_v0 }
0x136d   :  { %2732 = vmatpush.msra.mxu3 %v3570_v2 }
0x136f   :  { %v2332_v61 = vpop.f32.mrf.mxu2 }
0x1370   :  { %3512 = vmatmul.msk.f32.gmra.mxu3 %vm564_vm1, %v2332_v61  ;;  %v3573_v61 = vld [vmem:[%s5941_s13 + $0xf0] sm:$0xff] }
0x1371   :  { %2707 = vmatpush.msra.mxu2 %v3573_v61 }
0x1377   :  { %v2474_v1 = vpop.f32.mrf.mxu2 }
0x1378   :  { %3548 = vmatmul.msk.f32.vlgmr.msrb.gmra.mxu3 %vm564_vm1, %v2480_v63  ;;  %v2475_v8 = vadd.f32 %v3667_v4, %v2474_v1  ;;  %v3571_v63 = vld [vmem:[%s5941_s13 + $0xe0] sm:$0xff]  ;;  %v3569_v1 = vld [vmem:[%s5941_s13 + $0xd0] sm:$0xff] }
0x1379   :  { %2708 = vmatpush.msra.mxu2 %v3571_v63  ;;  %v3599_v63 = vld [vmem:[%s5943_s15 + $0x198] sm:$0xff] }
0x137b   :  { %2709 = vmatpush.msra.mxu2 %v3569_v1 }
0x137f   :  { %v2477_v51 = vpop.f32.mrf.mxu2 }
0x1380   :  { %v2478_v6 = vadd.f32 %v3667_v4, %v2477_v51  ;;  %3549 = vmatmul.msk.f32.gmra.mxu3 %vm564_vm1, %v2481_v3  ;;  %v3567_v3 = vld [vmem:[%s5941_s13 + $0xc0] sm:$0xff]  ;;  %v3568_v4 = vld [vmem:[%s5941_s13 + $0xc8] sm:$0xff]  ;;  %v3565_v51 = vld [vmem:[%s5941_s13 + $0xb0] sm:$0xff] }
0x1381   :  { %2710 = vmatpush.msra.mxu2 %v3567_v3  ;;  %2733 = vmatpush.msra.mxu3 %v3568_v4 }
0x1382   :  { %2559 = vmatpush.msrb.mxu0 %v2478_v6  ;;  %v3566_v6 = vld [vmem:[%s5941_s13 + $0xb8] sm:$0xff] }
0x1383   :  { %2711 = vmatpush.msra.mxu2 %v3565_v51  ;;  %2734 = vmatpush.msra.mxu3 %v3566_v6  ;;  %v3582_v51 = vld [vmem:[%s5943_s15 + $0x110] sm:$0xff] }
0x1384   :  { %2560 = vmatpush.msrb.mxu0 %v2475_v8  ;;  %v3563_v8 = vld [vmem:[%s5941_s13 + $0xa0] sm:$0xff]  ;;  %v3598_v6 = vld [vmem:[%s5943_s15 + $0x190] sm:$0xff] }
0x1385   :  { %2712 = vmatpush.msra.mxu2 %v3563_v8  ;;  %v3597_v8 = vld [vmem:[%s5943_s15 + $0x188] sm:$0xff] }
0x13eb   :  { %v2361_v12 = vpop.f32.mrf.mxu3 }
0x13ec   :  { %v2367_v14 = vadd.f32 %v2361_v12, %v2131_v10  ;;  %v3564_v10 = vld [vmem:[%s5941_s13 + $0xa8] sm:$0xff]  ;;  %v3561_v12 = vld [vmem:[%s5941_s13 + $0x90] sm:$0xff] }
0x13ed   :  { %2735 = vmatpush.msra.mxu3 %v3564_v10  ;;  %2713 = vmatpush.msra.mxu2 %v3561_v12  ;;  %v3580_v10 = vld [vmem:[%s5943_s15 + $0x100] sm:$0xff] }
0x13ee   :  { %v3596_v12 = vld [vmem:[%s5943_s15 + $0x180] sm:$0xff] }
0x13f3   :  { %v2364_v15 = vpop.f32.mrf.mxu3 }
0x13f4   :  { %v2368_v16 = vadd.f32 %v2364_v15, %v5376_v9  ;;  %v3559_v15 = vld [vmem:[%s5941_s13 + $0x80] sm:$0xff] }
0x13f5   :  { %2714 = vmatpush.msra.mxu2 %v3559_v15 }
0x13fb   :  { %v2511_v17 = vpop.f32.mrf.mxu3 }
0x13fc   :  { %v2512_v18 = vadd.f32 %v5175_v7, %v2511_v17 }
0x13fe   :  { %v2517_v19 = vsel %vm564_vm1, %v2512_v18, -inf }
0x13ff   :  { %2518 = vmax.xlane.f32.xlu1 %v2517_v19 }
0x1403   :  { %v2514_v21 = vpop.f32.mrf.mxu3 }
0x1404   :  { %v2515_v22 = vadd.f32 %v5182_v11, %v2514_v21  ;;  %v3553_v11 = vld [vmem:[%s5937_s9 + $0x78] sm:$0xff] }
0x1405   :  { %2591 = vmatpush.msrb.mxu1 %v3553_v11  ;;  %v3595_v21 = vld [vmem:[%s5943_s15 + $0x178] sm:$0xff] }
0x1406   :  { %v2520_v23 = vsel %vm564_vm1, %v2515_v22, -inf  ;;  %2787 = vmatpush.msra.mxu0 %v3595_v21  ;;  %v3607_v11 = vld [vmem:[%s5943_s15 + $0x1d8] sm:$0xff] }
0x1407   :  { %2521 = vmax.xlane.f32.xlu2 %v2520_v23  ;;  %2592 = vmatpush.msrb.mxu1 %v3552_v31  ;;  %v3594_v23 = vld [vmem:[%s5943_s15 + $0x170] sm:$0xff] }
0x1408   :  { %2788 = vmatpush.msra.mxu0 %v3594_v23 }
0x1472   :  { %v2519_v24 = vpop.xlane.xlu1 %2518 }
0x1473   :  { %v2523_v25 = vsub.f32 %v2512_v18, %v2519_v24  ;;  %v3610_v24 = vld [vmem:[%s5943_s15 + $0x1f0] sm:$0xff] }
0x1475   :  { %v2525_v5 = vmul.f32 1.442695, %v2523_v25  ;;  %v3593_v25 = vld [vmem:[%s5943_s15 + $0x168] sm:$0xff] }
0x1476   :  { %2789 = vmatpush.msra.mxu0 %v3593_v25 }
0x1477   :  { %3740 = vpow2.f32 %v2525_v5  ;;  %v3609_v5 = vld [vmem:[%s5943_s15 + $0x1e8] sm:$0xff] }
0x147a   :  { %v2522_v55 = vpop.xlane.xlu2 %2521 }
0x147b   :  { %v2524_v26 = vsub.f32 %v2515_v22, %v2522_v55  ;;  %v3611_v22 = vld [vmem:[%s5943_s15 + $0x1f8] sm:$0xff] }
0x147c   :  { %2810 = vmatpush.msra.mxu1 %v3611_v22 }
0x147d   :  { %v3741_v47 = vpop.eup %3740  ;;  %v2527_v9 = vmul.f32 1.442695, %v2524_v26 }
0x147e   :  { %v2529_v49 = vsel %vm564_vm1, %v3741_v47, 0.0  ;;  %2811 = vmatpush.msra.mxu1 %v3610_v24 }
0x147f   :  { %3742 = vpow2.f32 %v2527_v9  ;;  %2530 = vadd.xlane.f32.xlu0 %v2529_v49  ;;  %v3608_v9 = vld [vmem:[%s5943_s15 + $0x1e0] sm:$0xff] }
0x1480   :  { %2812 = vmatpush.msra.mxu1 %v3609_v5 }
0x1482   :  { %2813 = vmatpush.msra.mxu1 %v3608_v9  ;;  %v3671_v9 = vld [vmem:[%s5944_s16 + $0x1] ss:$0 sm:$0xff] }
0x1484   :  { %2814 = vmatpush.msra.mxu1 %v3607_v11 }
0x1485   :  { %v3743_v7 = vpop.eup %3742 }
0x1486   :  { %v2532_v28 = vsel %vm564_vm1, %v3743_v7, 0.0 }
0x1487   :  { %2533 = vadd.xlane.f32.xlu1 %v2532_v28  ;;  %v3591_v28 = vld [vmem:[%s5943_s15 + $0x158] sm:$0xff] }
0x14f2   :  { %v2531_v29 = vpop.xlane.xlu0 %2530 }
0x14f3   :  { %3744 = vrcp.f32 %v2531_v29 }
0x14f9   :  { %v3745_v30 = vpop.eup %3744 }
0x14fa   :  { %v2537_v32 = vmul.f32 %v3745_v30, %v3741_v47  ;;  %v2534_v33 = vpop.xlane.xlu1 %2533  ;;  %v3592_v47 = vld [vmem:[%s5943_s15 + $0x160] sm:$0xff]  ;;  %v3590_v30 = vld [vmem:[%s5943_s15 + $0x150] sm:$0xff] }
0x14fb   :  { %3746 = vrcp.f32 %v2534_v33  ;;  %2790 = vmatpush.msra.mxu0 %v3592_v47 }
0x14fc   :  { %3550 = vmatmul.msk.f32.vlgmr.msrb.gmra.mxu0 %vm564_vm1, %v2537_v32  ;;  %v3606_v32 = vld [vmem:[%s5943_s15 + $0x1d0] sm:$0xff] }
0x14fd   :  { %2791 = vmatpush.msra.mxu0 %v3591_v28  ;;  %2815 = vmatpush.msra.mxu1 %v3606_v32 }
0x14ff   :  { %2792 = vmatpush.msra.mxu0 %v3590_v30 }
0x1501   :  { %v3747_v48 = vpop.eup %3746 }
0x1502   :  { %v2538_v34 = vmul.f32 %v3747_v48, %v3743_v7  ;;  %v3589_v48 = vld [vmem:[%s5943_s15 + $0x148] sm:$0xff] }
0x1503   :  { %2793 = vmatpush.msra.mxu0 %v3589_v48 }
0x1504   :  { %3551 = vmatmul.msk.f32.gmra.mxu0 %vm564_vm1, %v2538_v34  ;;  %v3605_v34 = vld [vmem:[%s5943_s15 + $0x1c8] sm:$0xff] }
0x1505   :  { %2816 = vmatpush.msra.mxu1 %v3605_v34 }
0x1579   :  { %v2562_v35 = vpop.f32.mrf.mxu0 }
0x157a   :  { %3554 = vmatmul.msk.f32.vlgmr.msrb.gmra.mxu1 %vm564_vm1, %v2562_v35  ;;  %v3588_v35 = vld [vmem:[%s5943_s15 + $0x140] sm:$0xff] }
0x157b   :  { %2794 = vmatpush.msra.mxu0 %v3588_v35 }
0x1581   :  { %v2565_v20 = vpop.f32.mrf.mxu0 }
0x1582   :  { %3555 = vmatmul.msk.f32.gmra.mxu1 %vm564_vm1, %v2565_v20  ;;  %v3604_v20 = vld [vmem:[%s5943_s15 + $0x1c0] sm:$0xff] }
0x1583   :  { %2817 = vmatpush.msra.mxu1 %v3604_v20 }
0x15f7   :  { %v2594_v38 = vpop.f32.mrf.mxu1 }
0x15f8   :  { %v2600_v39 = vadd.f32 %v2594_v38, %v2367_v14  ;;  %v3562_v14 = vld [vmem:[%s5941_s13 + $0x98] sm:$0xff] }
0x15f9   :  { %2736 = vmatpush.msra.mxu3 %v3562_v14  ;;  %v3575_v14 = vld [vmem:[%s5942_s14 + $0x2] sm:$0x3] }
0x15fa   :  { %v2607_v36 = vadd.f32 %v3668_v37, %v2600_v39  ;;  %v3587_v39 = vld [vmem:[%s5943_s15 + $0x138] sm:$0xff]  ;;  %v2689_v15 = vperm.slane %v3575_v14, 0 }
0x15fb   :  { %2795 = vmatpush.msra.mxu0 %v3587_v39 }
0x15fc   :  { %v2609_v41 = vadd.f32 %v2607_v36, %v5077_v27  ;;  %v3603_v36 = vld [vmem:[%s5943_s15 + $0x1b8] sm:$0xff] }
0x15fd   :  { %2818 = vmatpush.msra.mxu1 %v3603_v36 }
0x15fe   :  { %v2615_v42 = vsel %vm462_vm0, %v2609_v41, 0.0 }
0x15ff   :  { %2616 = vadd.xlane.f32.xlu2 %v2615_v42  ;;  %v2597_v43 = vpop.f32.mrf.mxu1 }
0x1600   :  { %v2601_v44 = vadd.f32 %v2597_v43, %v2368_v16  ;;  %v3560_v16 = vld [vmem:[%s5941_s13 + $0x88] sm:$0xff] }
0x1601   :  { %2737 = vmatpush.msra.mxu3 %v3560_v16  ;;  %v2690_v16 = vperm.slane %v3575_v14, 1  ;;  %v2904_v14 = vld [vmem:[%s5947_s19 + $0x48] sm:$0xff] }
0x1602   :  { %v2608_v45 = vadd.f32 %v3668_v37, %v2601_v44  ;;  %v3586_v44 = vld [vmem:[%s5943_s15 + $0x130] sm:$0xff] }
0x1603   :  { %2796 = vmatpush.msra.mxu0 %v3586_v44 }
0x1604   :  { %v2610_v46 = vadd.f32 %v2608_v45, %v5098_v56  ;;  %v3602_v45 = vld [vmem:[%s5943_s15 + $0x1b0] sm:$0xff] }
0x1605   :  { %2819 = vmatpush.msra.mxu1 %v3602_v45 }
0x1606   :  { %v2618_v50 = vsel %vm462_vm0, %v2610_v46, 0.0 }
0x1607   :  { %2619 = vadd.xlane.f32.xlu0 %v2618_v50 }
0x1672   :  { %v2617_v52 = vpop.xlane.xlu2 %2616 }
0x1673   :  { %v2621_v53 = vmul.f32 %v2617_v52, %v4780_v13  ;;  %v3670_v52 = vld [vmem:[%s5940_s12 + $0x1] ss:$0 sm:$0xff]  ;;  %s3187_s12 = sshll.u32 %s3787_s6, 4  ;;  %s3188_s12 = int_to_ptr.vmem [resolvable:$true] %s3187_s12 }
0x1675   :  { %v5465_v54 = vsub.f32 %v2609_v41, %v2621_v53  ;;  %v3669_v41 = vld [vmem:[%s5939_s11 + $0x1] ss:$0 sm:$0xff] }
0x1677   :  { %v2625_v57 = vmul.f32 %v5465_v54, %v5465_v54 }
0x1679   :  { %v2627_v27 = vsel %vm462_vm0, %v2625_v57, 0.0  ;;  %v3585_v57 = vld [vmem:[%s5943_s15 + $0x128] sm:$0xff] }
0x167a   :  { %2628 = vadd.xlane.f32.xlu1 %v2627_v27  ;;  %v2620_v58 = vpop.xlane.xlu0 %2619  ;;  %v3601_v27 = vld [vmem:[%s5943_s15 + $0x1a8] sm:$0xff]  ;;  %2797 = vmatpush.msra.mxu0 %v3585_v57  ;;  %v2943_v57 = vld [vmem:[%s5947_s19 + $0x180] sm:$0xff] }
0x167b   :  { %v2622_v40 = vmul.f32 %v2620_v58, %v4780_v13  ;;  %2820 = vmatpush.msra.mxu1 %v3601_v27  ;;  %v2944_v27 = vld [vmem:[%s5947_s19 + $0x188] sm:$0xff] }
0x167d   :  { %v5471_v59 = vsub.f32 %v2610_v46, %v2622_v40 }
0x167f   :  { %v2626_v56 = vmul.f32 %v5471_v59, %v5471_v59 }
0x1681   :  { %v2630_v60 = vsel %vm462_vm0, %v2626_v56, 0.0  ;;  %v3584_v56 = vld [vmem:[%s5943_s15 + $0x120] sm:$0xff] }
0x1682   :  { %2631 = vadd.xlane.f32.xlu2 %v2630_v60  ;;  %2798 = vmatpush.msra.mxu0 %v3584_v56  ;;  %v2935_v56 = vld [vmem:[%s5947_s19 + $0x140] sm:$0xff] }
0x1684   :  { %2799 = vmatpush.msra.mxu0 %v3583_v62  ;;  %v2927_v62 = vld [vmem:[%s5947_s19 + $0x100] sm:$0xff] }
0x1686   :  { %2800 = vmatpush.msra.mxu0 %v3582_v51  ;;  %v2924_v51 = vld [vmem:[%s5947_s19 + $0xe8] sm:$0xff] }
0x16ed   :  { %v2629_v17 = vpop.xlane.xlu1 %2628 }
0x16ee   :  { %v2633_v18 = vmul.f32 %v2629_v17, %v4780_v13 }
0x16f0   :  { %v2635_v19 = vadd.f32 1e-05, %v2633_v18 }
0x16f2   :  { %3748 = vrsqrt.f32 %v2635_v19  ;;  %vm2643_vm1 = vweird.f32 %v2635_v19 }
0x16f5   :  { %v2632_v55 = vpop.xlane.xlu2 %2631 }
0x16f6   :  { %v2634_v26 = vmul.f32 %v2632_v55, %v4780_v13 }
0x16f8   :  { %v3749_v49 = vpop.eup %3748  ;;  %v2636_v7 = vadd.f32 1e-05, %v2634_v26 }
0x16f9   :  { %v2638_v29 = vmul.f32 %v3749_v49, %v2635_v19  ;;  %vm2644_vm15 = vweird.f32 %v3749_v49 }
0x16fa   :  { %3750 = vrsqrt.f32 %v2636_v7  ;;  %vm2645_vm2 = vmor %vm2643_vm1, %vm2644_vm15  ;;  %vm2653_vm4 = vweird.f32 %v2636_v7 }
0x16fb   :  { %v2639_v33 = vmul.f32 %v3749_v49, %v2638_v29 }
0x16fd   :  { %v2640_v31 = vmul.f32 0.5, %v2639_v33 }
0x16ff   :  { %v2641_v37 = vsub.f32 1.5, %v2640_v31 }
0x1700   :  { %v3751_v38 = vpop.eup %3750 }
0x1701   :  { %v2642_v42 = vmul.f32 %v3749_v49, %v2641_v37  ;;  %v2648_v43 = vmul.f32 %v3751_v38, %v2636_v7  ;;  %vm2654_vm3 = vweird.f32 %v3751_v38 }
0x1702   :  { %vm2655_vm5 = vmor %vm2653_vm4, %vm2654_vm3 }
0x1703   :  { %v2646_v46 = vsel %vm2645_vm2, %v3749_v49, %v2642_v42  ;;  %v2649_v50 = vmul.f32 %v3751_v38, %v2648_v43 }
0x1704   :  { %v2657_v53 = vmul.f32 %v2646_v46, %v5465_v54  ;;  %v3600_v54 = vld [vmem:[%s5943_s15 + $0x1a0] sm:$0xff] }
0x1705   :  { %v2650_v58 = vmul.f32 0.5, %v2649_v50  ;;  %2821 = vmatpush.msra.mxu1 %v3600_v54  ;;  %v2951_v46 = vld [vmem:[%s5947_s19 + $0x1c0] sm:$0xff]  ;;  %v2952_v50 = vld [vmem:[%s5947_s19 + $0x1c8] sm:$0xff] }
0x1706   :  { %v2662_v40 = vmul.f32 %v3669_v41, %v2657_v53  ;;  %2991 = vmatpush.msrb.mxu2 %v2951_v46  ;;  %3014 = vmatpush.msrb.mxu3 %v2952_v50  ;;  %v2956_v53 = vld [vmem:[%s5947_s19 + $0x1e8] sm:$0xff]  ;;  %v3672_v46 = vld [vmem:[%s5974_s23 + $0x1] ss:$0 sm:$0xff] }
0x1707   :  { %v2651_v60 = vsub.f32 1.5, %v2650_v58  ;;  %2822 = vmatpush.msra.mxu1 %v3599_v63  ;;  %v2947_v58 = vld [vmem:[%s5947_s19 + $0x1a0] sm:$0xff]  ;;  %v2936_v54 = vld [vmem:[%s5947_s19 + $0x148] sm:$0xff] }
0x1708   :  { %v2667_v61 = vadd.f32 %v3670_v52, %v2662_v40  ;;  %2992 = vmatpush.msrb.mxu2 %v2943_v57  ;;  %3015 = vmatpush.msrb.mxu3 %v2944_v27  ;;  %v2948_v40 = vld [vmem:[%s5947_s19 + $0x1a8] sm:$0xff] }
0x1709   :  { %v2652_v0 = vmul.f32 %v3751_v38, %v2651_v60  ;;  %2823 = vmatpush.msra.mxu1 %v3598_v6  ;;  %v2939_v60 = vld [vmem:[%s5947_s19 + $0x160] sm:$0xff]  ;;  %v2928_v63 = vld [vmem:[%s5947_s19 + $0x108] sm:$0xff] }
0x170a   :  { %3576 = vmatmul.msk.f32.vlgmr.msra.gmra.mxu2 %vm462_vm0, %v2667_v61  ;;  %3578 = vmatmul.msk.f32.vlgmr.msra.gmra.mxu3 %vm462_vm0, %v2667_v61  ;;  %v2911_v6 = vld [vmem:[%s5947_s19 + $0x80] sm:$0xff] }
0x170b   :  { %v2656_v1 = vsel %vm2655_vm5, %v3751_v38, %v2652_v0  ;;  %2824 = vmatpush.msra.mxu1 %v3597_v8  ;;  %2993 = vmatpush.msrb.mxu2 %v2935_v56  ;;  %v2931_v0 = vld [vmem:[%s5947_s19 + $0x120] sm:$0xff] }
0x170c   :  { %v2658_v2 = vmul.f32 %v2656_v1, %v5471_v59  ;;  %v3581_v59 = vld [vmem:[%s5943_s15 + $0x108] sm:$0xff]  ;;  %3016 = vmatpush.msrb.mxu3 %v2936_v54  ;;  %v2915_v8 = vld [vmem:[%s5947_s19 + $0xa0] sm:$0xff] }
0x170d   :  { %2801 = vmatpush.msra.mxu0 %v3581_v59  ;;  %2825 = vmatpush.msra.mxu1 %v3596_v12  ;;  %v2932_v1 = vld [vmem:[%s5947_s19 + $0x128] sm:$0xff]  ;;  %v2903_v12 = vld [vmem:[%s5947_s19 + $0x40] sm:$0xff] }
0x170e   :  { %v2663_v3 = vmul.f32 %v3669_v41, %v2658_v2  ;;  %2994 = vmatpush.msrb.mxu2 %v2927_v62  ;;  %3017 = vmatpush.msrb.mxu3 %v2928_v63  ;;  %v2919_v2 = vld [vmem:[%s5947_s19 + $0xc0] sm:$0xff]  ;;  %v2912_v59 = vld [vmem:[%s5947_s19 + $0x88] sm:$0xff]  ;;  %v2949_v62 = vld [vmem:[%s5947_s19 + $0x1b0] sm:$0xff] }
0x170f   :  { %2802 = vmatpush.msra.mxu0 %v3580_v10  ;;  %3106 = vmatpush.msrb.mxu1 %v2956_v53  ;;  %v2916_v10 = vld [vmem:[%s5947_s19 + $0xa8] sm:$0xff]  ;;  %v3673_v53 = vld [vmem:[%s5946_s18 + $0x1] ss:$0 sm:$0xff]  ;;  %v2950_v63 = vld [vmem:[%s5947_s19 + $0x1b8] sm:$0xff] }
0x1710   :  { %v2668_v4 = vadd.f32 %v3670_v52, %v2663_v3  ;;  %v2955_v52 = vld [vmem:[%s5947_s19 + $0x1e0] sm:$0xff]  ;;  %v2920_v3 = vld [vmem:[%s5947_s19 + $0xc8] sm:$0xff]  ;;  %2995 = vmatpush.msrb.mxu2 %v2919_v2  ;;  %v2942_v2 = vld [vmem:[%s5947_s19 + $0x178] sm:$0xff] }
0x1711   :  { %3083 = vmatpush.msrb.mxu0 %v2955_v52  ;;  %3107 = vmatpush.msrb.mxu1 %v2948_v40 }
0x1712   :  { %3577 = vmatmul.msk.f32.gmra.mxu2 %vm462_vm0, %v2668_v4  ;;  %3579 = vmatmul.msk.f32.gmra.mxu3 %vm462_vm0, %v2668_v4 }
0x1713   :  { %3084 = vmatpush.msrb.mxu0 %v2947_v58  ;;  %3018 = vmatpush.msrb.mxu3 %v2920_v3 }
0x1714   :  { %2996 = vmatpush.msrb.mxu2 %v2911_v6  ;;  %v2925_v6 = vld [vmem:[%s5947_s19 + $0xf0] sm:$0xff] }
0x1715   :  { %3085 = vmatpush.msrb.mxu0 %v2939_v60  ;;  %3019 = vmatpush.msrb.mxu3 %v2912_v59  ;;  %v2957_v60 = vld [vmem:[%s5947_s19 + $0x1f0] sm:$0xff]  ;;  %v2926_v59 = vld [vmem:[%s5947_s19 + $0xf8] sm:$0xff] }
0x1716   :  { %2997 = vmatpush.msrb.mxu2 %v2903_v12  ;;  %v2909_v12 = vld [vmem:[%s5947_s19 + $0x70] sm:$0xff] }
0x1717   :  { %3086 = vmatpush.msrb.mxu0 %v2931_v0  ;;  %3020 = vmatpush.msrb.mxu3 %v2904_v14  ;;  %v2910_v14 = vld [vmem:[%s5947_s19 + $0x78] sm:$0xff] }
0x178d   :  { %v2716_v17 = vpop.f32.mrf.mxu2  ;;  %v2739_v18 = vpop.f32.mrf.mxu3 }
0x178e   :  { %v2717_v19 = vadd.f32 %v2716_v17, %v2689_v15  ;;  %v2740_v21 = vadd.f32 %v2739_v18, %v2690_v16  ;;  %v2895_v17 = vld [vmem:[%s5947_s19] sm:$0xff]  ;;  %v2896_v18 = vld [vmem:[%s5947_s19 + $0x8] sm:$0xff] }
0x178f   :  { %2998 = vmatpush.msrb.mxu2 %v2895_v17  ;;  %3021 = vmatpush.msrb.mxu3 %v2896_v18  ;;  %v2959_v17 = vld [vmem:[%s5948_s20] sm:$0xff] }
0x1790   :  { %v2745_v22 = vmax.f32 %v2717_v19, 0.0  ;;  %v2746_v23 = vmax.f32 %v2740_v21, 0.0  ;;  %v2899_v19 = vld [vmem:[%s5947_s19 + $0x20] sm:$0xff]  ;;  %v2900_v21 = vld [vmem:[%s5947_s19 + $0x28] sm:$0xff]  ;;  %v2965_v18 = vperm.slane %v2959_v17, 4 }
0x1792   :  { %2803 = vmatmul.f32.vlgmr.msra.gmra.mxu0 %v2745_v22  ;;  %2826 = vmatmul.f32.vlgmr.msra.gmra.mxu1 %v2746_v23  ;;  %v2953_v22 = vld [vmem:[%s5947_s19 + $0x1d0] sm:$0xff]  ;;  %v2954_v23 = vld [vmem:[%s5947_s19 + $0x1d8] sm:$0xff] }
0x1793   :  { %3037 = vmatpush.msra.mxu2 %v2953_v22  ;;  %3060 = vmatpush.msra.mxu3 %v2954_v23 }
0x1795   :  { %v2719_v24 = vpop.f32.mrf.mxu2  ;;  %v2742_v25 = vpop.f32.mrf.mxu3 }
0x1796   :  { %v2720_v5 = vadd.f32 %v2719_v24, %v2689_v15  ;;  %v2743_v55 = vadd.f32 %v2742_v25, %v2690_v16  ;;  %v2907_v15 = vld [vmem:[%s5947_s19 + $0x60] sm:$0xff]  ;;  %v2908_v16 = vld [vmem:[%s5947_s19 + $0x68] sm:$0xff]  ;;  %v2945_v25 = vld [vmem:[%s5947_s19 + $0x190] sm:$0xff] }
0x1797   :  { %3038 = vmatpush.msra.mxu2 %v2945_v25  ;;  %v2961_v25 = vperm.slane %v2959_v17, 0 }
0x1798   :  { %v2747_v26 = vmax.f32 %v2720_v5, 0.0  ;;  %v2748_v47 = vmax.f32 %v2743_v55, 0.0  ;;  %v2946_v5 = vld [vmem:[%s5947_s19 + $0x198] sm:$0xff] }
0x1799   :  { %3061 = vmatpush.msra.mxu3 %v2946_v5  ;;  %v2962_v5 = vperm.slane %v2959_v17, 1 }
0x179a   :  { %2806 = vmatmul.f32.gmra.mxu0 %v2747_v26  ;;  %2829 = vmatmul.f32.gmra.mxu1 %v2748_v47  ;;  %v2937_v26 = vld [vmem:[%s5947_s19 + $0x150] sm:$0xff]  ;;  %v2938_v47 = vld [vmem:[%s5947_s19 + $0x158] sm:$0xff] }
0x179b   :  { %3039 = vmatpush.msra.mxu2 %v2937_v26  ;;  %3062 = vmatpush.msra.mxu3 %v2938_v47 }
0x180f   :  { %v2804_v49 = vpop.f32.mrf.mxu0  ;;  %v2827_v7 = vpop.f32.mrf.mxu1 }
0x1810   :  { %v2805_v28 = vadd.f32 %v3671_v9, %v2804_v49  ;;  %v2929_v49 = vld [vmem:[%s5947_s19 + $0x110] sm:$0xff] }
0x1811   :  { %3040 = vmatpush.msra.mxu2 %v2929_v49 }
0x1812   :  { %v2828_v11 = vadd.f32 %v2827_v7, %v2805_v28  ;;  %v2930_v7 = vld [vmem:[%s5947_s19 + $0x118] sm:$0xff]  ;;  %v2921_v28 = vld [vmem:[%s5947_s19 + $0xd0] sm:$0xff] }
0x1813   :  { %3063 = vmatpush.msra.mxu3 %v2930_v7  ;;  %3041 = vmatpush.msra.mxu2 %v2921_v28 }
0x1814   :  { %v2833_v29 = vadd.f32 %v2828_v11, %v2667_v61  ;;  %v2940_v61 = vld [vmem:[%s5947_s19 + $0x168] sm:$0xff]  ;;  %v2922_v11 = vld [vmem:[%s5947_s19 + $0xd8] sm:$0xff] }
0x1815   :  { %3108 = vmatpush.msrb.mxu1 %v2940_v61  ;;  %3064 = vmatpush.msra.mxu3 %v2922_v11  ;;  %v2958_v61 = vld [vmem:[%s5947_s19 + $0x1f8] sm:$0xff] }
0x1816   :  { %v2839_v30 = vsel %vm462_vm0, %v2833_v29, 0.0 }
0x1817   :  { %2840 = vadd.xlane.f32.xlu0 %v2839_v30  ;;  %v2807_v32 = vpop.f32.mrf.mxu0  ;;  %v2830_v48 = vpop.f32.mrf.mxu1  ;;  %3109 = vmatpush.msrb.mxu1 %v2932_v1  ;;  %v2914_v30 = vld [vmem:[%s5947_s19 + $0x98] sm:$0xff]  ;;  %v2941_v1 = vld [vmem:[%s5947_s19 + $0x170] sm:$0xff] }
0x1818   :  { %v2808_v33 = vadd.f32 %v3671_v9, %v2807_v32  ;;  %3065 = vmatpush.msra.mxu3 %v2914_v30 }
0x1819   :  { %3110 = vmatpush.msrb.mxu1 %v2924_v51  ;;  %v2934_v51 = vld [vmem:[%s5947_s19 + $0x138] sm:$0xff] }
0x181a   :  { %v2831_v34 = vadd.f32 %v2830_v48, %v2808_v33  ;;  %v2905_v33 = vld [vmem:[%s5947_s19 + $0x50] sm:$0xff]  ;;  %v2906_v48 = vld [vmem:[%s5947_s19 + $0x58] sm:$0xff] }
0x181b   :  { %3111 = vmatpush.msrb.mxu1 %v2916_v10  ;;  %3066 = vmatpush.msra.mxu3 %v2906_v48  ;;  %v2918_v10 = vld [vmem:[%s5947_s19 + $0xb8] sm:$0xff]  ;;  %v2963_v48 = vperm.slane %v2959_v17, 2 }
0x181c   :  { %v2834_v31 = vadd.f32 %v2831_v34, %v2668_v4  ;;  %v2923_v4 = vld [vmem:[%s5947_s19 + $0xe0] sm:$0xff] }
0x181d   :  { %3087 = vmatpush.msrb.mxu0 %v2923_v4  ;;  %3112 = vmatpush.msrb.mxu1 %v2908_v16  ;;  %v2902_v16 = vld [vmem:[%s5947_s19 + $0x38] sm:$0xff] }
0x181e   :  { %v2842_v35 = vsel %vm462_vm0, %v2834_v31, 0.0 }
0x181f   :  { %2843 = vadd.xlane.f32.xlu1 %v2842_v35  ;;  %3088 = vmatpush.msrb.mxu0 %v2915_v8  ;;  %v2898_v35 = vld [vmem:[%s5947_s19 + $0x18] sm:$0xff]  ;;  %v2917_v8 = vld [vmem:[%s5947_s19 + $0xb0] sm:$0xff] }
0x1820   :  { %3113 = vmatpush.msrb.mxu1 %v2900_v21  ;;  %3067 = vmatpush.msra.mxu3 %v2898_v35 }
0x1821   :  { %3089 = vmatpush.msrb.mxu0 %v2907_v15  ;;  %v2901_v15 = vld [vmem:[%s5947_s19 + $0x30] sm:$0xff] }
0x1823   :  { %3090 = vmatpush.msrb.mxu0 %v2899_v19  ;;  %v2966_v19 = vperm.slane %v2959_v17, 5 }
0x188a   :  { %v2841_v20 = vpop.xlane.xlu0 %2840 }
0x188b   :  { %v2845_v37 = vmul.f32 %v2841_v20, %v4780_v13 }
0x188d   :  { %v5643_v38 = vsub.f32 %v2833_v29, %v2845_v37  ;;  %v2913_v29 = vld [vmem:[%s5947_s19 + $0x90] sm:$0xff] }
0x188e   :  { %3042 = vmatpush.msra.mxu2 %v2913_v29 }
0x188f   :  { %v2849_v39 = vmul.f32 %v5643_v38, %v5643_v38 }
0x1890   :  { %3043 = vmatpush.msra.mxu2 %v2905_v33 }
0x1891   :  { %v2851_v36 = vsel %vm462_vm0, %v2849_v39, 0.0 }
0x1892   :  { %v2844_v41 = vpop.xlane.xlu1 %2843  ;;  %2852 = vadd.xlane.f32.xlu2 %v2851_v36 }
0x1893   :  { %v2846_v42 = vmul.f32 %v2844_v41, %v4780_v13 }
0x1895   :  { %v5649_v43 = vsub.f32 %v2834_v31, %v2846_v42  ;;  %v2897_v31 = vld [vmem:[%s5947_s19 + $0x10] sm:$0xff] }
0x1896   :  { %3044 = vmatpush.msra.mxu2 %v2897_v31 }
0x1897   :  { %v2850_v44 = vmul.f32 %v5649_v43, %v5649_v43 }
0x1899   :  { %v2854_v45 = vsel %vm462_vm0, %v2850_v44, 0.0 }
0x189a   :  { %2855 = vadd.xlane.f32.xlu0 %v2854_v45 }
0x1905   :  { %v2853_v24 = vpop.xlane.xlu2 %2852 }
0x1906   :  { %v2857_v55 = vmul.f32 %v2853_v24, %v4780_v13 }
0x1908   :  { %v2859_v9 = vadd.f32 1e-05, %v2857_v55 }
0x190a   :  { %3752 = vrsqrt.f32 %v2859_v9  ;;  %vm2867_vm7 = vweird.f32 %v2859_v9 }
0x190d   :  { %v2856_v32 = vpop.xlane.xlu0 %2855 }
0x190e   :  { %v2858_v34 = vmul.f32 %v2856_v32, %v4780_v13 }
0x1910   :  { %v3753_v20 = vpop.eup %3752  ;;  %v2860_v37 = vadd.f32 1e-05, %v2858_v34  ;;  %v2964_v34 = vperm.slane %v2959_v17, 3 }
0x1911   :  { %v2862_v39 = vmul.f32 %v3753_v20, %v2859_v9  ;;  %vm2868_vm6 = vweird.f32 %v3753_v20 }
0x1912   :  { %3754 = vrsqrt.f32 %v2860_v37  ;;  %vm2869_vm8 = vmor %vm2867_vm7, %vm2868_vm6  ;;  %vm2877_vm10 = vweird.f32 %v2860_v37 }
0x1913   :  { %v2863_v36 = vmul.f32 %v3753_v20, %v2862_v39 }
0x1915   :  { %v2864_v13 = vmul.f32 0.5, %v2863_v36 }
0x1917   :  { %v2865_v41 = vsub.f32 1.5, %v2864_v13 }
0x1918   :  { %v3755_v42 = vpop.eup %3754 }
0x1919   :  { %v2866_v44 = vmul.f32 %v3753_v20, %v2865_v41  ;;  %v2872_v45 = vmul.f32 %v3755_v42, %v2860_v37  ;;  %vm2878_vm9 = vweird.f32 %v3755_v42 }
0x191a   :  { %vm2879_vm11 = vmor %vm2877_vm10, %vm2878_vm9 }
0x191b   :  { %v2870_v50 = vsel %vm2869_vm8, %v3753_v20, %v2866_v44  ;;  %v2873_v52 = vmul.f32 %v3755_v42, %v2872_v45  ;;  %v2968_v44 = vperm.slane %v2959_v17, 7 }
0x191c   :  { %v2881_v57 = vmul.f32 %v2870_v50, %v5643_v38 }
0x191d   :  { %v2874_v27 = vmul.f32 0.5, %v2873_v52 }
0x191e   :  { %v2886_v58 = vmul.f32 %v3672_v46, %v2881_v57 }
0x191f   :  { %v2875_v40 = vsub.f32 1.5, %v2874_v27 }
0x1920   :  { %v2891_v56 = vadd.f32 %v3673_v53, %v2886_v58 }
0x1921   :  { %v2876_v54 = vmul.f32 %v3755_v42, %v2875_v40 }
0x1922   :  { %2893 = vst.msk [vmem:[#allocation2] sm:$0xff] %vm462_vm0, %v2891_v56  ;;  %3615 = vmatmul.msk.f32.vlgmr.msrb.gmra.mxu2 %vm462_vm0, %v2891_v56  ;;  %3617 = vmatmul.msk.f32.vlgmr.msrb.gmra.mxu3 %vm462_vm0, %v2891_v56 }
0x1923   :  { %v2880_v38 = vsel %vm2879_vm11, %v3755_v42, %v2876_v54  ;;  %3623 = vmatmul.msk.f32.vlgmr.msrb.gmra.mxu0 %vm462_vm0, %v2891_v56  ;;  %3625 = vmatmul.msk.f32.vlgmr.msrb.gmra.mxu1 %vm462_vm0, %v2891_v56  ;;  %v2967_v42 = vperm.slane %v2959_v17, 6 }
0x1924   :  { %v2882_v0 = vmul.f32 %v2880_v38, %v5649_v43  ;;  %3129 = vmatpush.msrb.mxu2 %v2957_v60  ;;  %3152 = vmatpush.msrb.mxu3 %v2958_v61  ;;  %v2933_v43 = vld [vmem:[%s5947_s19 + $0x130] sm:$0xff] }
0x1926   :  { %v2887_v3 = vmul.f32 %v3672_v46, %v2882_v0  ;;  %3130 = vmatpush.msrb.mxu2 %v2949_v62  ;;  %3153 = vmatpush.msrb.mxu3 %v2950_v63 }
0x1928   :  { %v2892_v4 = vadd.f32 %v3673_v53, %v2887_v3  ;;  %3131 = vmatpush.msrb.mxu2 %v2941_v1  ;;  %3154 = vmatpush.msrb.mxu3 %v2942_v2 }
0x192a   :  { %2894 = vst.msk [vmem:[#allocation2 + $0x8] sm:$0xff] %vm462_vm0, %v2892_v4  ;;  %3616 = vmatmul.msk.f32.gmra.mxu2 %vm462_vm0, %v2892_v4  ;;  %3618 = vmatmul.msk.f32.gmra.mxu3 %vm462_vm0, %v2892_v4 }
0x192b   :  { %3624 = vmatmul.msk.f32.gmra.mxu0 %vm462_vm0, %v2892_v4  ;;  %3626 = vmatmul.msk.f32.gmra.mxu1 %vm462_vm0, %v2892_v4  ;;  %3195 = dma.vmem_to_hbm [thread:$0]  %s3188_s12, 256, %s3190_s27, [#allocation3], %s3788_s28, %s3788_s28, %s3789_s30  }
0x192c   :  { %3132 = vmatpush.msrb.mxu2 %v2933_v43  ;;  %3155 = vmatpush.msrb.mxu3 %v2934_v51 }
0x192e   :  { %3133 = vmatpush.msrb.mxu2 %v2925_v6  ;;  %3156 = vmatpush.msrb.mxu3 %v2926_v59 }
0x1930   :  { %3134 = vmatpush.msrb.mxu2 %v2917_v8  ;;  %3157 = vmatpush.msrb.mxu3 %v2918_v10 }
0x1932   :  { %3619 = vmatmul.msk.f32.vlgmr.msra.gmra.mxu2 %vm462_vm0, %v2891_v56  ;;  %3621 = vmatmul.msk.f32.vlgmr.msra.gmra.mxu3 %vm462_vm0, %v2891_v56 }
0x1933   :  { %3135 = vmatpush.msrb.mxu2 %v2909_v12  ;;  %3158 = vmatpush.msrb.mxu3 %v2910_v14 }
0x1935   :  { %3136 = vmatpush.msrb.mxu2 %v2901_v15  ;;  %3159 = vmatpush.msrb.mxu3 %v2902_v16 }
0x193a   :  { %3620 = vmatmul.msk.f32.gmra.mxu2 %vm462_vm0, %v2892_v4  ;;  %3622 = vmatmul.msk.f32.gmra.mxu3 %vm462_vm0, %v2892_v4 }
0x1942   :  { %3627 = vmatmul.msk.f32.vlgmr.msrb.gmra.mxu2 %vm462_vm0, %v2891_v56  ;;  %3629 = vmatmul.msk.f32.vlgmr.msrb.gmra.mxu3 %vm462_vm0, %v2891_v56 }
0x194a   :  { %3628 = vmatmul.msk.f32.gmra.mxu2 %vm462_vm0, %v2892_v4  ;;  %3630 = vmatmul.msk.f32.gmra.mxu3 %vm462_vm0, %v2892_v4 }
0x19a0   :  { %v3092_v21 = vpop.f32.mrf.mxu0  ;;  %v3115_v22 = vpop.f32.mrf.mxu1 }
0x19a1   :  { %v3093_v23 = vadd.f32 %v3092_v21, %v2965_v18  ;;  %v3116_v24 = vadd.f32 %v3115_v22, %v2966_v19 }
0x19a3   :  { %3171 = vst [vmem:[%s5950_s22 + $0x20] sm:$0xff] %v3093_v23 }
0x19a4   :  { %3172 = vst [vmem:[%s5950_s22 + $0x28] sm:$0xff] %v3116_v24 }
0x19a5   :  { %v3000_v55 = vpop.f32.mrf.mxu2  ;;  %v3023_v26 = vpop.f32.mrf.mxu3 }
0x19a6   :  { %v3001_v47 = vadd.f32 %v3000_v55, %v2961_v25  ;;  %v3024_v9 = vadd.f32 %v3023_v26, %v2962_v5 }
0x19a8   :  { %3167 = vst [vmem:[%s5950_s22] sm:$0xff] %v3001_v47  ;;  %v3095_v49 = vpop.f32.mrf.mxu0  ;;  %v3118_v7 = vpop.f32.mrf.mxu1 }
0x19a9   :  { %3168 = vst [vmem:[%s5950_s22 + $0x8] sm:$0xff] %v3024_v9  ;;  %v3096_v28 = vadd.f32 %v3095_v49, %v2965_v18  ;;  %v3119_v11 = vadd.f32 %v3118_v7, %v2966_v19 }
0x19ab   :  { %3179 = vst [vmem:[%s5950_s22 + $0x60] sm:$0xff] %v3096_v28 }
0x19ac   :  { %3180 = vst [vmem:[%s5950_s22 + $0x68] sm:$0xff] %v3119_v11 }
0x19ad   :  { %v3003_v29 = vpop.f32.mrf.mxu2  ;;  %v3026_v30 = vpop.f32.mrf.mxu3 }
0x19ae   :  { %v3004_v32 = vadd.f32 %v3003_v29, %v2961_v25  ;;  %v3027_v33 = vadd.f32 %v3026_v30, %v2962_v5 }
0x19b0   :  { %3175 = vst [vmem:[%s5950_s22 + $0x40] sm:$0xff] %v3004_v32 }
0x19b1   :  { %3176 = vst [vmem:[%s5950_s22 + $0x48] sm:$0xff] %v3027_v33 }
0x19b5   :  { %v3046_v31 = vpop.f32.mrf.mxu2  ;;  %v3069_v35 = vpop.f32.mrf.mxu3 }
0x19b6   :  { %v3047_v20 = vadd.f32 %v3046_v31, %v2963_v48  ;;  %v3070_v37 = vadd.f32 %v3069_v35, %v2964_v34 }
0x19b8   :  { %3169 = vst [vmem:[%s5950_s22 + $0x10] sm:$0xff] %v3047_v20 }
0x19b9   :  { %3170 = vst [vmem:[%s5950_s22 + $0x18] sm:$0xff] %v3070_v37 }
0x19bd   :  { %v3049_v39 = vpop.f32.mrf.mxu2  ;;  %v3072_v36 = vpop.f32.mrf.mxu3 }
0x19be   :  { %v3050_v13 = vadd.f32 %v3049_v39, %v2963_v48  ;;  %v3073_v41 = vadd.f32 %v3072_v36, %v2964_v34 }
0x19c0   :  { %3177 = vst [vmem:[%s5950_s22 + $0x50] sm:$0xff] %v3050_v13 }
0x19c1   :  { %3178 = vst [vmem:[%s5950_s22 + $0x58] sm:$0xff] %v3073_v41 }
0x19c5   :  { %v3138_v45 = vpop.f32.mrf.mxu2  ;;  %v3161_v46 = vpop.f32.mrf.mxu3 }
0x19c6   :  { %v3139_v50 = vadd.f32 %v3138_v45, %v2967_v42  ;;  %v3162_v52 = vadd.f32 %v3161_v46, %v2968_v44 }
0x19c8   :  { %3173 = vst [vmem:[%s5950_s22 + $0x30] sm:$0xff] %v3139_v50 }
0x19c9   :  { %3174 = vst [vmem:[%s5950_s22 + $0x38] sm:$0xff] %v3162_v52 }
0x19cd   :  { %v3141_v53 = vpop.f32.mrf.mxu2  ;;  %v3164_v57 = vpop.f32.mrf.mxu3 }
0x19ce   :  { %v3142_v27 = vadd.f32 %v3141_v53, %v2967_v42  ;;  %v3165_v58 = vadd.f32 %v3164_v57, %v2968_v44 }
0x19d0   :  { %3181 = vst [vmem:[%s5950_s22 + $0x70] sm:$0xff] %v3142_v27 }
0x19d1   :  { %3182 = vst [vmem:[%s5950_s22 + $0x78] sm:$0xff] %v3165_v58 }
0x19d2   :  { %3782 = dma.done.wait [#allocation3], 256  }
0x19d3   :  { %3783 = vsyncadd [#allocation3], 4294967040 }
0x19d4   :  { %3204 = vsyncpa [#allocation3], 1 }

</bundles_post_ra>
